<compile_context>
chip_gen: v7x
topology: tpu7x:2x2x1
jax: 0.10.0
libtpu: 0.0.40
codegen_flags: <defaults>
</compile_context>

<pallas_src>
import functools

import jax
import jax.numpy as jnp
from jax.experimental import pallas as pl
from jax.experimental.pallas import tpu as pltpu

RRELU_SLOPE = (1.0 / 8.0 + 1.0 / 3.0) / 2.0      # F.rrelu(training=False)
BN_EVAL_SCALE = 1.0 / (1.0 + 1e-5) ** 0.5        # BatchNorm1d eval with init running stats
LANE = 128


def _round_up(x, m):
    return (x + m - 1) // m * m


# ===================================================== fused RGCN(T x L) + GRU encoder
def _regcn_encoder_kernel(src_ref, dst_ref, type_ref, ent_ref, rel_ref,
                          wn_ref, wl_ref, wih_ref, whh_ref, bih_ref, bhh_ref,
                          h_ref):
    """One grid step = one historical graph: L RGCN layers then one GRU cell update.

    h_ref (the output block, constant index_map) doubles as the GRU hidden state and
    stays resident in VMEM across the whole T grid; only the final state reaches HBM.
    """
    t = pl.program_id(0)

    @pl.when(t == 0)
    def _():
        h_ref[...] = jnp.zeros_like(h_ref)                       # GRU h0 = 0

    E = src_ref.shape[1]
    Np, Dp = ent_ref.shape
    Rp = rel_ref.shape[0]
    L = wn_ref.shape[0]

    src_col = src_ref[0]                                         # (E, 1) int32
    type_col = type_ref[0]                                       # (E, 1) int32
    dst_row = dst_ref[0]                                         # (1, E) int32

    # Transient one-hot gather / scatter matrices built from indices (MXU-friendly).
    # TODO(synk): for very large N (where one-hot tiles stop being VMEM/FLOP friendly)
    # switch to a DMA / index gather over node tiles instead of iota one-hots.
    src_oh = (src_col == jax.lax.broadcasted_iota(jnp.int32, (E, Np), 1)).astype(jnp.float32)
    type_oh = (type_col == jax.lax.broadcasted_iota(jnp.int32, (E, Rp), 1)).astype(jnp.float32)
    dst_oh = (jax.lax.broadcasted_iota(jnp.int32, (Np, E), 0) == dst_row).astype(jnp.float32)
    deg = jnp.sum(dst_oh, axis=1, keepdims=True)                 # in-degree
    dst_oh = dst_oh * (1.0 / jnp.maximum(deg, 1.0))              # fold norm = 1/in_deg

    # relation lookup is layer-independent -> hoisted out of the layer loop
    rel_e = jnp.dot(type_oh, rel_ref[...], preferred_element_type=jnp.float32)   # (E, Dp)

    h = ent_ref[...]                                             # g.ndata['h'] = ent_embs
    for l in range(L):
        loop_msg = jnp.dot(h, wl_ref[l], preferred_element_type=jnp.float32)     # self-loop
        src_h = jnp.dot(src_oh, h, preferred_element_type=jnp.float32)           # gather src
        # comp='sub' in the reference source literally ADDS node + relation
        msg = jnp.dot(src_h + rel_e, wn_ref[l], preferred_element_type=jnp.float32)
        agg = jnp.dot(dst_oh, msg, preferred_element_type=jnp.float32)           # norm'd scatter-add
        node = agg + loop_msg
        h = jnp.where(node >= 0.0, node, node * RRELU_SLOPE)     # F.rrelu (eval)

    # GRU cell (gates laid out on 128-lane boundaries -> slices are free views)
    hprev = h_ref[...]
    gi = jnp.dot(h, wih_ref[...], preferred_element_type=jnp.float32) + bih_ref[...]
    gh = jnp.dot(hprev, whh_ref[...], preferred_element_type=jnp.float32) + bhh_ref[...]
    r = jax.nn.sigmoid(gi[:, 0:Dp] + gh[:, 0:Dp])
    z = jax.nn.sigmoid(gi[:, Dp:2 * Dp] + gh[:, Dp:2 * Dp])
    n = jnp.tanh(gi[:, 2 * Dp:3 * Dp] + r * gh[:, 2 * Dp:3 * Dp])
    h_ref[...] = (1.0 - z) * n + z * hprev


def regcn_encoder(src, dst, etype, ent_p, rel_p, wn_p, wl_p, wih_p, whh_p, bih_p, bhh_p):
    T, E, _ = src.shape
    Np, Dp = ent_p.shape
    Rp = rel_p.shape[0]
    L = wn_p.shape[0]
    return pl.pallas_call(
        _regcn_encoder_kernel,
        out_shape=jax.ShapeDtypeStruct((Np, Dp), jnp.float32),
        grid=(T,),
        in_specs=[
            pl.BlockSpec((1, E, 1), lambda t: (t, 0, 0)),        # src indices (per graph)
            pl.BlockSpec((1, 1, E), lambda t: (t, 0, 0)),        # dst indices
            pl.BlockSpec((1, E, 1), lambda t: (t, 0, 0)),        # edge types
            pl.BlockSpec((Np, Dp), lambda t: (0, 0)),            # ent embeddings (resident)
            pl.BlockSpec((Rp, Dp), lambda t: (0, 0)),            # rel embeddings
            pl.BlockSpec((L, Dp, Dp), lambda t: (0, 0, 0)),      # W_neighbor per layer
            pl.BlockSpec((L, Dp, Dp), lambda t: (0, 0, 0)),      # W_loop per layer
            pl.BlockSpec((Dp, 3 * Dp), lambda t: (0, 0)),        # GRU W_ih^T (gate-blocked)
            pl.BlockSpec((Dp, 3 * Dp), lambda t: (0, 0)),        # GRU W_hh^T
            pl.BlockSpec((1, 3 * Dp), lambda t: (0, 0)),         # GRU b_ih
            pl.BlockSpec((1, 3 * Dp), lambda t: (0, 0)),         # GRU b_hh
        ],
        out_specs=pl.BlockSpec((Np, Dp), lambda t: (0, 0)),
        compiler_params=pltpu.CompilerParams(dimension_semantics=("arbitrary",)),
    )(src, dst, etype, ent_p, rel_p, wn_p, wl_p, wih_p, whh_p, bih_p, bhh_p)


# ===================================================== ConvTransE decoder + CE loss
def _convtranse_kernel(sub_ref, relidx_ref, obj_ref, ent_rep_ref, rel_ref,
                       fcw_ref, fcb_ref, conv_wb_ref, scores_ref, loss_ref,
                       *, num_ent, d_actual):
    # TODO(synk): ConvTransE source is not part of the reference module; this follows the
    # standard RE-GCN ConvTransE forward_cl with eval-mode BatchNorm and no dropout.
    B = sub_ref.shape[0]
    Np, Dp = ent_rep_ref.shape
    Rp = rel_ref.shape[0]
    C = conv_wb_ref.shape[0]

    e1_all = jnp.tanh(ent_rep_ref[...])                                          # (Np, Dp)

    lane_n = jax.lax.broadcasted_iota(jnp.int32, (B, Np), 1)
    lane_r = jax.lax.broadcasted_iota(jnp.int32, (B, Rp), 1)
    sub_oh = (sub_ref[...] == lane_n).astype(jnp.float32)                        # (B, Np)
    rel_oh = (relidx_ref[...] == lane_r).astype(jnp.float32)                     # (B, Rp)
    obj_oh = (obj_ref[...] == lane_n).astype(jnp.float32)                        # (B, Np)

    e1 = jnp.dot(sub_oh, e1_all, preferred_element_type=jnp.float32) * BN_EVAL_SCALE   # bn0
    rl = jnp.dot(rel_oh, rel_ref[...], preferred_element_type=jnp.float32) * BN_EVAL_SCALE

    # 1-D conv (2 in-channels, kernel 3, zero padding) taps as XLU lane rolls.
    lane_d = jax.lax.broadcasted_iota(jnp.int32, (B, Dp), 1)
    zero = jnp.zeros((B, Dp), jnp.float32)

    def prev_tap(x):   # x[d-1], zero-padded at d == 0
        return jnp.where(lane_d >= 1, pltpu.roll(x, 1, 1), zero)

    def next_tap(x):   # x[d+1], zero-padded at d == d_actual - 1
        return jnp.where(lane_d < d_actual - 1, pltpu.roll(x, Dp - 1, 1), zero)

    taps = (prev_tap(e1), e1, next_tap(e1), prev_tap(rl), rl, next_tap(rl))

    conv_parts = []
    for c in range(C):                                     # unrolled channel loop (C small)
        conv_c = conv_wb_ref[c, 0] * taps[0]
        for j in range(1, 6):
            conv_c = conv_c + conv_wb_ref[c, j] * taps[j]
        conv_c = conv_c + conv_wb_ref[c, 6]                # conv bias
        conv_parts.append(jnp.maximum(conv_c * BN_EVAL_SCALE, 0.0))   # bn1 (eval) + relu
    conv_flat = jnp.concatenate(conv_parts, axis=1)        # (B, C*Dp), lane-dense

    # single fc matmul with K = C*Dp (padded rows of fcw are zero)
    fc = jnp.dot(conv_flat, fcw_ref[...], preferred_element_type=jnp.float32) + fcb_ref[...]
    query = jnp.maximum(fc * BN_EVAL_SCALE, 0.0)           # bn2 (eval) + relu

    scores = jax.lax.dot_general(query, e1_all, (((1,), (1,)), ((), ())),
                                 preferred_element_type=jnp.float32)             # (B, Np)
    scores_ref[...] = scores

    # CrossEntropyLoss: mask padded entity columns out of the logsumexp
    masked = jnp.where(lane_n < num_ent, scores, -1e30)
    m = jnp.max(masked, axis=-1, keepdims=True)
    lse = m + jnp.log(jnp.sum(jnp.exp(masked - m), axis=-1, keepdims=True))
    tgt = jnp.sum(scores * obj_oh, axis=-1, keepdims=True)
    loss_ref[...] = jnp.sum(lse - tgt, axis=0, keepdims=True)                    # (1, 1) sum


def convtranse_scores_and_loss(ent_rep_p, rel_p, triplets, dec, num_ent, h_dim):
    Np, Dp = ent_rep_p.shape
    B = triplets.shape[0]
    C = dec['conv_w'].shape[0]
    D = h_dim

    sub = triplets[:, 0].astype(jnp.int32).reshape(B, 1)
    rel_idx = triplets[:, 1].astype(jnp.int32).reshape(B, 1)
    obj = triplets[:, 2].astype(jnp.int32).reshape(B, 1)

    # fc: Linear(C*D, D), channel-major flatten, zero-padded to (C*Dp, Dp)
    fcw = jnp.zeros((C, Dp, Dp), jnp.float32).at[:, :D, :D].set(dec['fc_w']).reshape(C * Dp, Dp)
    fcb = jnp.zeros((1, Dp), jnp.float32).at[0, :D].set(dec['fc_b'])
    conv_wb = jnp.concatenate(
        [dec['conv_w'].reshape(C, 6), dec['conv_b'][:, None]], axis=1)            # (C, 7)

    vmem = pl.BlockSpec(memory_space=pltpu.MemorySpace.VMEM)
    smem = pl.BlockSpec(memory_space=pltpu.MemorySpace.SMEM)
    kernel = functools.partial(_convtranse_kernel, num_ent=num_ent, d_actual=D)
    scores_p, loss_sum = pl.pallas_call(
        kernel,
        out_shape=(jax.ShapeDtypeStruct((B, Np), jnp.float32),
                   jax.ShapeDtypeStruct((1, 1), jnp.float32)),
        in_specs=[vmem] * 7 + [smem],
        out_specs=(vmem, vmem),
    )(sub, rel_idx, obj, ent_rep_p, rel_p, fcw, fcb, conv_wb)
    return scores_p, loss_sum


# ===================================================== parameters / padding / forward glue
def init_params(key, conf):
    N, R, D = conf['num_ent'], conf['num_rel'], conf['h_dim']
    L = conf['n_layers']
    C = conf['conv_channels']
    ks = jax.random.split(key, 12)

    def xavier(k, shape, gain=1.0):
        fan_in, fan_out = shape[-2], shape[-1]
        std = gain * (2.0 / (fan_in + fan_out)) ** 0.5
        return std * jax.random.normal(k, shape, dtype=jnp.float32)

    return {
        'ent_embs': xavier(ks[0], (N, D)),                       # xavier_normal_
        'rel_embs': xavier(ks[1], (R, D)),
        'w_neighbor': xavier(ks[2], (L, D, D), gain=2 ** 0.5),   # per-layer weight_neighbor
        'w_loop': xavier(ks[3], (L, D, D), gain=2 ** 0.5),       # per-layer loop_weight
        'gru_w_ih': 0.1 * jax.random.normal(ks[4], (3 * D, D), dtype=jnp.float32),
        'gru_w_hh': 0.1 * jax.random.normal(ks[5], (3 * D, D), dtype=jnp.float32),
        'gru_b_ih': 0.1 * jax.random.normal(ks[6], (3 * D,), dtype=jnp.float32),
        'gru_b_hh': 0.1 * jax.random.normal(ks[7], (3 * D,), dtype=jnp.float32),
        'dec': {
            'conv_w': 0.1 * jax.random.normal(ks[8], (C, 2, 3), dtype=jnp.float32),
            'conv_b': 0.1 * jax.random.normal(ks[9], (C,), dtype=jnp.float32),
            # fc_w[c] corresponds to torch Linear(C*D, D).weight[:, c*D:(c+1)*D].T
            'fc_w': 0.1 * jax.random.normal(ks[10], (C, D, D), dtype=jnp.float32),
            'fc_b': 0.1 * jax.random.normal(ks[11], (D,), dtype=jnp.float32),
        },
    }


def _pad2(x, rows, cols):
    return jnp.zeros((rows, cols), jnp.float32).at[:x.shape[0], :x.shape[1]].set(x)


def _pad_gru_w(w, d, dp):      # torch (3D, D) -> (Dp, 3*Dp) with gates on 128-lane blocks
    out = jnp.zeros((dp, 3 * dp), jnp.float32)
    for g in range(3):
        out = out.at[:d, g * dp:g * dp + d].set(w[g * d:(g + 1) * d, :].T)
    return out


def _pad_gru_b(b, d, dp):      # (3D,) -> (1, 3*Dp)
    out = jnp.zeros((1, 3 * dp), jnp.float32)
    for g in range(3):
        out = out.at[0, g * dp:g * dp + d].set(b[g * d:(g + 1) * d])
    return out


def regcn_forward(params, g_list, triplets, conf):
    N, R, D, L = conf['num_ent'], conf['num_rel'], conf['h_dim'], conf['n_layers']
    T = len(g_list)
    E = g_list[0][0].shape[0]

    Np, Rp, Dp = _round_up(N, LANE), _round_up(R, LANE), _round_up(D, LANE)
    E_pad = _round_up(E, LANE)
    if E_pad > E:                 # padded edges route through padded node/relation rows
        if Np == N:
            Np += LANE
        if Rp == R:
            Rp += LANE

    # zero-pad parameters to lane-dense shapes
    ent_p = _pad2(params['ent_embs'], Np, Dp)
    rel_p = _pad2(params['rel_embs'], Rp, Dp)
    wn_p = jnp.zeros((L, Dp, Dp), jnp.float32).at[:, :D, :D].set(params['w_neighbor'])
    wl_p = jnp.zeros((L, Dp, Dp), jnp.float32).at[:, :D, :D].set(params['w_loop'])
    wih_p = _pad_gru_w(params['gru_w_ih'], D, Dp)
    whh_p = _pad_gru_w(params['gru_w_hh'], D, Dp)
    bih_p = _pad_gru_b(params['gru_b_ih'], D, Dp)
    bhh_p = _pad_gru_b(params['gru_b_hh'], D, Dp)

    # pack graph structure as int32 index arrays
    src_l, dst_l, typ_l = [], [], []
    for (src, dst, et) in g_list:
        src = src.astype(jnp.int32)
        dst = dst.astype(jnp.int32)
        et = et.astype(jnp.int32)
        if E_pad > E:
            pad = E_pad - E
            src = jnp.concatenate([src, jnp.full((pad,), N, jnp.int32)])
            dst = jnp.concatenate([dst, jnp.full((pad,), N, jnp.int32)])
            et = jnp.concatenate([et, jnp.full((pad,), R, jnp.int32)])
        src_l.append(src)
        dst_l.append(dst)
        typ_l.append(et)
    src_arr = jnp.stack(src_l)[:, :, None]      # (T, E_pad, 1)
    typ_arr = jnp.stack(typ_l)[:, :, None]      # (T, E_pad, 1)
    dst_arr = jnp.stack(dst_l)[:, None, :]      # (T, 1, E_pad)

    ent_rep_p = regcn_encoder(src_arr, dst_arr, typ_arr, ent_p, rel_p, wn_p, wl_p,
                              wih_p, whh_p, bih_p, bhh_p)

    scores_p, loss_sum = convtranse_scores_and_loss(ent_rep_p, rel_p, triplets,
                                                    params['dec'], N, D)
    scores = scores_p[:, :N]
    loss = loss_sum[0, 0] / triplets.shape[0]   # CrossEntropyLoss (mean)
    return loss, scores


if __name__ == "__main__":
    conf = dict(num_ent=64, num_rel=8, h_dim=32, n_bases=-1, n_layers=2,
                dropout=0.0, self_loop=True, skip_connect=False,
                input_dropout=0.0, hidden_dropout=0.0, feat_dropout=0.0,
                conv_channels=8)

    key = jax.random.PRNGKey(0)
    pkey, gkey, tkey = jax.random.split(key, 3)
    params = init_params(pkey, conf)

    T, E = 3, 128                                                # len(g_list), edges per graph
    g_list = []
    gks = jax.random.split(gkey, 3 * T)
    for t in range(T):
        src = jax.random.randint(gks[3 * t + 0], (E,), 0, conf['num_ent'])
        dst = jax.random.randint(gks[3 * t + 1], (E,), 0, conf['num_ent'])
        etype = jax.random.randint(gks[3 * t + 2], (E,), 0, conf['num_rel'])
        g_list.append((src, dst, etype))

    B = 16
    tks = jax.random.split(tkey, 3)
    triplets = jnp.stack([
        jax.random.randint(tks[0], (B,), 0, conf['num_ent']),
        jax.random.randint(tks[1], (B,), 0, conf['num_rel']),
        jax.random.randint(tks[2], (B,), 0, conf['num_ent']),
    ], axis=1)

    loss, scores = regcn_forward(params, g_list, triplets, conf)
    jax.block_until_ready((loss, scores))
    assert scores.shape == (B, conf['num_ent'])
    assert bool(jnp.isfinite(loss))
    print("KERNEL_OK")
</pallas_src>

<mosaic_0001>
module attributes {stable_mosaic.version = 11 : i64} {
  func.func @_regcn_encoder_kernel(%arg0: i32, %arg1: memref<1x128x1xi32, #tpu.memory_space<vmem>>, %arg2: memref<1x1x128xi32, #tpu.memory_space<vmem>>, %arg3: memref<1x128x1xi32, #tpu.memory_space<vmem>>, %arg4: memref<128x128xf32, #tpu.memory_space<vmem>>, %arg5: memref<128x128xf32, #tpu.memory_space<vmem>>, %arg6: memref<2x128x128xf32, #tpu.memory_space<vmem>>, %arg7: memref<2x128x128xf32, #tpu.memory_space<vmem>>, %arg8: memref<128x384xf32, #tpu.memory_space<vmem>>, %arg9: memref<128x384xf32, #tpu.memory_space<vmem>>, %arg10: memref<1x384xf32, #tpu.memory_space<vmem>>, %arg11: memref<1x384xf32, #tpu.memory_space<vmem>>, %arg12: memref<128x128xf32, #tpu.memory_space<vmem>>) attributes {dimension_semantics = [#tpu.dimension_semantics<arbitrary>], iteration_bounds = array<i64: 3>, scalar_prefetch = 0 : i64, scratch_operands = 0 : i64, tpu.core_type = #tpu.core_type<tc>, window_params = [{transform_indices = @transform_0, window_bounds = array<i64: 1, 128, 1>}, {transform_indices = @transform_1, window_bounds = array<i64: 1, 1, 128>}, {transform_indices = @transform_2, window_bounds = array<i64: 1, 128, 1>}, {pipeline_mode = #tpu.pipeline_mode<synchronous>, transform_indices = @transform_3, window_bounds = array<i64: 128, 128>}, {pipeline_mode = #tpu.pipeline_mode<synchronous>, transform_indices = @transform_4, window_bounds = array<i64: 128, 128>}, {pipeline_mode = #tpu.pipeline_mode<synchronous>, transform_indices = @transform_5, window_bounds = array<i64: 2, 128, 128>}, {pipeline_mode = #tpu.pipeline_mode<synchronous>, transform_indices = @transform_6, window_bounds = array<i64: 2, 128, 128>}, {pipeline_mode = #tpu.pipeline_mode<synchronous>, transform_indices = @transform_7, window_bounds = array<i64: 128, 384>}, {pipeline_mode = #tpu.pipeline_mode<synchronous>, transform_indices = @transform_8, window_bounds = array<i64: 128, 384>}, {pipeline_mode = #tpu.pipeline_mode<synchronous>, transform_indices = @transform_9, window_bounds = array<i64: 1, 384>}, {pipeline_mode = #tpu.pipeline_mode<synchronous>, transform_indices = @transform_10, window_bounds = array<i64: 1, 384>}, {pipeline_mode = #tpu.pipeline_mode<synchronous>, transform_indices = @transform_11, window_bounds = array<i64: 128, 128>}]} {
    %c0_i32 = arith.constant 0 : i32
    %0 = arith.cmpi eq, %arg0, %c0_i32 : i32
    %1 = arith.extui %0 : i1 to i32
    %c0_i32_0 = arith.constant 0 : i32
    %2 = arith.cmpi ne, %1, %c0_i32_0 : i32
    scf.if %2 {
      %cst_56 = arith.constant 0.000000e+00 : f32
      %103 = vector.broadcast %cst_56 : f32 to vector<128x128xf32>
      %c0_57 = arith.constant 0 : index
      %c0_58 = arith.constant 0 : index
      %104 = vector.load %arg12[%c0_57, %c0_58] : memref<128x128xf32, #tpu.memory_space<vmem>>, vector<128x128xf32>
      tpu.vector_store %arg12[%c0_57, %c0_58], %103 {strides = array<i32>} : memref<128x128xf32, #tpu.memory_space<vmem>>, vector<128x128xf32>,
    } else {
    }
    %c0 = arith.constant 0 : index
    %c0_1 = arith.constant 0 : index
    %c0_2 = arith.constant 0 : index
    %3 = vector.load %arg1[%c0, %c0_1, %c0_2] : memref<1x128x1xi32, #tpu.memory_space<vmem>>, vector<1x128x1xi32>
    %4 = vector.shape_cast %3 : vector<1x128x1xi32> to vector<128x1xi32>
    %c0_3 = arith.constant 0 : index
    %c0_4 = arith.constant 0 : index
    %c0_5 = arith.constant 0 : index
    %5 = vector.load %arg3[%c0_3, %c0_4, %c0_5] : memref<1x128x1xi32, #tpu.memory_space<vmem>>, vector<1x128x1xi32>
    %6 = vector.shape_cast %5 : vector<1x128x1xi32> to vector<128x1xi32>
    %c0_6 = arith.constant 0 : index
    %c0_7 = arith.constant 0 : index
    %c0_8 = arith.constant 0 : index
    %7 = vector.load %arg2[%c0_6, %c0_7, %c0_8] : memref<1x1x128xi32, #tpu.memory_space<vmem>>, vector<1x1x128xi32>
    %8 = vector.shape_cast %7 : vector<1x1x128xi32> to vector<1x128xi32>
    %9 = tpu.iota {dimensions = array<i32: 1>} : vector<128x128xi32>
    %10 = vector.broadcast %4 : vector<128x1xi32> to vector<128x128xi32>
    %11 = arith.cmpi eq, %10, %9 : vector<128x128xi32>
    %12 = arith.extui %11 : vector<128x128xi1> to vector<128x128xi32>
    %13 = arith.sitofp %12 : vector<128x128xi32> to vector<128x128xf32>
    %14 = tpu.iota {dimensions = array<i32: 1>} : vector<128x128xi32>
    %15 = vector.broadcast %6 : vector<128x1xi32> to vector<128x128xi32>
    %16 = arith.cmpi eq, %15, %14 : vector<128x128xi32>
    %17 = arith.extui %16 : vector<128x128xi1> to vector<128x128xi32>
    %18 = arith.sitofp %17 : vector<128x128xi32> to vector<128x128xf32>
    %19 = tpu.iota {dimensions = array<i32: 0>} : vector<128x128xi32>
    %20 = vector.broadcast %8 : vector<1x128xi32> to vector<128x128xi32>
    %21 = arith.cmpi eq, %19, %20 : vector<128x128xi32>
    %22 = arith.extui %21 : vector<128x128xi1> to vector<128x128xi32>
    %23 = arith.sitofp %22 : vector<128x128xi32> to vector<128x128xf32>
    %cst = arith.constant dense<0.000000e+00> : vector<128xf32>
    %24 = vector.multi_reduction <add>, %23, %cst [1] : vector<128x128xf32> to vector<128xf32>
    %25 = vector.shape_cast %24 : vector<128xf32> to vector<128x1xf32>
    %cst_9 = arith.constant 1.000000e+00 : f32
    %26 = vector.broadcast %cst_9 : f32 to vector<128x1xf32>
    %27 = arith.maximumf %25, %26 : vector<128x1xf32>
    %cst_10 = arith.constant 1.000000e+00 : f32
    %28 = vector.broadcast %cst_10 : f32 to vector<128x1xf32>
    %29 = arith.divf %28, %27 : vector<128x1xf32>
    %30 = vector.broadcast %29 : vector<128x1xf32> to vector<128x128xf32>
    %31 = arith.mulf %23, %30 : vector<128x128xf32>
    %c0_11 = arith.constant 0 : index
    %c0_12 = arith.constant 0 : index
    %32 = vector.load %arg5[%c0_11, %c0_12] : memref<128x128xf32, #tpu.memory_space<vmem>>, vector<128x128xf32>
    %cst_13 = arith.constant dense<0.000000e+00> : vector<128x128xf32>
    %33 = tpu.matmul %18, %32, %cst_13 {dimension_numbers = #tpu.dot_dimension_numbers<[1], [0], [0], [1], [0, 0, 1, 1], [], []>} : vector<128x128xf32>, vector<128x128xf32>, vector<128x128xf32> -> vector<128x128xf32>
    %c0_14 = arith.constant 0 : index
    %c0_15 = arith.constant 0 : index
    %34 = vector.load %arg4[%c0_14, %c0_15] : memref<128x128xf32, #tpu.memory_space<vmem>>, vector<128x128xf32>
    %c0_16 = arith.constant 0 : index
    %c0_17 = arith.constant 0 : index
    %c0_18 = arith.constant 0 : index
    %35 = vector.load %arg7[%c0_16, %c0_17, %c0_18] : memref<2x128x128xf32, #tpu.memory_space<vmem>>, vector<1x128x128xf32>
    %36 = vector.shape_cast %35 : vector<1x128x128xf32> to vector<128x128xf32>
    %cst_19 = arith.constant dense<0.000000e+00> : vector<128x128xf32>
    %37 = tpu.matmul %34, %36, %cst_19 {dimension_numbers = #tpu.dot_dimension_numbers<[1], [0], [0], [1], [0, 0, 1, 1], [], []>} : vector<128x128xf32>, vector<128x128xf32>, vector<128x128xf32> -> vector<128x128xf32>
    %cst_20 = arith.constant dense<0.000000e+00> : vector<128x128xf32>
    %38 = tpu.matmul %13, %34, %cst_20 {dimension_numbers = #tpu.dot_dimension_numbers<[1], [0], [0], [1], [0, 0, 1, 1], [], []>} : vector<128x128xf32>, vector<128x128xf32>, vector<128x128xf32> -> vector<128x128xf32>
    %39 = arith.addf %38, %33 : vector<128x128xf32>
    %c0_21 = arith.constant 0 : index
    %c0_22 = arith.constant 0 : index
    %c0_23 = arith.constant 0 : index
    %40 = vector.load %arg6[%c0_21, %c0_22, %c0_23] : memref<2x128x128xf32, #tpu.memory_space<vmem>>, vector<1x128x128xf32>
    %41 = vector.shape_cast %40 : vector<1x128x128xf32> to vector<128x128xf32>
    %cst_24 = arith.constant dense<0.000000e+00> : vector<128x128xf32>
    %42 = tpu.matmul %39, %41, %cst_24 {dimension_numbers = #tpu.dot_dimension_numbers<[1], [0], [0], [1], [0, 0, 1, 1], [], []>} : vector<128x128xf32>, vector<128x128xf32>, vector<128x128xf32> -> vector<128x128xf32>
    %cst_25 = arith.constant dense<0.000000e+00> : vector<128x128xf32>
    %43 = tpu.matmul %31, %42, %cst_25 {dimension_numbers = #tpu.dot_dimension_numbers<[1], [0], [0], [1], [0, 0, 1, 1], [], []>} : vector<128x128xf32>, vector<128x128xf32>, vector<128x128xf32> -> vector<128x128xf32>
    %44 = arith.addf %43, %37 : vector<128x128xf32>
    %cst_26 = arith.constant 0.000000e+00 : f32
    %45 = vector.broadcast %cst_26 : f32 to vector<128x128xf32>
    %46 = arith.cmpf oge, %44, %45 : vector<128x128xf32>
    %cst_27 = arith.constant 0.229166672 : f32
    %47 = vector.broadcast %cst_27 : f32 to vector<128x128xf32>
    %48 = arith.mulf %44, %47 : vector<128x128xf32>
    %49 = arith.select %46, %44, %48 : vector<128x128xi1>, vector<128x128xf32>
    %c1 = arith.constant 1 : index
    %c0_28 = arith.constant 0 : index
    %c0_29 = arith.constant 0 : index
    %50 = vector.load %arg7[%c1, %c0_28, %c0_29] : memref<2x128x128xf32, #tpu.memory_space<vmem>>, vector<1x128x128xf32>
    %51 = vector.shape_cast %50 : vector<1x128x128xf32> to vector<128x128xf32>
    %cst_30 = arith.constant dense<0.000000e+00> : vector<128x128xf32>
    %52 = tpu.matmul %49, %51, %cst_30 {dimension_numbers = #tpu.dot_dimension_numbers<[1], [0], [0], [1], [0, 0, 1, 1], [], []>} : vector<128x128xf32>, vector<128x128xf32>, vector<128x128xf32> -> vector<128x128xf32>
    %cst_31 = arith.constant dense<0.000000e+00> : vector<128x128xf32>
    %53 = tpu.matmul %13, %49, %cst_31 {dimension_numbers = #tpu.dot_dimension_numbers<[1], [0], [0], [1], [0, 0, 1, 1], [], []>} : vector<128x128xf32>, vector<128x128xf32>, vector<128x128xf32> -> vector<128x128xf32>
    %54 = arith.addf %53, %33 : vector<128x128xf32>
    %c1_32 = arith.constant 1 : index
    %c0_33 = arith.constant 0 : index
    %c0_34 = arith.constant 0 : index
    %55 = vector.load %arg6[%c1_32, %c0_33, %c0_34] : memref<2x128x128xf32, #tpu.memory_space<vmem>>, vector<1x128x128xf32>
    %56 = vector.shape_cast %55 : vector<1x128x128xf32> to vector<128x128xf32>
    %cst_35 = arith.constant dense<0.000000e+00> : vector<128x128xf32>
    %57 = tpu.matmul %54, %56, %cst_35 {dimension_numbers = #tpu.dot_dimension_numbers<[1], [0], [0], [1], [0, 0, 1, 1], [], []>} : vector<128x128xf32>, vector<128x128xf32>, vector<128x128xf32> -> vector<128x128xf32>
    %cst_36 = arith.constant dense<0.000000e+00> : vector<128x128xf32>
    %58 = tpu.matmul %31, %57, %cst_36 {dimension_numbers = #tpu.dot_dimension_numbers<[1], [0], [0], [1], [0, 0, 1, 1], [], []>} : vector<128x128xf32>, vector<128x128xf32>, vector<128x128xf32> -> vector<128x128xf32>
    %59 = arith.addf %58, %52 : vector<128x128xf32>
    %cst_37 = arith.constant 0.000000e+00 : f32
    %60 = vector.broadcast %cst_37 : f32 to vector<128x128xf32>
    %61 = arith.cmpf oge, %59, %60 : vector<128x128xf32>
    %cst_38 = arith.constant 0.229166672 : f32
    %62 = vector.broadcast %cst_38 : f32 to vector<128x128xf32>
    %63 = arith.mulf %59, %62 : vector<128x128xf32>
    %64 = arith.select %61, %59, %63 : vector<128x128xi1>, vector<128x128xf32>
    %c0_39 = arith.constant 0 : index
    %c0_40 = arith.constant 0 : index
    %65 = vector.load %arg12[%c0_39, %c0_40] : memref<128x128xf32, #tpu.memory_space<vmem>>, vector<128x128xf32>
    %c0_41 = arith.constant 0 : index
    %c0_42 = arith.constant 0 : index
    %66 = vector.load %arg8[%c0_41, %c0_42] : memref<128x384xf32, #tpu.memory_space<vmem>>, vector<128x384xf32>
    %cst_43 = arith.constant dense<0.000000e+00> : vector<128x384xf32>
    %67 = tpu.matmul %64, %66, %cst_43 {dimension_numbers = #tpu.dot_dimension_numbers<[1], [0], [0], [1], [0, 0, 1, 1], [], []>} : vector<128x128xf32>, vector<128x384xf32>, vector<128x384xf32> -> vector<128x384xf32>
    %c0_44 = arith.constant 0 : index
    %c0_45 = arith.constant 0 : index
    %68 = vector.load %arg10[%c0_44, %c0_45] : memref<1x384xf32, #tpu.memory_space<vmem>>, vector<1x384xf32>
    %69 = vector.broadcast %68 : vector<1x384xf32> to vector<128x384xf32>
    %70 = arith.addf %67, %69 : vector<128x384xf32>
    %c0_46 = arith.constant 0 : index
    %c0_47 = arith.constant 0 : index
    %71 = vector.load %arg9[%c0_46, %c0_47] : memref<128x384xf32, #tpu.memory_space<vmem>>, vector<128x384xf32>
    %cst_48 = arith.constant dense<0.000000e+00> : vector<128x384xf32>
    %72 = tpu.matmul %65, %71, %cst_48 {dimension_numbers = #tpu.dot_dimension_numbers<[1], [0], [0], [1], [0, 0, 1, 1], [], []>} : vector<128x128xf32>, vector<128x384xf32>, vector<128x384xf32> -> vector<128x384xf32>
    %c0_49 = arith.constant 0 : index
    %c0_50 = arith.constant 0 : index
    %73 = vector.load %arg11[%c0_49, %c0_50] : memref<1x384xf32, #tpu.memory_space<vmem>>, vector<1x384xf32>
    %74 = vector.broadcast %73 : vector<1x384xf32> to vector<128x384xf32>
    %75 = arith.addf %72, %74 : vector<128x384xf32>
    %76 = vector.extract_strided_slice %70 {offsets = [0, 0], sizes = [128, 128], strides = [1, 1]} : vector<128x384xf32> to vector<128x128xf32>
    %77 = vector.extract_strided_slice %75 {offsets = [0, 0], sizes = [128, 128], strides = [1, 1]} : vector<128x384xf32> to vector<128x128xf32>
    %78 = arith.addf %76, %77 : vector<128x128xf32>
    %79 = arith.negf %78 : vector<128x128xf32>
    %80 = math.exp %79 : vector<128x128xf32>
    %cst_51 = arith.constant 1.000000e+00 : f32
    %81 = vector.broadcast %cst_51 : f32 to vector<128x128xf32>
    %82 = arith.addf %81, %80 : vector<128x128xf32>
    %83 = arith.divf %81, %82 : vector<128x128xf32>
    %84 = vector.extract_strided_slice %70 {offsets = [0, 128], sizes = [128, 128], strides = [1, 1]} : vector<128x384xf32> to vector<128x128xf32>
    %85 = vector.extract_strided_slice %75 {offsets = [0, 128], sizes = [128, 128], strides = [1, 1]} : vector<128x384xf32> to vector<128x128xf32>
    %86 = arith.addf %84, %85 : vector<128x128xf32>
    %87 = arith.negf %86 : vector<128x128xf32>
    %88 = math.exp %87 : vector<128x128xf32>
    %cst_52 = arith.constant 1.000000e+00 : f32
    %89 = vector.broadcast %cst_52 : f32 to vector<128x128xf32>
    %90 = arith.addf %89, %88 : vector<128x128xf32>
    %91 = arith.divf %89, %90 : vector<128x128xf32>
    %92 = vector.extract_strided_slice %70 {offsets = [0, 256], sizes = [128, 128], strides = [1, 1]} : vector<128x384xf32> to vector<128x128xf32>
    %93 = vector.extract_strided_slice %75 {offsets = [0, 256], sizes = [128, 128], strides = [1, 1]} : vector<128x384xf32> to vector<128x128xf32>
    %94 = arith.mulf %83, %93 : vector<128x128xf32>
    %95 = arith.addf %92, %94 : vector<128x128xf32>
    %96 = math.tanh %95 : vector<128x128xf32>
    %cst_53 = arith.constant 1.000000e+00 : f32
    %97 = vector.broadcast %cst_53 : f32 to vector<128x128xf32>
    %98 = arith.subf %97, %91 : vector<128x128xf32>
    %99 = arith.mulf %98, %96 : vector<128x128xf32>
    %100 = arith.mulf %91, %65 : vector<128x128xf32>
    %101 = arith.addf %99, %100 : vector<128x128xf32>
    %c0_54 = arith.constant 0 : index
    %c0_55 = arith.constant 0 : index
    %102 = vector.load %arg12[%c0_54, %c0_55] : memref<128x128xf32, #tpu.memory_space<vmem>>, vector<128x128xf32>
    tpu.vector_store %arg12[%c0_54, %c0_55], %101 {strides = array<i32>} : memref<128x128xf32, #tpu.memory_space<vmem>>, vector<128x128xf32>,
    return
  }
  func.func @transform_0(%arg0: i32) -> (i32, i32, i32) {
    %c0_i32 = arith.constant 0 : i32
    %c0_i32_0 = arith.constant 0 : i32
    %c0_i32_1 = arith.constant 0 : i32
    return %arg0, %c0_i32, %c0_i32_0 : i32, i32, i32
  }
  func.func @transform_1(%arg0: i32) -> (i32, i32, i32) {
    %c0_i32 = arith.constant 0 : i32
    %c0_i32_0 = arith.constant 0 : i32
    %c0_i32_1 = arith.constant 0 : i32
    return %arg0, %c0_i32, %c0_i32_0 : i32, i32, i32
  }
  func.func @transform_2(%arg0: i32) -> (i32, i32, i32) {
    %c0_i32 = arith.constant 0 : i32
    %c0_i32_0 = arith.constant 0 : i32
    %c0_i32_1 = arith.constant 0 : i32
    return %arg0, %c0_i32, %c0_i32_0 : i32, i32, i32
  }
  func.func @transform_3(%arg0: i32) -> (i32, i32) {
    %c0_i32 = arith.constant 0 : i32
    %c0_i32_0 = arith.constant 0 : i32
    %c0_i32_1 = arith.constant 0 : i32
    return %c0_i32, %c0_i32_0 : i32, i32
  }
  func.func @transform_4(%arg0: i32) -> (i32, i32) {
    %c0_i32 = arith.constant 0 : i32
    %c0_i32_0 = arith.constant 0 : i32
    %c0_i32_1 = arith.constant 0 : i32
    return %c0_i32, %c0_i32_0 : i32, i32
  }
  func.func @transform_5(%arg0: i32) -> (i32, i32, i32) {
    %c0_i32 = arith.constant 0 : i32
    %c0_i32_0 = arith.constant 0 : i32
    %c0_i32_1 = arith.constant 0 : i32
    %c0_i32_2 = arith.constant 0 : i32
    return %c0_i32, %c0_i32_0, %c0_i32_1 : i32, i32, i32
  }
  func.func @transform_6(%arg0: i32) -> (i32, i32, i32) {
    %c0_i32 = arith.constant 0 : i32
    %c0_i32_0 = arith.constant 0 : i32
    %c0_i32_1 = arith.constant 0 : i32
    %c0_i32_2 = arith.constant 0 : i32
    return %c0_i32, %c0_i32_0, %c0_i32_1 : i32, i32, i32
  }
  func.func @transform_7(%arg0: i32) -> (i32, i32) {
    %c0_i32 = arith.constant 0 : i32
    %c0_i32_0 = arith.constant 0 : i32
    %c0_i32_1 = arith.constant 0 : i32
    return %c0_i32, %c0_i32_0 : i32, i32
  }
  func.func @transform_8(%arg0: i32) -> (i32, i32) {
    %c0_i32 = arith.constant 0 : i32
    %c0_i32_0 = arith.constant 0 : i32
    %c0_i32_1 = arith.constant 0 : i32
    return %c0_i32, %c0_i32_0 : i32, i32
  }
  func.func @transform_9(%arg0: i32) -> (i32, i32) {
    %c0_i32 = arith.constant 0 : i32
    %c0_i32_0 = arith.constant 0 : i32
    %c0_i32_1 = arith.constant 0 : i32
    return %c0_i32, %c0_i32_0 : i32, i32
  }
  func.func @transform_10(%arg0: i32) -> (i32, i32) {
    %c0_i32 = arith.constant 0 : i32
    %c0_i32_0 = arith.constant 0 : i32
    %c0_i32_1 = arith.constant 0 : i32
    return %c0_i32, %c0_i32_0 : i32, i32
  }
  func.func @transform_11(%arg0: i32) -> (i32, i32) {
    %c0_i32 = arith.constant 0 : i32
    %c0_i32_0 = arith.constant 0 : i32
    %c0_i32_1 = arith.constant 0 : i32
    return %c0_i32, %c0_i32_0 : i32, i32
  }
}

</mosaic_0001>

<bundles_post_ra>
// kernel: tpu_custom_call.1
= control target key start
LH: loop header
LB: loop body
LE: loop exit
PB: predicated region body
PF: predicated region fallthrough
CT: control target
= control target key end

     0   :  { %16 = vsyncpa [#allocation3], 0  ;;  %s7164_s0 = inlined_call_operand.vmem [shape: s32[3,128,1], index: 0, kind: input, shape index: {}]   ;;  %s7165_s1 = inlined_call_operand.vmem [shape: s32[3,1,128], index: 1, kind: input, shape index: {}]   ;;  %s7166_s2 = inlined_call_operand.vmem [shape: s32[3,128,1], index: 2, kind: input, shape index: {}]   ;;  %s7167_s3 = inlined_call_operand.hbm [shape: f32[128,128], index: 3, kind: input, shape index: {}]   ;;  %s7168_s4 = inlined_call_operand.hbm [shape: f32[128,128], index: 4, kind: input, shape index: {}]   ;;  %s7169_s5 = inlined_call_operand.hbm [shape: f32[2,128,128], index: 5, kind: input, shape index: {}]   ;;  %s7170_s6 = inlined_call_operand.hbm [shape: f32[2,128,128], index: 6, kind: input, shape index: {}]   ;;  %s7171_s7 = inlined_call_operand.vmem [shape: f32[128,384], index: 7, kind: input, shape index: {}]   ;;  %s7172_s8 = inlined_call_operand.vmem [shape: f32[128,384], index: 8, kind: input, shape index: {}]   ;;  %s7173_s9 = inlined_call_operand.vmem [shape: f32[1,384], index: 9, kind: input, shape index: {}]   ;;  %s7174_s10 = inlined_call_operand.vmem [shape: f32[1,384], index: 10, kind: input, shape index: {}]   ;;  %s7175_s11 = inlined_call_operand.hbm [shape: f32[128,128], index: 11, kind: output, shape index: {}]  }
   0x1   :  { %17 = vsyncpa [#allocation6], 0 }
   0x2   :  { %18 = vsyncpa [#allocation9], 0 }
   0x3   :  { %19 = vsyncpa [#allocation4], 0  ;;  %s5754_s17 = smov 0  }
   0x4 LB: > { %7202 = sst [smem:[#allocation15_spill]] %s5679_s17  ;;  %s5760_s18 = sadd.s32 4294967295, %s5679_s17   ;;  %s5679_s17 = sphi %s5754_s17, %s25_s17  }
   0x5   : > { %p3598_p0 = scmp.ge.s32.totalorder %s5679_s17, 1  ;;  %p297_p1 = scmp.lt.s32.totalorder %s5679_s17, 4 }
   0x6   : > { %p7177_p3 = scmp.eq.s32.totalorder %s5760_s18, 0  ;;  %s5681_s20 = smov [#allocation5]  }
   0x7   : > { %p5766_p4 = pnand %p3598_p0, %p297_p1  ;;  %s322_s21 = sshll.u32 %s5681_s20, 4  ;;  %s5770_s21 = int_to_ptr.vmem [resolvable:$true] %s322_s21 }
   0x8   : > { %s5682_s22 = smov [#allocation2]   ;;  %s5683_s25 = smov [#allocation7]  }
   0x9   : > { %s7203_s19 = scalar_select %p5766_p4, 1, 0 }
   0xa   : > { %p5281_p5 = pneg %p5766_p4  ;;  %s309_s23 = sshll.u32 %s5682_s22, 4  ;;  %s5774_s23 = int_to_ptr.vmem [resolvable:$true] %s309_s23 }
   0xb   : > { %s335_s26 = sshll.u32 %s5683_s25, 4  ;;  %s5684_s27 = smov [#allocation8]   ;;  %s5782_s26 = int_to_ptr.vmem [resolvable:$true] %s335_s26 }
   0xc   : > { %p5778_p6 = pnand %p7177_p3, %p5281_p5  ;;  %s5784_s28 = sshll.u32 %s5684_s27, 4  ;;  %s349_s28 = int_to_ptr.vmem [resolvable:$true] %s5784_s28 }
   0xd   : > { %s5519_s12 = scalar_lea.hbm %s7168_s4, 2048 }
   0xe   : > { %p5520_p7 = scmp.ne.s32.totalorder %s7168_s4, %s5519_s12  ;;  %p5794_p8 = pneg %p5778_p6 }
   0xf   : > { %p5526_p11 = scmp.lt.u32.totalorder %s5519_s12, %s7168_s4 }
  0x10   : > { %p5522_p9 = pnand %p5794_p8, %p5520_p7 }
  0x12   : > { %p5523_p10 = pneg %p5522_p9 }
  0x14   : > { %p5528_p12 = pnand %p5526_p11, %p5523_p10 }
  0x16   : > { %5531 = shalt.err (!%p5528_p12)
}
  0x17   : > { %s5532_s22 = scalar_lea.vmem %s5770_s21, 2048  ;;  %p5540_p5 = scmp.lt.s32.totalorder %s5770_s21, %s5770_s21 }
  0x18   : > { %p5533_p13 = scmp.ne.s32.totalorder %s5770_s21, %s5532_s22  ;;  %p5541_p2 = scmp.lt.s32.totalorder %s5532_s22, %s5532_s22 }
  0x1a   : > { %p5535_p0 = pnand %p5533_p13, %p5794_p8  ;;  %p5542_p7 = por %p5541_p2, %p5540_p5 }
  0x1c   : > { %p5536_p1 = pneg %p5535_p0 }
  0x1e   : > { %p5543_p9 = pnand %p5542_p7, %p5536_p1 }
  0x20   : > { %5546 = shalt.err (!%p5543_p9)
}
  0x21   : > { %s5685_s25 = smov 128   ;;  %s5686_s27 = smov 8  }
  0x22   : > { %5287 = dma.hbm_to_vmem [thread:$0]  (!%p5778_p6), %s7168_s4, 2048, %s5770_s21, [#allocation6], %s5685_s25, %s5685_s25, %s5686_s27  }
  0x23   : > { %s5547_s14 = scalar_lea.hbm %s7167_s3, 2048 }
  0x24   : > { %p5548_p2 = scmp.ne.s32.totalorder %s7167_s3, %s5547_s14  ;;  %p5554_p12 = scmp.lt.u32.totalorder %s5547_s14, %s7167_s3 }
  0x26   : > { %p5550_p10 = pnand %p5548_p2, %p5794_p8 }
  0x28   : > { %p5551_p11 = pneg %p5550_p10 }
  0x2a   : > { %p5556_p13 = pnand %p5554_p12, %p5551_p11 }
  0x2c   : > { %5559 = shalt.err (!%p5556_p13)
}
  0x2d   : > { %s5560_s21 = scalar_lea.vmem %s5774_s23, 2048  ;;  %p5568_p7 = scmp.lt.s32.totalorder %s5774_s23, %s5774_s23 }
  0x2e   : > { %p5561_p0 = scmp.ne.s32.totalorder %s5774_s23, %s5560_s21  ;;  %p5569_p9 = scmp.lt.s32.totalorder %s5560_s21, %s5560_s21 }
  0x30   : > { %p5563_p1 = pnand %p5561_p0, %p5794_p8  ;;  %p5570_p2 = por %p5569_p9, %p5568_p7 }
  0x32   : > { %p5564_p5 = pneg %p5563_p1 }
  0x34   : > { %p5571_p10 = pnand %p5570_p2, %p5564_p5 }
  0x36   : > { %5574 = shalt.err (!%p5571_p10)
}
  0x37   : > { %5284 = dma.hbm_to_vmem [thread:$0]  (!%p5778_p6), %s7167_s3, 2048, %s5774_s23, [#allocation3], %s5685_s25, %s5685_s25, %s5686_s27  }
  0x38   : > { %s5575_s13 = scalar_lea.hbm %s7169_s5, 4096 }
  0x39   : > { %p5576_p11 = scmp.ne.s32.totalorder %s7169_s5, %s5575_s13  ;;  %p5582_p0 = scmp.lt.u32.totalorder %s5575_s13, %s7169_s5 }
  0x3b   : > { %p5578_p12 = pnand %p5576_p11, %p5794_p8 }
  0x3d   : > { %p5579_p13 = pneg %p5578_p12 }
  0x3f   : > { %p5584_p1 = pnand %p5582_p0, %p5579_p13 }
  0x41   : > { %5587 = shalt.err (!%p5584_p1)
}
  0x42   : > { %s5588_s23 = scalar_lea.vmem %s5782_s26, 4096  ;;  %p5596_p2 = scmp.lt.s32.totalorder %s5782_s26, %s5782_s26 }
  0x43   : > { %p5589_p5 = scmp.ne.s32.totalorder %s5782_s26, %s5588_s23  ;;  %p5597_p10 = scmp.lt.s32.totalorder %s5588_s23, %s5588_s23 }
  0x45   : > { %p5591_p7 = pnand %p5589_p5, %p5794_p8  ;;  %p5598_p11 = por %p5597_p10, %p5596_p2 }
  0x47   : > { %p5592_p9 = pneg %p5591_p7 }
  0x49   : > { %p5599_p12 = pnand %p5598_p11, %p5592_p9 }
  0x4b   : > { %5602 = shalt.err (!%p5599_p12)
}
  0x4c   : > { %5290 = dma.hbm_to_vmem [thread:$0]  (!%p5778_p6), %s7169_s5, 4096, %s5782_s26, [#allocation6], %s5685_s25, %s5685_s25, %s5686_s27  }
  0x4d   : > { %s5603_s12 = scalar_lea.hbm %s7170_s6, 4096 }
  0x4e   : > { %p5604_p13 = scmp.ne.s32.totalorder %s7170_s6, %s5603_s12  ;;  %p5610_p5 = scmp.lt.u32.totalorder %s5603_s12, %s7170_s6 }
  0x50   : > { %p5606_p0 = pnand %p5604_p13, %p5794_p8 }
  0x52   : > { %p5607_p1 = pneg %p5606_p0 }
  0x54   : > { %p5612_p7 = pnand %p5610_p5, %p5607_p1 }
  0x56   : > { %5615 = shalt.err (!%p5612_p7)
}
  0x57   : > { %s5616_s22 = scalar_lea.vmem %s349_s28, 4096  ;;  %p5624_p11 = scmp.lt.s32.totalorder %s349_s28, %s349_s28 }
  0x58   : > { %p5617_p9 = scmp.ne.s32.totalorder %s349_s28, %s5616_s22  ;;  %p5625_p12 = scmp.lt.s32.totalorder %s5616_s22, %s5616_s22 }
  0x5a   : > { %p5619_p2 = pnand %p5617_p9, %p5794_p8  ;;  %p5626_p3 = por %p5625_p12, %p5624_p11 }
  0x5c   : > { %p5620_p10 = pneg %p5619_p2 }
  0x5e   : > { %p5627_p4 = pnand %p5626_p3, %p5620_p10 }
  0x60   : > { %5630 = shalt.err (!%p5627_p4)
}
  0x61   : > { %5293 = dma.hbm_to_vmem [thread:$0]  (!%p5778_p6), %s7170_s6, 4096, %s349_s28, [#allocation9], %s5685_s25, %s5685_s25, %s5686_s27  }
  0x62   : > { %p7206_p13 = scmp.ne.s32.totalorder %s7203_s19, 0 }
  0x64   : > { %398 = sbr.rel (%p7206_p13) target bundleno = 2099 (0x833), region = 64 }
  0x6b   : > { %p7207_p8 = scmp.eq.s32.totalorder %s5760_s18, 0 }
  0x6d   : > { %5662 = dma.done.wait (%p7207_p8), [#allocation3], 2048   ;;  %p7208_p0 = pmov %p7207_p8 }
  0x6f   : > { %5664 = vsyncadd (%p7208_p0), [#allocation3], 4294965248  ;;  %p7209_p3 = pmov %p7208_p0 }
  0x70   : > { %p7210_p4 = pmov %p7208_p0 }
  0x71   : > { %5666 = dma.done.wait (%p7209_p3), [#allocation6], 6144  }
  0x72   : > { %5668 = vsyncadd (%p7210_p4), [#allocation6], 4294961152  ;;  %p7211_p1 = pmov %p7208_p0 }
  0x73   : > { %p7212_p6 = pmov %p7208_p0 }
  0x74   : > { %5670 = dma.done.wait (%p7211_p1), [#allocation9], 4096  }
  0x75   : > { %5672 = vsyncadd (%p7212_p6), [#allocation9], 4294963200  ;;  %p453_p5 = scmp.lt.s32.totalorder %s5760_s18, 2  ;;  %p7213_p7 = scmp.ne.s32.totalorder %s5760_s18, 0 }
  0x76   : > { %v5687_v0 = vmov (!%p7213_p7), 0.0  }
  0x77   : > { %s5908_s19 = scalar_select %p453_p5, %s5760_s18, 2 }
  0x78   : > { %469 = sbr.rel (%p7213_p7) target bundleno = 128 (0x80), region = 84  ;;  %470 = vst [vmem:[#allocation10] sm:$0xff] (!%p7213_p7), %v5687_v0  ;;  %471 = vst [vmem:[#allocation10 + $0x8] sm:$0xff] (!%p7213_p7), %v5687_v0 }
  0x79   : > { %s3747_s24 = sshll.u32 %s5908_s19, 7  ;;  %s460_s25 = scalar_lea.vmem %s7165_s1, %s5908_s19  ;;  %472 = vst [vmem:[#allocation10 + $0x10] sm:$0xff] (!%p7213_p7), %v5687_v0  ;;  %473 = vst [vmem:[#allocation10 + $0x18] sm:$0xff] (!%p7213_p7), %v5687_v0 }
  0x7a   : > { %s5918_s17 = scalar_lea.vmem %s7164_s0, %s3747_s24  ;;  %s5923_s12 = scalar_lea.vmem %s7166_s2, %s3747_s24  ;;  %474 = vst [vmem:[#allocation10 + $0x20] sm:$0xff] (!%p7213_p7), %v5687_v0  ;;  %475 = vst [vmem:[#allocation10 + $0x28] sm:$0xff] (!%p7213_p7), %v5687_v0 }
  0x7b   : > { %476 = vst [vmem:[#allocation10 + $0x30] sm:$0xff] (!%p7213_p7), %v5687_v0  ;;  %477 = vst [vmem:[#allocation10 + $0x38] sm:$0xff] (!%p7213_p7), %v5687_v0 }
  0x7c   : > { %478 = vst [vmem:[#allocation10 + $0x40] sm:$0xff] (!%p7213_p7), %v5687_v0  ;;  %479 = vst [vmem:[#allocation10 + $0x48] sm:$0xff] (!%p7213_p7), %v5687_v0 }
  0x7d   : > { %480 = vst [vmem:[#allocation10 + $0x50] sm:$0xff] (!%p7213_p7), %v5687_v0  ;;  %481 = vst [vmem:[#allocation10 + $0x58] sm:$0xff] (!%p7213_p7), %v5687_v0 }
  0x7e   : > { %482 = vst [vmem:[#allocation10 + $0x60] sm:$0xff] (!%p7213_p7), %v5687_v0  ;;  %483 = vst [vmem:[#allocation10 + $0x68] sm:$0xff] (!%p7213_p7), %v5687_v0 }
  0x7f   : > { %484 = vst [vmem:[#allocation10 + $0x70] sm:$0xff] %v5687_v0  ;;  %485 = vst [vmem:[#allocation10 + $0x78] sm:$0xff] %v5687_v0 }
  0x80 PF: > { %v504_v1 = vld [vmem:[%s5923_s12 + $0x10] sm:$0xff]  ;;  %v502_v2 = vld [vmem:[%s5923_s12] sm:$0xff]  ;;  %v5688_v3 = vmov 0   ;;  %v505_v4 = vld [vmem:[%s5923_s12 + $0x18] sm:$0xff]  ;;  %s5691_s13 = smov [#allocation10]   ;;  %p5302_p9 = scmp.eq.s32.totalorder %s5760_s18, 2 }
  0x81   : > { %5326 = vset.pattern.permute.xlu1 %v5688_v3  ;;  %5325 = vset.pattern.permute.xlu0 %v5688_v3  ;;  %v503_v5 = vld [vmem:[%s5923_s12 + $0x8] sm:$0xff]  ;;  %v506_v7 = vld [vmem:[%s5923_s12 + $0x20] sm:$0xff]  ;;  %v509_v8 = vld [vmem:[%s5923_s12 + $0x38] sm:$0xff]  ;;  %s3493_s14 = sshll.u32 %s5691_s13, 4  ;;  %s3494_s14 = int_to_ptr.vmem [resolvable:$true] %s3493_s14 }
  0x82   : > { %624 = vperm.xlu1 %5326, %v504_v1   ;;  %618 = vperm.xlu0 %5325, %v502_v2   ;;  %v507_v6 = vld [vmem:[%s5923_s12 + $0x28] sm:$0xff]  ;;  %v508_v9 = vld [vmem:[%s5923_s12 + $0x30] sm:$0xff]  ;;  %v878_v10 = vld [vmem:[#allocation5] sm:$0xff]  ;;  %s5631_s16 = scalar_lea.vmem %s3494_s14, 2048  ;;  %p5638_p12 = scmp.lt.s32.totalorder %s3494_s14, %s3494_s14 }
  0x83   : > { %v879_v11 = vld [vmem:[#allocation5 + $0x8] sm:$0xff]  ;;  %v880_v12 = vld [vmem:[#allocation5 + $0x10] sm:$0xff]  ;;  %v881_v13 = vld [vmem:[#allocation5 + $0x18] sm:$0xff]  ;;  %p5632_p2 = scmp.ne.s32.totalorder %s3494_s14, %s5631_s16  ;;  %p5639_p13 = scmp.lt.s32.totalorder %s5631_s16, %s5631_s16 }
  0x84   : > { %v4717_v14 = vpack.c.bf16 %v879_v11, %v878_v10  ;;  %v4721_v15 = vpack.c.bf16 %v881_v13, %v880_v12  ;;  %v882_v16 = vld [vmem:[#allocation5 + $0x20] sm:$0xff]  ;;  %v883_v17 = vld [vmem:[#allocation5 + $0x28] sm:$0xff]  ;;  %v884_v22 = vld [vmem:[#allocation5 + $0x30] sm:$0xff] }
  0x85   : > { %v511_v18 = vld [vmem:[%s5923_s12 + $0x48] sm:$0xff]  ;;  %v510_v19 = vld [vmem:[%s5923_s12 + $0x40] sm:$0xff]  ;;  %v4725_v21 = vpack.c.bf16 %v883_v17, %v882_v16  ;;  %v885_v23 = vld [vmem:[#allocation5 + $0x38] sm:$0xff]  ;;  %p5633_p10 = pnand %p5632_p2, %p5302_p9  ;;  %p5640_p8 = por %p5639_p13, %p5638_p12 }
  0x86   : > { %627 = vperm.xlu1 %5326, %v505_v4   ;;  %621 = vperm.xlu0 %5325, %v503_v5   ;;  %v1039_v20 = vld [vmem:[#allocation2] sm:$0xff]  ;;  %v513_v24 = vld [vmem:[%s5923_s12 + $0x58] sm:$0xff]  ;;  %v512_v25 = vld [vmem:[%s5923_s12 + $0x50] sm:$0xff]  ;;  %v4729_v26 = vpack.c.bf16 %v885_v23, %v884_v22 }
  0x87   : > { %4718 = vmatprep.subr.bf16.mxu0 %v4717_v14  ;;  %4189 = vmatprep.mubr.f32.mxu1 %v1039_v20  ;;  %v886_v27 = vld [vmem:[#allocation5 + $0x40] sm:$0xff]  ;;  %v887_v28 = vld [vmem:[#allocation5 + $0x48] sm:$0xff]  ;;  %v888_v32 = vld [vmem:[#allocation5 + $0x50] sm:$0xff]  ;;  %p5634_p11 = pneg %p5633_p10 }
  0x88   : > { %4720 = vmatpush3.bf16.msra.mxu0 %v4717_v14  ;;  %v515_v29 = vld [vmem:[%s5923_s12 + $0x68] sm:$0xff]  ;;  %v514_v30 = vld [vmem:[%s5923_s12 + $0x60] sm:$0xff]  ;;  %v4733_v31 = vpack.c.bf16 %v887_v28, %v886_v27  ;;  %v889_v33 = vld [vmem:[#allocation5 + $0x58] sm:$0xff] }
  0x89   : > { %4722 = vmatprep.subr.bf16.mxu0 %v4721_v15  ;;  %v517_v34 = vld [vmem:[%s5923_s12 + $0x78] sm:$0xff]  ;;  %v516_v35 = vld [vmem:[%s5923_s12 + $0x70] sm:$0xff]  ;;  %v4737_v36 = vpack.c.bf16 %v889_v33, %v888_v32  ;;  %v890_v37 = vld [vmem:[#allocation5 + $0x60] sm:$0xff]  ;;  %p5641_p0 = pnand %p5640_p8, %p5634_p11 }
  0x8a   : > { %633 = vperm.xlu1 %5326, %v507_v6   ;;  %630 = vperm.xlu0 %5325, %v506_v7   ;;  %v891_v38 = vld [vmem:[#allocation5 + $0x68] sm:$0xff]  ;;  %v486_v40 = vld [vmem:[%s5918_s17] sm:$0xff]  ;;  %v892_v42 = vld [vmem:[#allocation5 + $0x70] sm:$0xff] }
  0x8b   : > { %v487_v39 = vld [vmem:[%s5918_s17 + $0x8] sm:$0xff]  ;;  %v4741_v41 = vpack.c.bf16 %v891_v38, %v890_v37  ;;  %v893_v43 = vld [vmem:[#allocation5 + $0x78] sm:$0xff]  ;;  %v488_v45 = vld [vmem:[%s5918_s17 + $0x10] sm:$0xff] }
  0x8c   : > { %4724 = vmatpush3.bf16.msra.mxu0 %v4721_v15  ;;  %v489_v44 = vld [vmem:[%s5918_s17 + $0x18] sm:$0xff]  ;;  %v4745_v46 = vpack.c.bf16 %v893_v43, %v892_v42  ;;  %v5947_v47 = vld [vmem:[#allocation2 + $0x8] sm:$0xff]  ;;  %v490_v49 = vld [vmem:[%s5918_s17 + $0x20] sm:$0xff] }
  0x8d   : > { %4726 = vmatprep.subr.bf16.mxu0 %v4725_v21  ;;  %v491_v48 = vld [vmem:[%s5918_s17 + $0x28] sm:$0xff]  ;;  %v5952_v50 = vpack.c.bf16 %v5947_v47, %v1039_v20  ;;  %v493_v51 = vld [vmem:[%s5918_s17 + $0x38] sm:$0xff]  ;;  %v492_v52 = vld [vmem:[%s5918_s17 + $0x30] sm:$0xff] }
  0x8e   : > { %639 = vperm.xlu1 %5326, %v509_v8   ;;  %636 = vperm.xlu0 %5325, %v508_v9   ;;  %v495_v53 = vld [vmem:[%s5918_s17 + $0x48] sm:$0xff]  ;;  %v494_v54 = vld [vmem:[%s5918_s17 + $0x40] sm:$0xff]  ;;  %v497_v55 = vld [vmem:[%s5918_s17 + $0x58] sm:$0xff] }
  0x8f   : > { %v496_v56 = vld [vmem:[%s5918_s17 + $0x50] sm:$0xff]  ;;  %v499_v57 = vld [vmem:[%s5918_s17 + $0x68] sm:$0xff]  ;;  %v498_v58 = vld [vmem:[%s5918_s17 + $0x60] sm:$0xff] }
  0x90   : > { %4728 = vmatpush3.bf16.msra.mxu0 %v4725_v21  ;;  %v501_v59 = vld [vmem:[%s5918_s17 + $0x78] sm:$0xff]  ;;  %v500_v60 = vld [vmem:[%s5918_s17 + $0x70] sm:$0xff]  ;;  %v1055_v61 = vld [vmem:[#allocation8] sm:$0xff] }
  0x91   : > { %4730 = vmatprep.subr.bf16.mxu0 %v4729_v26  ;;  %v1056_v62 = vld [vmem:[#allocation8 + $0x8] sm:$0xff]  ;;  %v1057_v63 = vld [vmem:[#allocation8 + $0x10] sm:$0xff]  ;;  %v1058_v1 = vld [vmem:[#allocation8 + $0x18] sm:$0xff] }
  0x92   : > { %645 = vperm.xlu1 %5326, %v511_v18   ;;  %642 = vperm.xlu0 %5325, %v510_v19   ;;  %v4749_v0 = vpack.c.bf16 %v1056_v62, %v1055_v61  ;;  %v4753_v2 = vpack.c.bf16 %v1058_v1, %v1057_v63  ;;  %v1059_v3 = vld [vmem:[#allocation8 + $0x20] sm:$0xff]  ;;  %v1060_v4 = vld [vmem:[#allocation8 + $0x28] sm:$0xff]  ;;  %v1061_v6 = vld [vmem:[#allocation8 + $0x30] sm:$0xff]  ;;  %v519_v18 = vlaneseq }
  0x93   : > { %v4757_v5 = vpack.c.bf16 %v1060_v4, %v1059_v3  ;;  %v1062_v7 = vld [vmem:[#allocation8 + $0x38] sm:$0xff]  ;;  %v1063_v9 = vld [vmem:[#allocation8 + $0x40] sm:$0xff]  ;;  %v1064_v10 = vld [vmem:[#allocation8 + $0x48] sm:$0xff] }
  0x94   : > { %4732 = vmatpush3.bf16.msra.mxu0 %v4729_v26  ;;  %4750 = vmatprep.subr.bf16.mxu1 %v4749_v0  ;;  %v4761_v8 = vpack.c.bf16 %v1062_v7, %v1061_v6  ;;  %v4765_v11 = vpack.c.bf16 %v1064_v10, %v1063_v9  ;;  %v1065_v12 = vld [vmem:[#allocation8 + $0x50] sm:$0xff]  ;;  %v1066_v13 = vld [vmem:[#allocation8 + $0x58] sm:$0xff]  ;;  %v1067_v15 = vld [vmem:[#allocation8 + $0x60] sm:$0xff]  ;;  %v5966_v19 = vand.u32 127, %v519_v18 }
  0x95   : > { %4734 = vmatprep.subr.bf16.mxu0 %v4733_v31  ;;  %4752 = vmatpush3.bf16.msra.mxu1 %v4749_v0  ;;  %v4769_v14 = vpack.c.bf16 %v1066_v13, %v1065_v12  ;;  %v1068_v16 = vld [vmem:[#allocation8 + $0x68] sm:$0xff]  ;;  %v5969_v22 = vld [vmem:[#allocation2 + $0x10] sm:$0xff]  ;;  %v5971_v23 = vld [vmem:[#allocation2 + $0x18] sm:$0xff] }
  0x96   : > { %651 = vperm.xlu1 %5326, %v513_v24   ;;  %648 = vperm.xlu0 %5325, %v512_v25   ;;  %v4773_v17 = vpack.c.bf16 %v1068_v16, %v1067_v15  ;;  %v7186_v24 = vmov 1.0   ;;  %v4785_v27 = vpack.c.bf16 %v5971_v23, %v5969_v22  ;;  %v5978_v28 = vld [vmem:[#allocation2 + $0x20] sm:$0xff]  ;;  %v5989_v33 = vld [vmem:[#allocation2 + $0x30] sm:$0xff]  ;;  %v1070_v12 = vld [vmem:[#allocation8 + $0x78] sm:$0xff] }
  0x97   : > { %4754 = vmatprep.subr.bf16.mxu1 %v4753_v2  ;;  %v5999_v38 = vld [vmem:[#allocation2 + $0x40] sm:$0xff]  ;;  %v6009_v43 = vld [vmem:[#allocation2 + $0x50] sm:$0xff]  ;;  %v1362_v15 = vld [vmem:[#allocation7 + $0x8] sm:$0xff] }
  0x98   : > { %4736 = vmatpush3.bf16.msra.mxu0 %v4733_v31 }
  0x99   : > { %4738 = vmatprep.subr.bf16.mxu0 %v4737_v36  ;;  %4756 = vmatpush3.bf16.msra.mxu1 %v4753_v2 }
  0x9a   : > { %657 = vperm.xlu1 %5326, %v515_v29   ;;  %654 = vperm.xlu0 %5325, %v514_v30   ;;  %v5980_v29 = vld [vmem:[#allocation2 + $0x28] sm:$0xff] }
  0x9b   : > { %4758 = vmatprep.subr.bf16.mxu1 %v4757_v5  ;;  %v4789_v32 = vpack.c.bf16 %v5980_v29, %v5978_v28 }
  0x9c   : > { %4740 = vmatpush3.bf16.msra.mxu0 %v4737_v36 }
  0x9d   : > { %4742 = vmatprep.subr.bf16.mxu0 %v4741_v41  ;;  %4760 = vmatpush3.bf16.msra.mxu1 %v4757_v5 }
  0x9e   : > { %663 = vperm.xlu1 %5326, %v517_v34   ;;  %660 = vperm.xlu0 %5325, %v516_v35   ;;  %v5991_v34 = vld [vmem:[#allocation2 + $0x38] sm:$0xff] }
  0x9f   : > { %4762 = vmatprep.subr.bf16.mxu1 %v4761_v8  ;;  %v4793_v37 = vpack.c.bf16 %v5991_v34, %v5989_v33 }
  0xa0   : > { %4744 = vmatpush3.bf16.msra.mxu0 %v4741_v41 }
  0xa1   : > { %4746 = vmatprep.subr.bf16.mxu0 %v4745_v46  ;;  %4764 = vmatpush3.bf16.msra.mxu1 %v4761_v8 }
  0xa2   : > { %525 = vperm.xlu1 %5326, %v487_v39   ;;  %522 = vperm.xlu0 %5325, %v486_v40   ;;  %v6001_v39 = vld [vmem:[#allocation2 + $0x48] sm:$0xff] }
  0xa3   : > { %4766 = vmatprep.subr.bf16.mxu1 %v4765_v11  ;;  %v4797_v42 = vpack.c.bf16 %v6001_v39, %v5999_v38 }
  0xa4   : > { %4748 = vmatpush3.bf16.msra.mxu0 %v4745_v46 }
  0xa5   : > { %4782 = vmatprep.subr.bf16.mxu0 %v5952_v50  ;;  %4768 = vmatpush3.bf16.msra.mxu1 %v4765_v11  ;;  %v1069_v11 = vld [vmem:[#allocation8 + $0x70] sm:$0xff] }
  0xa6   : > { %531 = vperm.xlu1 %5326, %v489_v44   ;;  %528 = vperm.xlu0 %5325, %v488_v45   ;;  %v6011_v44 = vld [vmem:[#allocation2 + $0x58] sm:$0xff]  ;;  %v4777_v13 = vpack.c.bf16 %v1070_v12, %v1069_v11 }
  0xa7   : > { %4770 = vmatprep.subr.bf16.mxu1 %v4769_v14 }
  0xa9   : > { %4772 = vmatpush3.bf16.msra.mxu1 %v4769_v14  ;;  %v1361_v14 = vld [vmem:[#allocation7] sm:$0xff] }
  0xaa   : > { %537 = vperm.xlu1 %5326, %v491_v48   ;;  %534 = vperm.xlu0 %5325, %v490_v49   ;;  %v4801_v48 = vpack.c.bf16 %v6011_v44, %v6009_v43  ;;  %v6019_v49 = vld [vmem:[#allocation2 + $0x60] sm:$0xff]  ;;  %v4813_v16 = vpack.c.bf16 %v1362_v15, %v1361_v14 }
  0xab   : > { %4774 = vmatprep.subr.bf16.mxu1 %v4773_v17 }
  0xad   : > { %4776 = vmatpush3.bf16.msra.mxu1 %v4773_v17  ;;  %v1363_v17 = vld [vmem:[#allocation7 + $0x10] sm:$0xff] }
  0xae   : > { %543 = vperm.xlu1 %5326, %v493_v51   ;;  %540 = vperm.xlu0 %5325, %v492_v52  }
  0xaf   : > { %4778 = vmatprep.subr.bf16.mxu1 %v4777_v13 }
  0xb1   : > { %4780 = vmatpush3.bf16.msra.mxu1 %v4777_v13 }
  0xb2   : > { %549 = vperm.xlu1 %5326, %v495_v53   ;;  %546 = vperm.xlu0 %5325, %v494_v54   ;;  %v6029_v54 = vld [vmem:[#allocation2 + $0x70] sm:$0xff] }
  0xb3   : > { %4814 = vmatprep.subr.bf16.mxu1 %v4813_v16 }
  0xb4   : > { %4190 = vmatmul.mubr.f32.vlgmr.msra.gmra.mrb[0].mxu1 %v5947_v47  ;;  %v1367_v47 = vld [vmem:[#allocation7 + $0x30] sm:$0xff] }
  0xb5   : > { %4816 = vmatpush3.bf16.msra.mxu1 %v4813_v16  ;;  %4192 = vmatprep.mubr.f32.mxu1 %v5969_v22  ;;  %v1368_v22 = vld [vmem:[#allocation7 + $0x38] sm:$0xff] }
  0xb6   : > { %555 = vperm.xlu1 %5326, %v497_v55   ;;  %552 = vperm.xlu0 %5325, %v496_v56   ;;  %v6031_v55 = vld [vmem:[#allocation2 + $0x78] sm:$0xff] }
  0xb8   : > { %4193 = vmatmul.mubr.f32.gmra.mrb[2].mxu1 %v5971_v23  ;;  %v1369_v23 = vld [vmem:[#allocation7 + $0x40] sm:$0xff] }
  0xb9   : > { %4195 = vmatprep.mubr.f32.mxu1 %v5978_v28  ;;  %v1370_v28 = vld [vmem:[#allocation7 + $0x48] sm:$0xff] }
  0xba   : > { %561 = vperm.xlu1 %5326, %v499_v57   ;;  %558 = vperm.xlu0 %5325, %v498_v58   ;;  %v4809_v58 = vpack.c.bf16 %v6031_v55, %v6029_v54 }
  0xbc   : > { %4196 = vmatmul.mubr.f32.gmra.mrb[4].mxu1 %v5980_v29  ;;  %v1371_v29 = vld [vmem:[#allocation7 + $0x50] sm:$0xff] }
  0xbd   : > { %4198 = vmatprep.mubr.f32.mxu1 %v5989_v33 }
  0xbe   : > { %567 = vperm.xlu1 %5326, %v501_v59   ;;  %564 = vperm.xlu0 %5325, %v500_v60  }
  0xc0   : > { %4199 = vmatmul.mubr.f32.gmra.mrb[6].mxu1 %v5991_v34  ;;  %v1373_v34 = vld [vmem:[#allocation7 + $0x60] sm:$0xff] }
  0xc1   : > { %4201 = vmatprep.mubr.f32.mxu1 %v5999_v38  ;;  %v1376_v38 = vld [vmem:[#allocation7 + $0x78] sm:$0xff] }
  0xc4   : > { %4202 = vmatmul.mubr.f32.gmra.mrb[8].mxu1 %v6001_v39 }
  0xc5   : > { %4204 = vmatprep.mubr.f32.mxu1 %v6009_v43 }
  0xc8   : > { %4205 = vmatmul.mubr.f32.gmra.mrb[10].mxu1 %v6011_v44 }
  0xc9   : > { %4207 = vmatprep.mubr.f32.mxu1 %v6019_v49 }
 0x101   : > { %v625_v20 = vpop.permute.xlu1 %624  ;;  %v619_v21 = vpop.permute.xlu0 %618 }
 0x102   : > { %vm665_vm0 = vcmp.eq.s32.totalorder %v619_v21, %v5966_v19  ;;  %vm667_vm1 = vcmp.eq.s32.totalorder %v625_v20, %v5966_v19  ;;  %v1364_v20 = vld [vmem:[#allocation7 + $0x18] sm:$0xff] }
 0x103   : > { %4133 = vmatprep.mubr.msk.f32.mxu0 %vm665_vm0, %v7186_v24  ;;  %v4817_v21 = vpack.c.bf16 %v1364_v20, %v1363_v17 }
 0x105   : > { %v628_v25 = vpop.permute.xlu1 %627  ;;  %v622_v26 = vpop.permute.xlu0 %621  ;;  %4818 = vmatprep.subr.bf16.mxu1 %v4817_v21 }
 0x106   : > { %vm666_vm2 = vcmp.eq.s32.totalorder %v622_v26, %v5966_v19  ;;  %vm668_vm3 = vcmp.eq.s32.totalorder %v628_v25, %v5966_v19  ;;  %4820 = vmatpush3.bf16.msra.mxu1 %v4817_v21  ;;  %v1365_v25 = vld [vmem:[#allocation7 + $0x20] sm:$0xff]  ;;  %v1366_v26 = vld [vmem:[#allocation7 + $0x28] sm:$0xff] }
 0x107   : > { %4134 = vmatmul.mubr.msk.f32.vlgmr.msra.gmra.mrb[0].mxu0 %vm666_vm2, %v7186_v24 }
 0x108   : > { %4136 = vmatprep.mubr.msk.f32.mxu0 %vm667_vm1, %v7186_v24  ;;  %4784 = vmatpush3.bf16.msra.mxu0 %v5952_v50  ;;  %v6021_v50 = vld [vmem:[#allocation2 + $0x68] sm:$0xff] }
 0x109   : > { %v634_v30 = vpop.permute.xlu1 %633  ;;  %v631_v31 = vpop.permute.xlu0 %630  ;;  %4786 = vmatprep.subr.bf16.mxu0 %v4785_v27  ;;  %v4805_v53 = vpack.c.bf16 %v6021_v50, %v6019_v49  ;;  %4208 = vmatmul.mubr.f32.gmra.mrb[12].mxu1 %v6021_v50 }
 0x10a   : > { %vm669_vm4 = vcmp.eq.s32.totalorder %v631_v31, %v5966_v19  ;;  %vm670_vm5 = vcmp.eq.s32.totalorder %v634_v30, %v5966_v19  ;;  %v4825_v30 = vpack.c.bf16 %v1368_v22, %v1367_v47  ;;  %v4829_v31 = vpack.c.bf16 %v1370_v28, %v1369_v23  ;;  %4210 = vmatprep.mubr.f32.mxu1 %v6029_v54 }
 0x10b   : > { %4137 = vmatmul.mubr.msk.f32.gmra.mrb[2].mxu0 %vm668_vm3, %v7186_v24 }
 0x10c   : > { %4139 = vmatprep.mubr.msk.f32.mxu0 %vm669_vm4, %v7186_v24  ;;  %4788 = vmatpush3.bf16.msra.mxu0 %v4785_v27  ;;  %v4821_v27 = vpack.c.bf16 %v1366_v26, %v1365_v25 }
 0x10d   : > { %v640_v35 = vpop.permute.xlu1 %639  ;;  %v637_v36 = vpop.permute.xlu0 %636  ;;  %4790 = vmatprep.subr.bf16.mxu0 %v4789_v32  ;;  %4211 = vmatmul.mubr.f32.gmra.mrb[14].mxu1 %v6031_v55 }
 0x10e   : > { %vm671_vm6 = vcmp.eq.s32.totalorder %v637_v36, %v5966_v19  ;;  %vm672_vm7 = vcmp.eq.s32.totalorder %v640_v35, %v5966_v19  ;;  %4822 = vmatprep.subr.bf16.mxu1 %v4821_v27  ;;  %v1374_v35 = vld [vmem:[#allocation7 + $0x68] sm:$0xff] }
 0x10f   : > { %4140 = vmatmul.mubr.msk.f32.gmra.mrb[4].mxu0 %vm670_vm5, %v7186_v24  ;;  %4824 = vmatpush3.bf16.msra.mxu1 %v4821_v27  ;;  %v4837_v36 = vpack.c.bf16 %v1374_v35, %v1373_v34 }
 0x110   : > { %4142 = vmatprep.mubr.msk.f32.mxu0 %vm671_vm6, %v7186_v24  ;;  %4792 = vmatpush3.bf16.msra.mxu0 %v4789_v32  ;;  %v1372_v32 = vld [vmem:[#allocation7 + $0x58] sm:$0xff] }
 0x111   : > { %v646_v40 = vpop.permute.xlu1 %645  ;;  %v643_v41 = vpop.permute.xlu0 %642  ;;  %4794 = vmatprep.subr.bf16.mxu0 %v4793_v37  ;;  %4826 = vmatprep.subr.bf16.mxu1 %v4825_v30  ;;  %v4833_v33 = vpack.c.bf16 %v1372_v32, %v1371_v29 }
 0x112   : > { %vm673_vm8 = vcmp.eq.s32.totalorder %v643_v41, %v5966_v19  ;;  %vm674_vm9 = vcmp.eq.s32.totalorder %v646_v40, %v5966_v19  ;;  %v6191_v40 = vld [vmem:[%s460_s25] ss:$0 sm:$0xff]  ;;  %v6194_v41 = vshrl.u32 %v519_v18, 7 }
 0x113   : > { %4143 = vmatmul.mubr.msk.f32.gmra.mrb[6].mxu0 %vm672_vm7, %v7186_v24  ;;  %4828 = vmatpush3.bf16.msra.mxu1 %v4825_v30 }
 0x114   : > { %4145 = vmatprep.mubr.msk.f32.mxu0 %vm673_vm8, %v7186_v24  ;;  %4796 = vmatpush3.bf16.msra.mxu0 %v4793_v37  ;;  %v1375_v37 = vld [vmem:[#allocation7 + $0x70] sm:$0xff]  ;;  %7214 = vst [vmem:[#allocation16_spill] sm:$0xff] %v6194_v41  ;;  %v716_v43 = vadd.s32 16, %v6194_v41  ;;  %v717_v44 = vadd.s32 24, %v6194_v41  ;;  %v720_v18 = vadd.s32 48, %v6194_v41  ;;  %v721_v55 = vadd.s32 56, %v6194_v41 }
 0x115   : > { %v652_v45 = vpop.permute.xlu1 %651  ;;  %v649_v46 = vpop.permute.xlu0 %648  ;;  %4798 = vmatprep.subr.bf16.mxu0 %v4797_v42  ;;  %4830 = vmatprep.subr.bf16.mxu1 %v4829_v31  ;;  %v4841_v39 = vpack.c.bf16 %v1376_v38, %v1375_v37  ;;  %v723_v11 = vadd.s32 72, %v6194_v41  ;;  %v726_v13 = vadd.s32 96, %v6194_v41  ;;  %v725_v15 = vadd.s32 88, %v6194_v41 }
 0x116   : > { %vm675_vm10 = vcmp.eq.s32.totalorder %v649_v46, %v5966_v19  ;;  %vm676_vm11 = vcmp.eq.s32.totalorder %v652_v45, %v5966_v19  ;;  %v7184_v45 = vmov 0.0   ;;  %v728_v17 = vadd.s32 112, %v6194_v41 }
 0x117   : > { %4146 = vmatmul.mubr.msk.f32.gmra.mrb[8].mxu0 %vm674_vm9, %v7186_v24  ;;  %4832 = vmatpush3.bf16.msra.mxu1 %v4829_v31  ;;  %v727_v21 = vadd.s32 104, %v6194_v41  ;;  %v729_v27 = vadd.s32 120, %v6194_v41 }
 0x118   : > { %4148 = vmatprep.mubr.msk.f32.mxu0 %vm675_vm10, %v7186_v24  ;;  %4800 = vmatpush3.bf16.msra.mxu0 %v4797_v42  ;;  %v715_v42 = vadd.s32 8, %v6194_v41 }
 0x119   : > { %v658_v51 = vpop.permute.xlu1 %657  ;;  %v655_v52 = vpop.permute.xlu0 %654  ;;  %4802 = vmatprep.subr.bf16.mxu0 %v4801_v48  ;;  %4834 = vmatprep.subr.bf16.mxu1 %v4833_v33 }
 0x11a   : > { %vm677_vm12 = vcmp.eq.s32.totalorder %v655_v52, %v5966_v19  ;;  %vm678_vm13 = vcmp.eq.s32.totalorder %v658_v51, %v5966_v19  ;;  %v719_v51 = vadd.s32 40, %v6194_v41 }
 0x11b   : > { %4149 = vmatmul.mubr.msk.f32.gmra.mrb[10].mxu0 %vm676_vm11, %v7186_v24  ;;  %4836 = vmatpush3.bf16.msra.mxu1 %v4833_v33 }
 0x11c   : > { %4151 = vmatprep.mubr.msk.f32.mxu0 %vm677_vm12, %v7186_v24  ;;  %4804 = vmatpush3.bf16.msra.mxu0 %v4801_v48  ;;  %v718_v48 = vadd.s32 32, %v6194_v41 }
 0x11d   : > { %v664_v56 = vpop.permute.xlu1 %663  ;;  %v661_v57 = vpop.permute.xlu0 %660  ;;  %4806 = vmatprep.subr.bf16.mxu0 %v4805_v53  ;;  %4838 = vmatprep.subr.bf16.mxu1 %v4837_v36 }
 0x11e   : > { %vm679_vm14 = vcmp.eq.s32.totalorder %v661_v57, %v5966_v19  ;;  %vm680_vm15 = vcmp.eq.s32.totalorder %v664_v56, %v5966_v19  ;;  %v724_v57 = vadd.s32 80, %v6194_v41 }
 0x11f   : > { %4152 = vmatmul.mubr.msk.f32.gmra.mrb[12].mxu0 %vm678_vm13, %v7186_v24  ;;  %4840 = vmatpush3.bf16.msra.mxu1 %v4837_v36 }
 0x120   : > { %4154 = vmatprep.mubr.msk.f32.mxu0 %vm679_vm14, %v7186_v24  ;;  %4808 = vmatpush3.bf16.msra.mxu0 %v4805_v53  ;;  %v722_v53 = vadd.s32 64, %v6194_v41 }
 0x121   : > { %v6041_v59 = vpop.permute.xlu1 %525  ;;  %v6043_v60 = vpop.permute.xlu0 %522  ;;  %4810 = vmatprep.subr.bf16.mxu0 %v4809_v58  ;;  %4842 = vmatprep.subr.bf16.mxu1 %v4841_v39 }
 0x122   : > { %vm569_vm0 = vcmp.eq.s32.totalorder %v6043_v60, %v5966_v19  ;;  %vm570_vm1 = vcmp.eq.s32.totalorder %v6041_v59, %v5966_v19  ;;  %v2037_v59 = vld [vmem:[#allocation7 + $0xf0] sm:$0xff]  ;;  %v2038_v60 = vld [vmem:[#allocation7 + $0xf8] sm:$0xff] }
 0x123   : > { %4155 = vmatmul.mubr.msk.f32.gmra.mrb[14].mxu0 %vm680_vm15, %v7186_v24  ;;  %4844 = vmatpush3.bf16.msra.mxu1 %v4841_v39 }
 0x124   : > { %4812 = vmatpush3.bf16.msra.mxu0 %v4809_v58  ;;  %4245 = vmatprep.mubr.msk.f32.mxu0 %vm569_vm0, %v7186_v24 }
 0x125   : > { %v6053_v61 = vpop.permute.xlu1 %531  ;;  %v6055_v62 = vpop.permute.xlu0 %528 }
 0x126   : > { %vm571_vm2 = vcmp.eq.s32.totalorder %v6055_v62, %v5966_v19  ;;  %vm572_vm3 = vcmp.eq.s32.totalorder %v6053_v61, %v5966_v19  ;;  %v4969_v61 = vpack.c.bf16 %v2038_v60, %v2037_v59  ;;  %v2400_v59 = vld [vmem:[%s7171_s7 + $0x38] sm:$0xff]  ;;  %v2403_v60 = vld [vmem:[%s7171_s7 + $0x50] sm:$0xff] }
 0x127   : > { %4246 = vmatmul.mubr.msk.f32.vlgmr.msra.gmra.mrb[16].mxu0 %vm570_vm1, %v7186_v24 }
 0x128   : > { %4248 = vmatprep.mubr.msk.f32.mxu0 %vm571_vm2, %v7186_v24 }
 0x129   : > { %v6069_v63 = vpop.permute.xlu1 %537  ;;  %v6071_v0 = vpop.permute.xlu0 %534 }
 0x12a   : > { %vm573_vm4 = vcmp.eq.s32.totalorder %v6071_v0, %v5966_v19  ;;  %vm574_vm5 = vcmp.eq.s32.totalorder %v6069_v63, %v5966_v19 }
 0x12b   : > { %4249 = vmatmul.mubr.msk.f32.gmra.mrb[18].mxu0 %vm572_vm3, %v7186_v24 }
 0x12c   : > { %4251 = vmatprep.mubr.msk.f32.mxu0 %vm573_vm4, %v7186_v24 }
 0x12d   : > { %v6085_v1 = vpop.permute.xlu1 %543  ;;  %v6087_v2 = vpop.permute.xlu0 %540 }
 0x12e   : > { %vm575_vm6 = vcmp.eq.s32.totalorder %v6087_v2, %v5966_v19  ;;  %vm576_vm7 = vcmp.eq.s32.totalorder %v6085_v1, %v5966_v19 }
 0x12f   : > { %4252 = vmatmul.mubr.msk.f32.gmra.mrb[20].mxu0 %vm574_vm5, %v7186_v24 }
 0x130   : > { %4254 = vmatprep.mubr.msk.f32.mxu0 %vm575_vm6, %v7186_v24 }
 0x131   : > { %v6101_v3 = vpop.permute.xlu1 %549  ;;  %v6103_v4 = vpop.permute.xlu0 %546 }
 0x132   : > { %vm577_vm8 = vcmp.eq.s32.totalorder %v6103_v4, %v5966_v19  ;;  %vm578_vm9 = vcmp.eq.s32.totalorder %v6101_v3, %v5966_v19 }
 0x133   : > { %4255 = vmatmul.mubr.msk.f32.gmra.mrb[22].mxu0 %vm576_vm7, %v7186_v24 }
 0x134   : > { %4257 = vmatprep.mubr.msk.f32.mxu0 %vm577_vm8, %v7186_v24 }
 0x135   : > { %v6117_v5 = vpop.permute.xlu1 %555  ;;  %v6119_v6 = vpop.permute.xlu0 %552 }
 0x136   : > { %vm579_vm10 = vcmp.eq.s32.totalorder %v6119_v6, %v5966_v19  ;;  %vm7183_vm11 = vcmp.eq.s32.totalorder %v6117_v5, %v5966_v19 }
 0x137   : > { %4258 = vmatmul.mubr.msk.f32.gmra.mrb[24].mxu0 %vm578_vm9, %v7186_v24 }
 0x138   : > { %4260 = vmatprep.mubr.msk.f32.mxu0 %vm579_vm10, %v7186_v24 }
 0x139   : > { %v6133_v7 = vpop.permute.xlu1 %561  ;;  %v6135_v8 = vpop.permute.xlu0 %558 }
 0x13a   : > { %vm7182_vm12 = vcmp.eq.s32.totalorder %v6135_v8, %v5966_v19  ;;  %vm7181_vm13 = vcmp.eq.s32.totalorder %v6133_v7, %v5966_v19 }
 0x13b   : > { %4261 = vmatmul.mubr.msk.f32.gmra.mrb[26].mxu0 %vm7183_vm11, %v7186_v24  ;;  %vm740_vm11 = vcmp.eq.s32.totalorder %v720_v18, %v6191_v40 }
 0x13c   : > { %4263 = vmatprep.mubr.msk.f32.mxu0 %vm7182_vm12, %v7186_v24  ;;  %vm738_vm12 = vcmp.eq.s32.totalorder %v718_v48, %v6191_v40  ;;  %v6232_v56 = vsel %vm740_vm11, 1.0, %v7184_v45  ;;  %vm744_vm11 = vcmp.eq.s32.totalorder %v724_v57, %v6191_v40 }
 0x13d   : > { %v6149_v9 = vpop.permute.xlu0 %564  ;;  %v6155_v10 = vpop.permute.xlu1 %567  ;;  %v6220_v52 = vsel %vm738_vm12, 1.0, %v7184_v45  ;;  %vm742_vm12 = vcmp.eq.s32.totalorder %v722_v53, %v6191_v40  ;;  %v6256_v16 = vsel %vm744_vm11, 1.0, %v7184_v45  ;;  %vm747_vm11 = vcmp.eq.s32.totalorder %v727_v21, %v6191_v40 }
 0x13e   : > { %vm7180_vm14 = vcmp.eq.s32.totalorder %v6149_v9, %v5966_v19  ;;  %vm7179_vm15 = vcmp.eq.s32.totalorder %v6155_v10, %v5966_v19  ;;  %v6244_v12 = vsel %vm742_vm12, 1.0, %v7184_v45  ;;  %vm745_vm12 = vcmp.eq.s32.totalorder %v725_v15, %v6191_v40 }
 0x13f   : > { %4264 = vmatmul.mubr.msk.f32.gmra.mrb[28].mxu0 %vm7181_vm13, %v7186_v24  ;;  %vm736_vm13 = vcmp.eq.s32.totalorder %v716_v43, %v6191_v40  ;;  %v6273_v26 = vsel %vm745_vm12, 1.0, %v7184_v45  ;;  %v6283_v22 = vsel %vm747_vm11, 1.0, %v7184_v45 }
 0x140   : > { %4266 = vmatprep.mubr.msk.f32.mxu0 %vm7180_vm14, %v7186_v24  ;;  %vm735_vm14 = vcmp.eq.s32.totalorder %v715_v42, %v6191_v40  ;;  %v6213_v50 = vsel %vm736_vm13, 1.0, %v7184_v45  ;;  %vm739_vm13 = vcmp.eq.s32.totalorder %v719_v51, %v6191_v40 }
 0x141   : > { %v6210_v49 = vsel %vm735_vm14, 1.0, %v7184_v45  ;;  %v6238_v58 = vsel %vm739_vm13, 1.0, %v7184_v45  ;;  %vm741_vm14 = vcmp.eq.s32.totalorder %v721_v55, %v6191_v40  ;;  %vm746_vm13 = vcmp.eq.s32.totalorder %v726_v13, %v6191_v40 }
 0x142   : > { %784 = vadd.xlane.f32.xlu1 %v6210_v49  ;;  %v6250_v14 = vsel %vm741_vm14, 1.0, %v7184_v45  ;;  %v6268_v25 = vsel %vm746_vm13, 1.0, %v7184_v45  ;;  %vm748_vm14 = vcmp.eq.s32.totalorder %v728_v17, %v6191_v40 }
 0x143   : > { %4267 = vmatmul.mubr.msk.f32.gmra.mrb[30].mxu0 %vm7179_vm15, %v7186_v24  ;;  %vm734_vm15 = vcmp.eq.s32.totalorder %v6194_v41, %v6191_v40  ;;  %v6279_v47 = vsel %vm748_vm14, 1.0, %v7184_v45  ;;  %v1721_v41 = vld [vmem:[#allocation8 + $0xa8] sm:$0xff] }
 0x144   : > { %v6202_v46 = vsel %vm734_vm15, 1.0, %v7184_v45  ;;  %vm737_vm15 = vcmp.eq.s32.totalorder %v717_v44, %v6191_v40 }
 0x145   : > { %782 = vadd.xlane.f32.xlu0 %v6202_v46  ;;  %v6226_v54 = vsel %vm737_vm15, 1.0, %v7184_v45  ;;  %vm743_vm15 = vcmp.eq.s32.totalorder %v723_v11, %v6191_v40 }
 0x146   : > { %790 = vadd.xlane.f32.xlu1 %v6220_v52  ;;  %v6262_v20 = vsel %vm743_vm15, 1.0, %v7184_v45  ;;  %vm749_vm15 = vcmp.eq.s32.totalorder %v729_v27, %v6191_v40 }
 0x147   : > { %v6289_v30 = vsel %vm749_vm15, 1.0, %v7184_v45 }
 0x149   : > { %786 = vadd.xlane.f32.xlu0 %v6213_v50 }
 0x14a   : > { %794 = vadd.xlane.f32.xlu1 %v6232_v56 }
 0x14d   : > { %788 = vadd.xlane.f32.xlu0 %v6226_v54 }
 0x14e   : > { %798 = vadd.xlane.f32.xlu1 %v6244_v12 }
 0x151   : > { %792 = vadd.xlane.f32.xlu0 %v6238_v58 }
 0x152   : > { %802 = vadd.xlane.f32.xlu1 %v6256_v16 }
 0x155   : > { %796 = vadd.xlane.f32.xlu0 %v6250_v14 }
 0x156   : > { %806 = vadd.xlane.f32.xlu1 %v6268_v25 }
 0x159   : > { %800 = vadd.xlane.f32.xlu0 %v6262_v20 }
 0x15a   : > { %810 = vadd.xlane.f32.xlu1 %v6279_v47 }
 0x15d   : > { %804 = vadd.xlane.f32.xlu0 %v6273_v26 }
 0x161   : > { %808 = vadd.xlane.f32.xlu0 %v6283_v22 }
 0x165   : > { %812 = vadd.xlane.f32.xlu0 %v6289_v30 }
 0x1da   : > { %v6292_v23 = vpop.f32.mrb[0].mxu0 }
 0x1db   : > { %v6294_v28 = vpop.f32.mrb[1].mxu0 }
 0x1de   : > { %v6296_v31 = vpop.f32.mrb[2].mxu0 }
 0x1df   : > { %v6298_v29 = vpop.f32.mrb[3].mxu0 }
 0x1e2   : > { %v6300_v32 = vpop.f32.mrb[4].mxu0 }
 0x1e3   : > { %v6302_v33 = vpop.f32.mrb[5].mxu0 }
 0x1e6   : > { %v6304_v34 = vpop.f32.mrb[6].mxu0 }
 0x1e7   : > { %v6306_v35 = vpop.f32.mrb[7].mxu0 }
 0x1ea   : > { %v6308_v36 = vpop.f32.mrb[8].mxu0 }
 0x1eb   : > { %v6310_v37 = vpop.f32.mrb[9].mxu0 }
 0x1ec   : > { %7215 = vst [vmem:[#allocation17_spill] sm:$0xff] %v6310_v37 }
 0x1ee   : > { %v6312_v38 = vpop.f32.mrb[10].mxu0 }
 0x1ef   : > { %7216 = vst [vmem:[#allocation18_spill] sm:$0xff] %v6312_v38  ;;  %v6314_v39 = vpop.f32.mrb[11].mxu0 }
 0x1f0   : > { %7217 = vst [vmem:[#allocation19_spill] sm:$0xff] %v6314_v39 }
 0x1f2   : > { %v6316_v40 = vpop.f32.mrb[12].mxu0 }
 0x1f3   : > { %7218 = vst [vmem:[#allocation20_spill] sm:$0xff] %v6316_v40  ;;  %v6318_v42 = vpop.f32.mrb[13].mxu0 }
 0x1f4   : > { %7219 = vst [vmem:[#allocation21_spill] sm:$0xff] %v6318_v42 }
 0x1f6   : > { %v6320_v43 = vpop.f32.mrb[14].mxu0 }
 0x1f7   : > { %7220 = vst [vmem:[#allocation22_spill] sm:$0xff] %v6320_v43  ;;  %v6322_v44 = vpop.f32.mrb[15].mxu0 }
 0x1f8   : > { %7221 = vst [vmem:[#allocation23_spill] sm:$0xff] %v6322_v44 }
 0x1fa   : > { %v4247_v48 = vpop.f32.mrb[16].mxu0 }
 0x1fb   : > { %v1288_v18 = vadd.f32 %v4247_v48, %v6292_v23  ;;  %v1282_v51 = vpop.f32.mrb[17].mxu0 }
 0x1fc   : > { %v1283_v53 = vadd.f32 %v1282_v51, %v6294_v28 }
 0x1fe   : > { %v4250_v55 = vpop.f32.mrb[18].mxu0  ;;  %4301 = vmatprep.mubr.f32.mxu1 %v1283_v53 }
 0x1ff   : > { %v1298_v57 = vadd.f32 %v4250_v55, %v6296_v31  ;;  %v1292_v11 = vpop.f32.mrb[19].mxu0  ;;  %4302 = vmatmul.mubr.f32.vlgmr.msra.gmra.mrb[16].mxu1 %v1288_v18 }
 0x200   : > { %v1293_v13 = vadd.f32 %v1292_v11, %v6298_v29 }
 0x202   : > { %v4253_v15 = vpop.f32.mrb[20].mxu0  ;;  %4304 = vmatprep.mubr.f32.mxu1 %v1293_v13 }
 0x203   : > { %v1308_v17 = vadd.f32 %v4253_v15, %v6300_v32  ;;  %v1302_v21 = vpop.f32.mrb[21].mxu0  ;;  %4305 = vmatmul.mubr.f32.gmra.mrb[18].mxu1 %v1298_v57 }
 0x204   : > { %v1303_v27 = vadd.f32 %v1302_v21, %v6302_v33 }
 0x206   : > { %v4256_v48 = vpop.f32.mrb[22].mxu0  ;;  %4307 = vmatprep.mubr.f32.mxu1 %v1303_v27 }
 0x207   : > { %v1318_v51 = vadd.f32 %v4256_v48, %v6304_v34  ;;  %v1312_v45 = vpop.f32.mrb[23].mxu0  ;;  %4308 = vmatmul.mubr.f32.gmra.mrb[20].mxu1 %v1308_v17 }
 0x208   : > { %v1313_v53 = vadd.f32 %v1312_v45, %v6306_v35 }
 0x20a   : > { %v4259_v55 = vpop.f32.mrb[24].mxu0  ;;  %4310 = vmatprep.mubr.f32.mxu1 %v1313_v53 }
 0x20b   : > { %v1328_v18 = vadd.f32 %v4259_v55, %v6308_v36  ;;  %v1322_v11 = vpop.f32.mrb[25].mxu0  ;;  %4311 = vmatmul.mubr.f32.gmra.mrb[22].mxu1 %v1318_v51 }
 0x20c   : > { %v1323_v13 = vadd.f32 %v1322_v11, %v6310_v37 }
 0x20e   : > { %v4262_v15 = vpop.f32.mrb[26].mxu0  ;;  %4313 = vmatprep.mubr.f32.mxu1 %v1323_v13 }
 0x20f   : > { %v1338_v57 = vadd.f32 %v4262_v15, %v6312_v38  ;;  %v1332_v21 = vpop.f32.mrb[27].mxu0  ;;  %4314 = vmatmul.mubr.f32.gmra.mrb[24].mxu1 %v1328_v18  ;;  %v783_v18 = vpop.xlane.xlu0 %782 }
 0x210   : > { %v1333_v27 = vadd.f32 %v1332_v21, %v6314_v39  ;;  %v814_v15 = vmax.f32 %v783_v18, 1.0  ;;  %v1724_v18 = vld [vmem:[#allocation8 + $0xc0] sm:$0xff] }
 0x212   : > { %v4265_v48 = vpop.f32.mrb[28].mxu0  ;;  %4316 = vmatprep.mubr.f32.mxu1 %v1333_v27  ;;  %5327 = vrcp.f32 %v814_v15  ;;  %v1725_v15 = vld [vmem:[#allocation8 + $0xc8] sm:$0xff] }
 0x213   : > { %v1348_v45 = vadd.f32 %v4265_v48, %v6316_v40  ;;  %v1342_v17 = vpop.f32.mrb[29].mxu0  ;;  %4317 = vmatmul.mubr.f32.gmra.mrb[26].mxu1 %v1338_v57  ;;  %v1716_v57 = vld [vmem:[#allocation8 + $0x80] sm:$0xff]  ;;  %v1717_v48 = vld [vmem:[#allocation8 + $0x88] sm:$0xff] }
 0x214   : > { %v1343_v53 = vadd.f32 %v1342_v17, %v6318_v42  ;;  %v1718_v17 = vld [vmem:[#allocation8 + $0x90] sm:$0xff] }
 0x216   : > { %v4268_v55 = vpop.f32.mrb[30].mxu0  ;;  %4319 = vmatprep.mubr.f32.mxu1 %v1343_v53  ;;  %v4877_v53 = vpack.c.bf16 %v1717_v48, %v1716_v57  ;;  %v1727_v57 = vld [vmem:[#allocation8 + $0xd8] sm:$0xff] }
 0x217   : > { %v1358_v51 = vadd.f32 %v4268_v55, %v6320_v43  ;;  %v1352_v11 = vpop.f32.mrb[31].mxu0  ;;  %4320 = vmatmul.mubr.f32.gmra.mrb[28].mxu1 %v1348_v45  ;;  %v1719_v55 = vld [vmem:[#allocation8 + $0x98] sm:$0xff]  ;;  %v1720_v45 = vld [vmem:[#allocation8 + $0xa0] sm:$0xff] }
 0x218   : > { %v1353_v13 = vadd.f32 %v1352_v11, %v6322_v44  ;;  %v4881_v24 = vpack.c.bf16 %v1719_v55, %v1718_v17  ;;  %4878 = vmatprep.subr.bf16.mxu0 %v4877_v53  ;;  %v1722_v11 = vld [vmem:[#allocation8 + $0xb0] sm:$0xff]  ;;  %v1728_v17 = vld [vmem:[#allocation8 + $0xe0] sm:$0xff]  ;;  %v1729_v55 = vld [vmem:[#allocation8 + $0xe8] sm:$0xff] }
 0x219   : > { %4880 = vmatpush3.bf16.msra.mxu0 %v4877_v53  ;;  %v1726_v44 = vld [vmem:[#allocation8 + $0xd0] sm:$0xff] }
 0x21a   : > { %4322 = vmatprep.mubr.f32.mxu1 %v1353_v13  ;;  %4882 = vmatprep.subr.bf16.mxu0 %v4881_v24  ;;  %v1723_v13 = vld [vmem:[#allocation8 + $0xb8] sm:$0xff]  ;;  %v4897_v48 = vpack.c.bf16 %v1727_v57, %v1726_v44 }
 0x21b   : > { %4323 = vmatmul.mubr.f32.gmra.mrb[30].mxu1 %v1358_v51  ;;  %v4885_v51 = vpack.c.bf16 %v1721_v41, %v1720_v45  ;;  %v4901_v41 = vpack.c.bf16 %v1729_v55, %v1728_v17 }
 0x21c   : > { %v5328_v21 = vpop.eup %5327 }
 0x21d   : > { %v6341_v27 = vmul.f32 %v5328_v21, %v6202_v46  ;;  %4884 = vmatpush3.bf16.msra.mxu0 %v4881_v24  ;;  %v4889_v46 = vpack.c.bf16 %v1723_v13, %v1722_v11  ;;  %v4893_v21 = vpack.c.bf16 %v1725_v15, %v1724_v18  ;;  %v787_v24 = vpop.xlane.xlu0 %786 }
 0x21e   : > { %4886 = vmatprep.subr.bf16.mxu0 %v4885_v51  ;;  %v816_v40 = vmax.f32 %v787_v24, 1.0 }
 0x21f   : > { %4357 = vmatprep.mubr.f32.mxu1 %v6341_v27 }
 0x221   : > { %4888 = vmatpush3.bf16.msra.mxu0 %v4885_v51  ;;  %v785_v51 = vpop.xlane.xlu1 %784  ;;  %v789_v18 = vpop.xlane.xlu0 %788 }
 0x222   : > { %4890 = vmatprep.subr.bf16.mxu0 %v4889_v46 }
 0x225   : > { %4892 = vmatpush3.bf16.msra.mxu0 %v4889_v46  ;;  %v791_v44 = vpop.xlane.xlu1 %790 }
 0x226   : > { %4894 = vmatprep.subr.bf16.mxu0 %v4893_v21 }
 0x229   : > { %4896 = vmatpush3.bf16.msra.mxu0 %v4893_v21  ;;  %v795_v43 = vpop.xlane.xlu1 %794 }
 0x22a   : > { %4898 = vmatprep.subr.bf16.mxu0 %v4897_v48  ;;  %v820_v24 = vmax.f32 %v795_v43, 1.0 }
 0x22d   : > { %4900 = vmatpush3.bf16.msra.mxu0 %v4897_v48  ;;  %v793_v48 = vpop.xlane.xlu0 %792  ;;  %v799_v38 = vpop.xlane.xlu1 %798 }
 0x22e   : > { %4902 = vmatprep.subr.bf16.mxu0 %v4901_v41 }
 0x231   : > { %4904 = vmatpush3.bf16.msra.mxu0 %v4901_v41  ;;  %v797_v39 = vpop.xlane.xlu0 %796 }
 0x235   : > { %v801_v37 = vpop.xlane.xlu0 %800 }
 0x2d2   : > { %v4303_v53 = vpop.f32.mrb[16].mxu1 }
 0x2d3   : > { %v1443_v45 = vpop.f32.mrb[17].mxu1 }
 0x2d4   : > { %v4845_v11 = vpack.c.bf16 %v4303_v53, %v1443_v45  ;;  %v815_v45 = vmax.f32 %v785_v51, 1.0  ;;  %v819_v51 = vmax.f32 %v793_v48, 1.0 }
 0x2d6   : > { %v4306_v13 = vpop.f32.mrb[18].mxu1  ;;  %4846 = vmatprep.subr.bf16.mxu1 %v4845_v11  ;;  %5329 = vrcp.f32 %v815_v45 }
 0x2d7   : > { %v1453_v15 = vpop.f32.mrb[19].mxu1  ;;  %4848 = vmatpush3.bf16.msra.mxu1 %v4845_v11  ;;  %5331 = vrcp.f32 %v816_v40  ;;  %v822_v40 = vmax.f32 %v799_v38, 1.0 }
 0x2d8   : > { %v4849_v46 = vpack.c.bf16 %v4306_v13, %v1453_v15  ;;  %v817_v15 = vmax.f32 %v789_v18, 1.0  ;;  %v821_v18 = vmax.f32 %v797_v39, 1.0 }
 0x2da   : > { %v4309_v57 = vpop.f32.mrb[20].mxu1  ;;  %4850 = vmatprep.subr.bf16.mxu1 %v4849_v46  ;;  %5333 = vrcp.f32 %v817_v15 }
 0x2db   : > { %v1463_v21 = vpop.f32.mrb[21].mxu1  ;;  %4852 = vmatpush3.bf16.msra.mxu1 %v4849_v46 }
 0x2dc   : > { %v4853_v17 = vpack.c.bf16 %v4309_v57, %v1463_v21  ;;  %v818_v57 = vmax.f32 %v791_v44, 1.0  ;;  %v805_v44 = vpop.xlane.xlu0 %804 }
 0x2de   : > { %v4312_v55 = vpop.f32.mrb[22].mxu1  ;;  %4854 = vmatprep.subr.bf16.mxu1 %v4853_v17  ;;  %5335 = vrcp.f32 %v818_v57 }
 0x2df   : > { %v1473_v41 = vpop.f32.mrb[23].mxu1  ;;  %4856 = vmatpush3.bf16.msra.mxu1 %v4853_v17  ;;  %5337 = vrcp.f32 %v819_v51 }
 0x2e0   : > { %v4857_v53 = vpack.c.bf16 %v4312_v55, %v1473_v41  ;;  %5339 = vrcp.f32 %v820_v24  ;;  %v809_v51 = vpop.xlane.xlu0 %808 }
 0x2e1   : > { %5341 = vrcp.f32 %v821_v18 }
 0x2e2   : > { %v4315_v42 = vpop.f32.mrb[24].mxu1  ;;  %4858 = vmatprep.subr.bf16.mxu1 %v4857_v53  ;;  %5343 = vrcp.f32 %v822_v40 }
 0x2e3   : > { %v1483_v11 = vpop.f32.mrb[25].mxu1  ;;  %4860 = vmatpush3.bf16.msra.mxu1 %v4857_v53 }
 0x2e4   : > { %v4861_v13 = vpack.c.bf16 %v4315_v42, %v1483_v11  ;;  %v803_v42 = vpop.xlane.xlu1 %802  ;;  %v5330_v11 = vpop.eup %5329 }
 0x2e5   : > { %v5332_v15 = vpop.eup %5331  ;;  %v6345_v43 = vmul.f32 %v5330_v11, %v6210_v49 }
 0x2e6   : > { %v4318_v46 = vpop.f32.mrb[26].mxu1  ;;  %4862 = vmatprep.subr.bf16.mxu1 %v4861_v13  ;;  %v5334_v39 = vpop.eup %5333 }
 0x2e7   : > { %v1493_v21 = vpop.f32.mrb[27].mxu1  ;;  %4864 = vmatpush3.bf16.msra.mxu1 %v4861_v13 }
 0x2e8   : > { %v4865_v17 = vpack.c.bf16 %v4318_v46, %v1493_v21  ;;  %v823_v46 = vmax.f32 %v801_v37, 1.0  ;;  %v807_v57 = vpop.xlane.xlu1 %806  ;;  %v824_v21 = vmax.f32 %v803_v42, 1.0  ;;  %v5336_v38 = vpop.eup %5335  ;;  %v6352_v37 = vmul.f32 %v5334_v39, %v6226_v54 }
 0x2e9   : > { %v826_v24 = vmax.f32 %v807_v57, 1.0  ;;  %v6356_v49 = vmul.f32 %v5336_v38, %v6220_v52  ;;  %v813_v54 = vpop.xlane.xlu0 %812 }
 0x2ea   : > { %v4321_v55 = vpop.f32.mrb[28].mxu1  ;;  %4866 = vmatprep.subr.bf16.mxu1 %v4865_v17  ;;  %5345 = vrcp.f32 %v823_v46  ;;  %v829_v11 = vmax.f32 %v813_v54, 1.0  ;;  %v2028_v54 = vld [vmem:[#allocation7 + $0xa8] sm:$0xff] }
 0x2eb   : > { %v1503_v41 = vpop.f32.mrb[29].mxu1  ;;  %4868 = vmatpush3.bf16.msra.mxu1 %v4865_v17  ;;  %v6348_v17 = vmul.f32 %v5332_v15, %v6213_v50  ;;  %5347 = vrcp.f32 %v824_v21 }
 0x2ec   : > { %v4869_v53 = vpack.c.bf16 %v4321_v55, %v1503_v41  ;;  %v825_v55 = vmax.f32 %v805_v44, 1.0  ;;  %v5338_v41 = vpop.eup %5337  ;;  %v811_v42 = vpop.xlane.xlu1 %810 }
 0x2ed   : > { %v5340_v50 = vpop.eup %5339  ;;  %v6360_v18 = vmul.f32 %v5338_v41, %v6238_v58  ;;  %v2024_v41 = vld [vmem:[#allocation7 + $0x88] sm:$0xff] }
 0x2ee   : > { %v4324_v45 = vpop.f32.mrb[30].mxu1  ;;  %4870 = vmatprep.subr.bf16.mxu1 %v4869_v53  ;;  %5349 = vrcp.f32 %v825_v55  ;;  %v5342_v40 = vpop.eup %5341  ;;  %v6364_v44 = vmul.f32 %v5340_v50, %v6232_v56  ;;  %v1731_v55 = vld [vmem:[#allocation8 + $0xf8] sm:$0xff] }
 0x2ef   : > { %v1513_v13 = vpop.f32.mrb[31].mxu1  ;;  %4872 = vmatpush3.bf16.msra.mxu1 %v4869_v53  ;;  %v827_v53 = vmax.f32 %v809_v51, 1.0  ;;  %5351 = vrcp.f32 %v826_v24  ;;  %v5344_v52 = vpop.eup %5343 }
 0x2f0   : > { %v4873_v48 = vpack.c.bf16 %v4324_v45, %v1513_v13  ;;  %v828_v45 = vmax.f32 %v811_v42, 1.0  ;;  %v6368_v13 = vmul.f32 %v5342_v40, %v6250_v14  ;;  %v6372_v58 = vmul.f32 %v5344_v52, %v6244_v12  ;;  %v2025_v42 = vld [vmem:[#allocation7 + $0x90] sm:$0xff]  ;;  %v2030_v52 = vld [vmem:[#allocation7 + $0xb8] sm:$0xff] }
 0x2f1   : > { %5353 = vrcp.f32 %v827_v53  ;;  %v2029_v40 = vld [vmem:[#allocation7 + $0xb0] sm:$0xff] }
 0x2f2   : > { %4874 = vmatprep.subr.bf16.mxu1 %v4873_v48  ;;  %5355 = vrcp.f32 %v828_v45  ;;  %v2027_v45 = vld [vmem:[#allocation7 + $0xa0] sm:$0xff] }
 0x2f3   : > { %4876 = vmatpush3.bf16.msra.mxu1 %v4873_v48  ;;  %5357 = vrcp.f32 %v829_v11  ;;  %v4953_v11 = vpack.c.bf16 %v2030_v52, %v2029_v40 }
 0x2f4   : > { %v5346_v15 = vpop.eup %5345 }
 0x2f5   : > { %v5348_v48 = vpop.eup %5347  ;;  %v6376_v56 = vmul.f32 %v5346_v15, %v6262_v20  ;;  %v2031_v15 = vld [vmem:[#allocation7 + $0xc0] sm:$0xff] }
 0x2f6   : > { %4358 = vmatmul.mubr.f32.vlgmr.msra.gmra.mrb[0].mxu1 %v6345_v43  ;;  %v6380_v57 = vmul.f32 %v5348_v48, %v6256_v16  ;;  %v2032_v48 = vld [vmem:[#allocation7 + $0xc8] sm:$0xff] }
 0x2f7   : > { %4360 = vmatprep.mubr.f32.mxu1 %v6348_v17 }
 0x2f8   : > { %v5350_v46 = vpop.eup %5349 }
 0x2f9   : > { %v5352_v14 = vpop.eup %5351  ;;  %v6384_v21 = vmul.f32 %v5350_v46, %v6273_v26  ;;  %v4957_v46 = vpack.c.bf16 %v2032_v48, %v2031_v15 }
 0x2fa   : > { %4361 = vmatmul.mubr.f32.gmra.mrb[2].mxu1 %v6352_v37  ;;  %v6388_v39 = vmul.f32 %v5352_v14, %v6268_v25  ;;  %v1730_v25 = vld [vmem:[#allocation8 + $0xf0] sm:$0xff] }
 0x2fb   : > { %4363 = vmatprep.mubr.f32.mxu1 %v6356_v49  ;;  %v5354_v12 = vpop.eup %5353  ;;  %v4905_v24 = vpack.c.bf16 %v1731_v55, %v1730_v25  ;;  %v2033_v14 = vld [vmem:[#allocation7 + $0xd0] sm:$0xff]  ;;  %v2036_v25 = vld [vmem:[#allocation7 + $0xe8] sm:$0xff] }
 0x2fc   : > { %v5356_v20 = vpop.eup %5355  ;;  %v6392_v38 = vmul.f32 %v5354_v12, %v6283_v22  ;;  %v2023_v22 = vld [vmem:[#allocation7 + $0x80] sm:$0xff]  ;;  %v2034_v12 = vld [vmem:[#allocation7 + $0xd8] sm:$0xff] }
 0x2fd   : > { %v5358_v16 = vpop.eup %5357  ;;  %v6396_v51 = vmul.f32 %v5356_v20, %v6279_v47  ;;  %4906 = vmatprep.subr.bf16.mxu0 %v4905_v24  ;;  %v4941_v50 = vpack.c.bf16 %v2024_v41, %v2023_v22  ;;  %v2026_v47 = vld [vmem:[#allocation7 + $0x98] sm:$0xff]  ;;  %v4961_v20 = vpack.c.bf16 %v2034_v12, %v2033_v14 }
 0x2fe   : > { %4364 = vmatmul.mubr.f32.gmra.mrb[4].mxu1 %v6360_v18  ;;  %v6400_v26 = vmul.f32 %v5358_v16, %v6289_v30  ;;  %4908 = vmatpush3.bf16.msra.mxu0 %v4905_v24  ;;  %v4945_v53 = vpack.c.bf16 %v2026_v47, %v2025_v42  ;;  %v4949_v30 = vpack.c.bf16 %v2028_v54, %v2027_v45  ;;  %v2035_v16 = vld [vmem:[#allocation7 + $0xe0] sm:$0xff] }
 0x2ff   : > { %4366 = vmatprep.mubr.f32.mxu1 %v6364_v44  ;;  %4942 = vmatprep.subr.bf16.mxu1 %v4941_v50  ;;  %v4965_v55 = vpack.c.bf16 %v2036_v25, %v2035_v16 }
 0x300   : > { %4944 = vmatpush3.bf16.msra.mxu1 %v4941_v50 }
 0x301   : > { %4946 = vmatprep.subr.bf16.mxu1 %v4945_v53 }
 0x302   : > { %4367 = vmatmul.mubr.f32.gmra.mrb[6].mxu1 %v6368_v13 }
 0x303   : > { %4369 = vmatprep.mubr.f32.mxu1 %v6372_v58 }
 0x304   : > { %4948 = vmatpush3.bf16.msra.mxu1 %v4945_v53 }
 0x305   : > { %4950 = vmatprep.subr.bf16.mxu1 %v4949_v30 }
 0x306   : > { %4370 = vmatmul.mubr.f32.gmra.mrb[8].mxu1 %v6376_v56 }
 0x307   : > { %4372 = vmatprep.mubr.f32.mxu1 %v6380_v57 }
 0x308   : > { %4952 = vmatpush3.bf16.msra.mxu1 %v4949_v30 }
 0x309   : > { %4954 = vmatprep.subr.bf16.mxu1 %v4953_v11 }
 0x30a   : > { %4373 = vmatmul.mubr.f32.gmra.mrb[10].mxu1 %v6384_v21 }
 0x30b   : > { %4375 = vmatprep.mubr.f32.mxu1 %v6388_v39 }
 0x30c   : > { %4956 = vmatpush3.bf16.msra.mxu1 %v4953_v11 }
 0x30d   : > { %4958 = vmatprep.subr.bf16.mxu1 %v4957_v46 }
 0x30e   : > { %4376 = vmatmul.mubr.f32.gmra.mrb[12].mxu1 %v6392_v38 }
 0x30f   : > { %4378 = vmatprep.mubr.f32.mxu1 %v6396_v51 }
 0x310   : > { %4960 = vmatpush3.bf16.msra.mxu1 %v4957_v46 }
 0x311   : > { %4962 = vmatprep.subr.bf16.mxu1 %v4961_v20 }
 0x312   : > { %4379 = vmatmul.mubr.f32.gmra.mrb[14].mxu1 %v6400_v26 }
 0x314   : > { %4964 = vmatpush3.bf16.msra.mxu1 %v4961_v20 }
 0x315   : > { %4966 = vmatprep.subr.bf16.mxu1 %v4965_v55 }
 0x318   : > { %4968 = vmatpush3.bf16.msra.mxu1 %v4965_v55 }
 0x319   : > { %4970 = vmatprep.subr.bf16.mxu1 %v4969_v61 }
 0x31c   : > { %4972 = vmatpush3.bf16.msra.mxu1 %v4969_v61  ;;  %v2399_v61 = vld [vmem:[%s7171_s7 + $0x30] sm:$0xff] }
 0x3c9   : > { %v4359_v24 = vpop.f32.mrb[0].mxu1 }
 0x3ca   : > { %vm1668_vm13 = vcmp.ge.f32.partialorder %v4359_v24, 0.0  ;;  %v1684_v22 = vmul.f32 0.22916667, %v4359_v24  ;;  %v1588_v41 = vpop.f32.mrb[1].mxu1 }
 0x3cb   : > { %vm1667_vm12 = vcmp.ge.f32.partialorder %v1588_v41, 0.0  ;;  %v1683_v42 = vmul.f32 0.22916667, %v1588_v41 }
 0x3cc   : > { %v1700_v50 = vsel %vm1668_vm13, %v4359_v24, %v1684_v22 }
 0x3cd   : > { %v4362_v47 = vpop.f32.mrb[2].mxu1  ;;  %v1699_v53 = vsel %vm1667_vm12, %v1588_v41, %v1683_v42 }
 0x3ce   : > { %vm1670_vm14 = vcmp.ge.f32.partialorder %v4362_v47, 0.0  ;;  %v1686_v45 = vmul.f32 0.22916667, %v4362_v47  ;;  %v1598_v54 = vpop.f32.mrb[3].mxu1  ;;  %4413 = vmatprep.mubr.f32.mxu0 %v1699_v53  ;;  %v4909_v30 = vpack.c.bf16 %v1700_v50, %v1699_v53 }
 0x3cf   : > { %vm1669_vm11 = vcmp.ge.f32.partialorder %v1598_v54, 0.0  ;;  %v1685_v40 = vmul.f32 0.22916667, %v1598_v54  ;;  %4414 = vmatmul.mubr.f32.vlgmr.msra.gmra.mrb[32].mxu0 %v1700_v50 }
 0x3d0   : > { %4910 = vmatprep.subr.bf16.mxu0 %v4909_v30  ;;  %v1702_v52 = vsel %vm1670_vm14, %v4362_v47, %v1686_v45 }
 0x3d1   : > { %v4365_v11 = vpop.f32.mrb[4].mxu1  ;;  %4912 = vmatpush3.bf16.msra.mxu0 %v4909_v30  ;;  %v1701_v15 = vsel %vm1669_vm11, %v1598_v54, %v1685_v40 }
 0x3d2   : > { %vm1672_vm15 = vcmp.ge.f32.partialorder %v4365_v11, 0.0  ;;  %v1688_v48 = vmul.f32 0.22916667, %v4365_v11  ;;  %v1608_v46 = vpop.f32.mrb[5].mxu1  ;;  %4416 = vmatprep.mubr.f32.mxu0 %v1701_v15  ;;  %v4913_v14 = vpack.c.bf16 %v1702_v52, %v1701_v15 }
 0x3d3   : > { %vm1671_vm13 = vcmp.ge.f32.partialorder %v1608_v46, 0.0  ;;  %v1687_v12 = vmul.f32 0.22916667, %v1608_v46  ;;  %4417 = vmatmul.mubr.f32.gmra.mrb[34].mxu0 %v1702_v52 }
 0x3d4   : > { %4914 = vmatprep.subr.bf16.mxu0 %v4913_v14  ;;  %v1704_v20 = vsel %vm1672_vm15, %v4365_v11, %v1688_v48 }
 0x3d5   : > { %v4368_v16 = vpop.f32.mrb[6].mxu1  ;;  %4916 = vmatpush3.bf16.msra.mxu0 %v4913_v14  ;;  %v1703_v25 = vsel %vm1671_vm13, %v1608_v46, %v1687_v12 }
 0x3d6   : > { %vm1674_vm12 = vcmp.ge.f32.partialorder %v4368_v16, 0.0  ;;  %v1690_v55 = vmul.f32 0.22916667, %v4368_v16  ;;  %v1618_v24 = vpop.f32.mrb[7].mxu1  ;;  %4419 = vmatprep.mubr.f32.mxu0 %v1703_v25  ;;  %v4917_v22 = vpack.c.bf16 %v1704_v20, %v1703_v25 }
 0x3d7   : > { %vm1673_vm14 = vcmp.ge.f32.partialorder %v1618_v24, 0.0  ;;  %v1689_v41 = vmul.f32 0.22916667, %v1618_v24  ;;  %4420 = vmatmul.mubr.f32.gmra.mrb[36].mxu0 %v1704_v20 }
 0x3d8   : > { %4918 = vmatprep.subr.bf16.mxu0 %v4917_v22  ;;  %v1706_v42 = vsel %vm1674_vm12, %v4368_v16, %v1690_v55 }
 0x3d9   : > { %v4371_v50 = vpop.f32.mrb[8].mxu1  ;;  %4920 = vmatpush3.bf16.msra.mxu0 %v4917_v22  ;;  %v1705_v47 = vsel %vm1673_vm14, %v1618_v24, %v1689_v41 }
 0x3da   : > { %vm1676_vm11 = vcmp.ge.f32.partialorder %v4371_v50, 0.0  ;;  %v1692_v53 = vmul.f32 0.22916667, %v4371_v50  ;;  %v1628_v45 = vpop.f32.mrb[9].mxu1  ;;  %4422 = vmatprep.mubr.f32.mxu0 %v1705_v47  ;;  %v4921_v54 = vpack.c.bf16 %v1706_v42, %v1705_v47 }
 0x3db   : > { %vm1675_vm15 = vcmp.ge.f32.partialorder %v1628_v45, 0.0  ;;  %v1691_v30 = vmul.f32 0.22916667, %v1628_v45  ;;  %4423 = vmatmul.mubr.f32.gmra.mrb[38].mxu0 %v1706_v42 }
 0x3dc   : > { %4922 = vmatprep.subr.bf16.mxu0 %v4921_v54  ;;  %v1708_v40 = vsel %vm1676_vm11, %v4371_v50, %v1692_v53 }
 0x3dd   : > { %v4374_v52 = vpop.f32.mrb[10].mxu1  ;;  %4924 = vmatpush3.bf16.msra.mxu0 %v4921_v54  ;;  %v1707_v11 = vsel %vm1675_vm15, %v1628_v45, %v1691_v30 }
 0x3de   : > { %vm1678_vm13 = vcmp.ge.f32.partialorder %v4374_v52, 0.0  ;;  %v1694_v15 = vmul.f32 0.22916667, %v4374_v52  ;;  %v1638_v48 = vpop.f32.mrb[11].mxu1  ;;  %4425 = vmatprep.mubr.f32.mxu0 %v1707_v11  ;;  %v4925_v46 = vpack.c.bf16 %v1708_v40, %v1707_v11  ;;  %v7222_v11 = vmov 1.0  }
 0x3df   : > { %vm1677_vm12 = vcmp.ge.f32.partialorder %v1638_v48, 0.0  ;;  %v1693_v14 = vmul.f32 0.22916667, %v1638_v48  ;;  %4426 = vmatmul.mubr.f32.gmra.mrb[40].mxu0 %v1708_v40 }
 0x3e0   : > { %4926 = vmatprep.subr.bf16.mxu0 %v4925_v46  ;;  %v1710_v12 = vsel %vm1678_vm13, %v4374_v52, %v1694_v15  ;;  %v7228_v15 = vld [vmem:[#allocation17_spill] sm:$0xff] }
 0x3e1   : > { %v4377_v20 = vpop.f32.mrb[12].mxu1  ;;  %4928 = vmatpush3.bf16.msra.mxu0 %v4925_v46  ;;  %v1709_v16 = vsel %vm1677_vm12, %v1638_v48, %v1693_v14  ;;  %v7229_v46 = vld [vmem:[#allocation18_spill] sm:$0xff] }
 0x3e2   : > { %vm1680_vm14 = vcmp.ge.f32.partialorder %v4377_v20, 0.0  ;;  %v1696_v25 = vmul.f32 0.22916667, %v4377_v20  ;;  %v1648_v55 = vpop.f32.mrb[13].mxu1  ;;  %4428 = vmatprep.mubr.f32.mxu0 %v1709_v16  ;;  %v4929_v24 = vpack.c.bf16 %v1710_v12, %v1709_v16  ;;  %v7231_v16 = vld [vmem:[#allocation20_spill] sm:$0xff] }
 0x3e3   : > { %vm1679_vm11 = vcmp.ge.f32.partialorder %v1648_v55, 0.0  ;;  %v1695_v22 = vmul.f32 0.22916667, %v1648_v55  ;;  %4429 = vmatmul.mubr.f32.gmra.mrb[42].mxu0 %v1710_v12  ;;  %v7230_v12 = vld [vmem:[#allocation19_spill] sm:$0xff] }
 0x3e4   : > { %4930 = vmatprep.subr.bf16.mxu0 %v4929_v24  ;;  %v1712_v41 = vsel %vm1680_vm14, %v4377_v20, %v1696_v25 }
 0x3e5   : > { %v4380_v42 = vpop.f32.mrb[14].mxu1  ;;  %4932 = vmatpush3.bf16.msra.mxu0 %v4929_v24  ;;  %v1711_v50 = vsel %vm1679_vm11, %v1648_v55, %v1695_v22  ;;  %v7232_v55 = vld [vmem:[#allocation21_spill] sm:$0xff]  ;;  %v7233_v22 = vld [vmem:[#allocation22_spill] sm:$0xff] }
 0x3e6   : > { %vm1682_vm15 = vcmp.ge.f32.partialorder %v4380_v42, 0.0  ;;  %v1698_v47 = vmul.f32 0.22916667, %v4380_v42  ;;  %v1658_v53 = vpop.f32.mrb[15].mxu1  ;;  %4431 = vmatprep.mubr.f32.mxu0 %v1711_v50  ;;  %v4933_v45 = vpack.c.bf16 %v1712_v41, %v1711_v50  ;;  %v7234_v50 = vld [vmem:[#allocation23_spill] sm:$0xff] }
 0x3e7   : > { %vm1681_vm13 = vcmp.ge.f32.partialorder %v1658_v53, 0.0  ;;  %v1697_v54 = vmul.f32 0.22916667, %v1658_v53  ;;  %4432 = vmatmul.mubr.f32.gmra.mrb[44].mxu0 %v1712_v41 }
 0x3e8   : > { %4934 = vmatprep.subr.bf16.mxu0 %v4933_v45  ;;  %v1714_v30 = vsel %vm1682_vm15, %v4380_v42, %v1698_v47 }
 0x3e9   : > { %4936 = vmatpush3.bf16.msra.mxu0 %v4933_v45  ;;  %v1713_v40 = vsel %vm1681_vm13, %v1658_v53, %v1697_v54  ;;  %v7235_v53 = vmov 0.0   ;;  %v2394_v45 = vld [vmem:[%s7171_s7 + $0x8] sm:$0xff]  ;;  %v2397_v54 = vld [vmem:[%s7171_s7 + $0x20] sm:$0xff] }
 0x3ea   : > { %4434 = vmatprep.mubr.f32.mxu0 %v1713_v40  ;;  %v4937_v52 = vpack.c.bf16 %v1714_v30, %v1713_v40  ;;  %v5005_v40 = vpack.c.bf16 %v2397_v54, %v2394_v45 }
 0x3eb   : > { %4435 = vmatmul.mubr.f32.gmra.mrb[46].mxu0 %v1714_v30  ;;  %v2393_v30 = vld [vmem:[%s7171_s7] sm:$0xff] }
 0x3ec   : > { %4938 = vmatprep.subr.bf16.mxu0 %v4937_v52  ;;  %4469 = vmatprep.mubr.msk.f32.mxu0 %vm569_vm0, %v7222_v11  ;;  %vm7223_vm0 = vcmp.eq.s32.totalorder %v6117_v5, %v5966_v19 }
 0x3ed   : > { %4940 = vmatpush3.bf16.msra.mxu0 %v4937_v52  ;;  %v2396_v52 = vld [vmem:[%s7171_s7 + $0x18] sm:$0xff]  ;;  %5006 = vmatprep.subr.bf16.mxu1 %v5005_v40 }
 0x3f0   : > { %4470 = vmatmul.mubr.msk.f32.vlgmr.msra.gmra.mrb[48].mxu0 %vm570_vm1, %v7222_v11  ;;  %vm7224_vm1 = vcmp.eq.s32.totalorder %v6135_v8, %v5966_v19 }
 0x3f1   : > { %4472 = vmatprep.mubr.msk.f32.mxu0 %vm571_vm2, %v7222_v11  ;;  %vm7225_vm2 = vcmp.eq.s32.totalorder %v6133_v7, %v5966_v19 }
 0x3f4   : > { %4473 = vmatmul.mubr.msk.f32.gmra.mrb[50].mxu0 %vm572_vm3, %v7222_v11  ;;  %vm7226_vm3 = vcmp.eq.s32.totalorder %v6149_v9, %v5966_v19 }
 0x3f5   : > { %4475 = vmatprep.mubr.msk.f32.mxu0 %vm573_vm4, %v7222_v11  ;;  %vm7227_vm4 = vcmp.eq.s32.totalorder %v6155_v10, %v5966_v19 }
 0x3f8   : > { %4476 = vmatmul.mubr.msk.f32.gmra.mrb[52].mxu0 %vm574_vm5, %v7222_v11 }
 0x3f9   : > { %4478 = vmatprep.mubr.msk.f32.mxu0 %vm575_vm6, %v7222_v11 }
 0x3fc   : > { %4479 = vmatmul.mubr.msk.f32.gmra.mrb[54].mxu0 %vm576_vm7, %v7222_v11 }
 0x3fd   : > { %4481 = vmatprep.mubr.msk.f32.mxu0 %vm577_vm8, %v7222_v11 }
 0x400   : > { %4482 = vmatmul.mubr.msk.f32.gmra.mrb[56].mxu0 %vm578_vm9, %v7222_v11 }
 0x401   : > { %4484 = vmatprep.mubr.msk.f32.mxu0 %vm579_vm10, %v7222_v11 }
 0x404   : > { %4485 = vmatmul.mubr.msk.f32.gmra.mrb[58].mxu0 %vm7223_vm0, %v7222_v11 }
 0x405   : > { %4487 = vmatprep.mubr.msk.f32.mxu0 %vm7224_vm1, %v7222_v11 }
 0x408   : > { %4488 = vmatmul.mubr.msk.f32.gmra.mrb[60].mxu0 %vm7225_vm2, %v7222_v11 }
 0x409   : > { %4490 = vmatprep.mubr.msk.f32.mxu0 %vm7226_vm3, %v7222_v11 }
 0x40c   : > { %4491 = vmatmul.mubr.msk.f32.gmra.mrb[62].mxu0 %vm7227_vm4, %v7222_v11  ;;  %v5007_v11 = vpack.c.bf16 %v2396_v52, %v2393_v30 }
 0x40d   : > { %4581 = vmatprep.mubr.f32.mxu0 %v6341_v27 }
 0x4c3   : > { %v4471_v62 = vpop.f32.mrb[48].mxu0 }
 0x4c4   : > { %v1949_v63 = vadd.f32 %v4471_v62, %v6292_v23  ;;  %v1943_v0 = vpop.f32.mrb[49].mxu0  ;;  %v5009_v62 = vpack.c.bf16 %v2403_v60, %v2400_v59 }
 0x4c5   : > { %v1944_v1 = vadd.f32 %v1943_v0, %v6294_v28 }
 0x4c7   : > { %v4474_v2 = vpop.f32.mrb[50].mxu0  ;;  %4525 = vmatprep.mubr.f32.mxu1 %v1944_v1  ;;  %v2406_v1 = vld [vmem:[%s7171_s7 + $0x68] sm:$0xff] }
 0x4c8   : > { %v1959_v3 = vadd.f32 %v4474_v2, %v6296_v31  ;;  %v1953_v4 = vpop.f32.mrb[51].mxu0  ;;  %4526 = vmatmul.mubr.f32.vlgmr.msra.gmra.mrb[32].mxu1 %v1949_v63  ;;  %v2402_v63 = vld [vmem:[%s7171_s7 + $0x48] sm:$0xff]  ;;  %v2409_v2 = vld [vmem:[%s7171_s7 + $0x80] sm:$0xff] }
 0x4c9   : > { %v1954_v19 = vadd.f32 %v1953_v4, %v6298_v29  ;;  %5008 = vmatpush1.bf16.msra.mxu1 %v5007_v11  ;;  %v5011_v0 = vpack.c.bf16 %v2402_v63, %v2399_v61  ;;  %v2405_v4 = vld [vmem:[%s7171_s7 + $0x60] sm:$0xff] }
 0x4ca   : > { %5010 = vmatprep.subr.bf16.mxu1 %v5009_v62 }
 0x4cb   : > { %v4477_v5 = vpop.f32.mrb[52].mxu0  ;;  %4528 = vmatprep.mubr.f32.mxu1 %v1954_v19  ;;  %v2408_v19 = vld [vmem:[%s7171_s7 + $0x78] sm:$0xff] }
 0x4cc   : > { %v1969_v6 = vadd.f32 %v4477_v5, %v6300_v32  ;;  %v1963_v7 = vpop.f32.mrb[53].mxu0  ;;  %4529 = vmatmul.mubr.f32.gmra.mrb[34].mxu1 %v1959_v3  ;;  %v5013_v3 = vpack.c.bf16 %v2409_v2, %v2406_v1  ;;  %v2412_v5 = vld [vmem:[%s7171_s7 + $0x98] sm:$0xff] }
 0x4cd   : > { %v1964_v8 = vadd.f32 %v1963_v7, %v6302_v33  ;;  %5012 = vmatpush1.bf16.msra.mxu1 %v5011_v0  ;;  %v5015_v7 = vpack.c.bf16 %v2408_v19, %v2405_v4  ;;  %v2395_v4 = vld [vmem:[%s7171_s7 + $0x10] sm:$0xff]  ;;  %v2398_v19 = vld [vmem:[%s7171_s7 + $0x28] sm:$0xff] }
 0x4ce   : > { %5014 = vmatprep.subr.bf16.mxu1 %v5013_v3 }
 0x4cf   : > { %v4480_v9 = vpop.f32.mrb[54].mxu0  ;;  %4531 = vmatprep.mubr.f32.mxu1 %v1964_v8 }
 0x4d0   : > { %v1979_v10 = vadd.f32 %v4480_v9, %v6304_v34  ;;  %v1973_v23 = vpop.f32.mrb[55].mxu0  ;;  %4532 = vmatmul.mubr.f32.gmra.mrb[36].mxu1 %v1969_v6  ;;  %v2415_v6 = vld [vmem:[%s7171_s7 + $0xb0] sm:$0xff] }
 0x4d1   : > { %v1974_v28 = vadd.f32 %v1973_v23, %v6306_v35  ;;  %v5017_v8 = vpack.c.bf16 %v2415_v6, %v2412_v5  ;;  %v2411_v9 = vld [vmem:[%s7171_s7 + $0x90] sm:$0xff]  ;;  %v2418_v23 = vld [vmem:[%s7171_s7 + $0xc8] sm:$0xff]  ;;  %5016 = vmatpush1.bf16.msra.mxu1 %v5015_v7 }
 0x4d3   : > { %v4483_v31 = vpop.f32.mrb[56].mxu0  ;;  %4534 = vmatprep.mubr.f32.mxu1 %v1974_v28  ;;  %v2421_v28 = vld [vmem:[%s7171_s7 + $0xe0] sm:$0xff]  ;;  %5018 = vmatprep.subr.bf16.mxu1 %v5017_v8  ;;  %v5037_v8 = vpack.c.bf16 %v2398_v19, %v2395_v4 }
 0x4d4   : > { %v1989_v29 = vadd.f32 %v4483_v31, %v6308_v36  ;;  %v1983_v27 = vpop.f32.mrb[57].mxu0  ;;  %4535 = vmatmul.mubr.f32.gmra.mrb[38].mxu1 %v1979_v10  ;;  %v2414_v10 = vld [vmem:[%s7171_s7 + $0xa8] sm:$0xff] }
 0x4d5   : > { %v1984_v32 = vadd.f32 %v1983_v27, %v7228_v15  ;;  %v5019_v31 = vpack.c.bf16 %v2414_v10, %v2411_v9  ;;  %v2417_v27 = vld [vmem:[%s7171_s7 + $0xc0] sm:$0xff]  ;;  %v2420_v15 = vld [vmem:[%s7171_s7 + $0xd8] sm:$0xff] }
 0x4d6   : > { %v2401_v9 = vld [vmem:[%s7171_s7 + $0x40] sm:$0xff]  ;;  %v2404_v10 = vld [vmem:[%s7171_s7 + $0x58] sm:$0xff] }
 0x4d7   : > { %v4486_v48 = vpop.f32.mrb[58].mxu0  ;;  %4537 = vmatprep.mubr.f32.mxu1 %v1984_v32  ;;  %v2424_v32 = vld [vmem:[%s7171_s7 + $0xf8] sm:$0xff]  ;;  %5020 = vmatpush1.bf16.msra.mxu1 %v5019_v31  ;;  %v2410_v31 = vld [vmem:[%s7171_s7 + $0x88] sm:$0xff] }
 0x4d8   : > { %v1999_v33 = vadd.f32 %v4486_v48, %v7229_v46  ;;  %v1993_v14 = vpop.f32.mrb[59].mxu0  ;;  %4538 = vmatmul.mubr.f32.gmra.mrb[40].mxu1 %v1989_v29  ;;  %v5021_v29 = vpack.c.bf16 %v2421_v28, %v2418_v23  ;;  %v2427_v48 = vld [vmem:[%s7171_s7 + $0x110] sm:$0xff]  ;;  %v5023_v46 = vpack.c.bf16 %v2420_v15, %v2417_v27  ;;  %v5041_v23 = vpack.c.bf16 %v2404_v10, %v2401_v9  ;;  %v2413_v27 = vld [vmem:[%s7171_s7 + $0xa0] sm:$0xff]  ;;  %v2416_v15 = vld [vmem:[%s7171_s7 + $0xb8] sm:$0xff] }
 0x4d9   : > { %v1994_v34 = vadd.f32 %v1993_v14, %v7230_v12  ;;  %v2423_v14 = vld [vmem:[%s7171_s7 + $0xf0] sm:$0xff]  ;;  %v2426_v12 = vld [vmem:[%s7171_s7 + $0x108] sm:$0xff] }
 0x4da   : > { %5022 = vmatprep.subr.bf16.mxu1 %v5021_v29  ;;  %v2407_v28 = vld [vmem:[%s7171_s7 + $0x70] sm:$0xff]  ;;  %v2781_v9 = vld [vmem:[%s7172_s8 + $0x88] sm:$0xff] }
 0x4db   : > { %v4489_v20 = vpop.f32.mrb[60].mxu0  ;;  %4540 = vmatprep.mubr.f32.mxu1 %v1994_v34  ;;  %v2430_v34 = vld [vmem:[%s7171_s7 + $0x128] sm:$0xff]  ;;  %5024 = vmatpush1.bf16.msra.mxu1 %v5023_v46  ;;  %v5045_v29 = vpack.c.bf16 %v2410_v31, %v2407_v28  ;;  %v2783_v31 = vld [vmem:[%s7172_s8 + $0x98] sm:$0xff] }
 0x4dc   : > { %v2009_v35 = vadd.f32 %v4489_v20, %v7231_v16  ;;  %v2003_v25 = vpop.f32.mrb[61].mxu0  ;;  %4541 = vmatmul.mubr.f32.gmra.mrb[42].mxu1 %v1999_v33  ;;  %v5025_v33 = vpack.c.bf16 %v2427_v48, %v2424_v32  ;;  %v2433_v20 = vld [vmem:[%s7171_s7 + $0x140] sm:$0xff]  ;;  %v5027_v16 = vpack.c.bf16 %v2426_v12, %v2423_v14  ;;  %v2422_v32 = vld [vmem:[%s7171_s7 + $0xe8] sm:$0xff]  ;;  %v2428_v48 = vld [vmem:[%s7171_s7 + $0x118] sm:$0xff] }
 0x4dd   : > { %v2004_v36 = vadd.f32 %v2003_v25, %v7232_v55  ;;  %v2429_v25 = vld [vmem:[%s7171_s7 + $0x120] sm:$0xff]  ;;  %v2432_v55 = vld [vmem:[%s7171_s7 + $0x138] sm:$0xff]  ;;  %v2434_v46 = vld [vmem:[%s7171_s7 + $0x148] sm:$0xff] }
 0x4de   : > { %5026 = vmatprep.subr.bf16.mxu1 %v5025_v33  ;;  %v2765_v14 = vld [vmem:[%s7172_s8 + $0x8] sm:$0xff]  ;;  %v2768_v12 = vld [vmem:[%s7172_s8 + $0x20] sm:$0xff] }
 0x4df   : > { %v4492_v24 = vpop.f32.mrb[62].mxu0  ;;  %4543 = vmatprep.mubr.f32.mxu1 %v2004_v36  ;;  %5028 = vmatpush1.bf16.msra.mxu1 %v5027_v16  ;;  %v5031_v36 = vpack.c.bf16 %v2432_v55, %v2429_v25  ;;  %v2769_v16 = vld [vmem:[%s7172_s8 + $0x28] sm:$0xff]  ;;  %v2764_v25 = vld [vmem:[%s7172_s8] sm:$0xff]  ;;  %v2767_v55 = vld [vmem:[%s7172_s8 + $0x18] sm:$0xff] }
 0x4e0   : > { %v2019_v41 = vadd.f32 %v4492_v24, %v7233_v22  ;;  %v2013_v42 = vpop.f32.mrb[63].mxu0  ;;  %4544 = vmatmul.mubr.f32.gmra.mrb[44].mxu1 %v2009_v35  ;;  %v5029_v35 = vpack.c.bf16 %v2433_v20, %v2430_v34  ;;  %v5069_v34 = vpack.c.bf16 %v2768_v12, %v2765_v14  ;;  %v2766_v20 = vld [vmem:[%s7172_s8 + $0x10] sm:$0xff]  ;;  %v2791_v12 = vld [vmem:[%s7172_s8 + $0xd8] sm:$0xff] }
 0x4e1   : > { %v2014_v47 = vadd.f32 %v2013_v42, %v7234_v50 }
 0x4e2   : > { %5030 = vmatprep.subr.bf16.mxu1 %v5029_v35  ;;  %v5101_v35 = vpack.c.bf16 %v2769_v16, %v2766_v20  ;;  %v2793_v20 = vld [vmem:[%s7172_s8 + $0xe8] sm:$0xff] }
 0x4e3   : > { %4546 = vmatprep.mubr.f32.mxu1 %v2014_v47  ;;  %5032 = vmatpush1.bf16.msra.mxu1 %v5031_v36 }
 0x4e4   : > { %4547 = vmatmul.mubr.f32.gmra.mrb[46].mxu1 %v2019_v41 }
 0x4e5   : > { %2522 = vmatprep.mubr.f32.mxu1 %v7235_v53 }
 0x59b   : > { %v4527_v24 = vpop.f32.mrb[32].mxu1 }
 0x59c   : > { %v2105_v22 = vpop.f32.mrb[33].mxu1 }
 0x59d   : > { %v4973_v41 = vpack.c.bf16 %v4527_v24, %v2105_v22  ;;  %v2771_v24 = vld [vmem:[%s7172_s8 + $0x38] sm:$0xff]  ;;  %v2774_v22 = vld [vmem:[%s7172_s8 + $0x50] sm:$0xff] }
 0x59f   : > { %v4530_v42 = vpop.f32.mrb[34].mxu1  ;;  %4974 = vmatprep.subr.bf16.mxu0 %v4973_v41 }
 0x5a0   : > { %v2115_v50 = vpop.f32.mrb[35].mxu1  ;;  %4976 = vmatpush3.bf16.msra.mxu0 %v4973_v41 }
 0x5a1   : > { %v4977_v47 = vpack.c.bf16 %v4530_v42, %v2115_v50 }
 0x5a3   : > { %v4533_v45 = vpop.f32.mrb[36].mxu1  ;;  %4978 = vmatprep.subr.bf16.mxu0 %v4977_v47 }
 0x5a4   : > { %v2125_v54 = vpop.f32.mrb[37].mxu1  ;;  %4980 = vmatpush3.bf16.msra.mxu0 %v4977_v47  ;;  %v5071_v47 = vpack.c.bf16 %v2767_v55, %v2764_v25  ;;  %v2795_v55 = vld [vmem:[%s7172_s8 + $0xf8] sm:$0xff] }
 0x5a5   : > { %v4981_v30 = vpack.c.bf16 %v4533_v45, %v2125_v54  ;;  %v5073_v45 = vpack.c.bf16 %v2774_v22, %v2771_v24  ;;  %v2770_v54 = vld [vmem:[%s7172_s8 + $0x30] sm:$0xff] }
 0x5a7   : > { %v4536_v40 = vpop.f32.mrb[38].mxu1  ;;  %4982 = vmatprep.subr.bf16.mxu0 %v4981_v30 }
 0x5a8   : > { %v2135_v52 = vpop.f32.mrb[39].mxu1  ;;  %4984 = vmatpush3.bf16.msra.mxu0 %v4981_v30 }
 0x5a9   : > { %v4985_v11 = vpack.c.bf16 %v4536_v40, %v2135_v52  ;;  %v2773_v52 = vld [vmem:[%s7172_s8 + $0x48] sm:$0xff] }
 0x5ab   : > { %v4539_v59 = vpop.f32.mrb[40].mxu1  ;;  %4986 = vmatprep.subr.bf16.mxu0 %v4985_v11 }
 0x5ac   : > { %v2145_v60 = vpop.f32.mrb[41].mxu1  ;;  %4988 = vmatpush3.bf16.msra.mxu0 %v4985_v11  ;;  %v2772_v11 = vld [vmem:[%s7172_s8 + $0x40] sm:$0xff] }
 0x5ad   : > { %v4989_v61 = vpack.c.bf16 %v4539_v59, %v2145_v60  ;;  %v2775_v59 = vld [vmem:[%s7172_s8 + $0x58] sm:$0xff] }
 0x5ae   : > { %v5105_v4 = vpack.c.bf16 %v2775_v59, %v2772_v11 }
 0x5af   : > { %v4542_v62 = vpop.f32.mrb[42].mxu1  ;;  %4990 = vmatprep.subr.bf16.mxu0 %v4989_v61 }
 0x5b0   : > { %v2155_v63 = vpop.f32.mrb[43].mxu1  ;;  %4992 = vmatpush3.bf16.msra.mxu0 %v4989_v61 }
 0x5b1   : > { %v4993_v0 = vpack.c.bf16 %v4542_v62, %v2155_v63  ;;  %v2777_v63 = vld [vmem:[%s7172_s8 + $0x68] sm:$0xff] }
 0x5b3   : > { %v4545_v1 = vpop.f32.mrb[44].mxu1  ;;  %4994 = vmatprep.subr.bf16.mxu0 %v4993_v0 }
 0x5b4   : > { %v2165_v2 = vpop.f32.mrb[45].mxu1  ;;  %4996 = vmatpush3.bf16.msra.mxu0 %v4993_v0  ;;  %v2780_v0 = vld [vmem:[%s7172_s8 + $0x80] sm:$0xff] }
 0x5b5   : > { %v4997_v3 = vpack.c.bf16 %v4545_v1, %v2165_v2  ;;  %v5075_v2 = vpack.c.bf16 %v2773_v52, %v2770_v54  ;;  %v2797_v54 = vld [vmem:[%s7172_s8 + $0x108] sm:$0xff] }
 0x5b7   : > { %v4548_v5 = vpop.f32.mrb[46].mxu1  ;;  %4998 = vmatprep.subr.bf16.mxu0 %v4997_v3 }
 0x5b8   : > { %v2175_v6 = vpop.f32.mrb[47].mxu1  ;;  %5000 = vmatpush3.bf16.msra.mxu0 %v4997_v3  ;;  %v2776_v3 = vld [vmem:[%s7172_s8 + $0x60] sm:$0xff] }
 0x5b9   : > { %v5001_v7 = vpack.c.bf16 %v4548_v5, %v2175_v6  ;;  %v5077_v6 = vpack.c.bf16 %v2780_v0, %v2777_v63  ;;  %v2800_v0 = vld [vmem:[%s7172_s8 + $0x120] sm:$0xff] }
 0x5bb   : > { %5002 = vmatprep.subr.bf16.mxu0 %v5001_v7 }
 0x5bc   : > { %5004 = vmatpush3.bf16.msra.mxu0 %v5001_v7  ;;  %v2779_v7 = vld [vmem:[%s7172_s8 + $0x78] sm:$0xff] }
 0x5bd   : > { %5038 = vmatprep.subr.bf16.mxu0 %v5037_v8 }
 0x5bf   : > { %4582 = vmatmul.mubr.f32.vlgmr.msra.gmra.mrb[32].mxu0 %v6345_v43  ;;  %v5049_v43 = vpack.c.bf16 %v2416_v15, %v2413_v27  ;;  %v5079_v15 = vpack.c.bf16 %v2779_v7, %v2776_v3 }
 0x5c0   : > { %4584 = vmatprep.mubr.f32.mxu0 %v6348_v17  ;;  %5040 = vmatpush3.bf16.msra.mxu0 %v5037_v8  ;;  %v2419_v17 = vld [vmem:[%s7171_s7 + $0xd0] sm:$0xff] }
 0x5c1   : > { %5042 = vmatprep.subr.bf16.mxu0 %v5041_v23  ;;  %v2778_v8 = vld [vmem:[%s7172_s8 + $0x70] sm:$0xff] }
 0x5c3   : > { %4585 = vmatmul.mubr.f32.gmra.mrb[34].mxu0 %v6352_v37  ;;  %v5053_v37 = vpack.c.bf16 %v2422_v32, %v2419_v17  ;;  %v5109_v17 = vpack.c.bf16 %v2781_v9, %v2778_v8 }
 0x5c4   : > { %4587 = vmatprep.mubr.f32.mxu0 %v6356_v49  ;;  %5044 = vmatpush3.bf16.msra.mxu0 %v5041_v23  ;;  %v2425_v49 = vld [vmem:[%s7171_s7 + $0x100] sm:$0xff] }
 0x5c5   : > { %5046 = vmatprep.subr.bf16.mxu0 %v5045_v29 }
 0x5c7   : > { %4588 = vmatmul.mubr.f32.gmra.mrb[36].mxu0 %v6360_v18  ;;  %v5057_v18 = vpack.c.bf16 %v2428_v48, %v2425_v49  ;;  %v2785_v48 = vld [vmem:[%s7172_s8 + $0xa8] sm:$0xff] }
 0x5c8   : > { %4590 = vmatprep.mubr.f32.mxu0 %v6364_v44  ;;  %5048 = vmatpush3.bf16.msra.mxu0 %v5045_v29  ;;  %v2431_v44 = vld [vmem:[%s7171_s7 + $0x130] sm:$0xff] }
 0x5c9   : > { %5050 = vmatprep.subr.bf16.mxu0 %v5049_v43  ;;  %v2786_v29 = vld [vmem:[%s7172_s8 + $0xb0] sm:$0xff] }
 0x5ca   : > { %v5081_v49 = vpack.c.bf16 %v2786_v29, %v2783_v31  ;;  %v2806_v29 = vld [vmem:[%s7172_s8 + $0x150] sm:$0xff] }
 0x5cb   : > { %4591 = vmatmul.mubr.f32.gmra.mrb[38].mxu0 %v6368_v13  ;;  %v5061_v13 = vpack.c.bf16 %v2434_v46, %v2431_v44  ;;  %v2787_v44 = vld [vmem:[%s7172_s8 + $0xb8] sm:$0xff] }
 0x5cc   : > { %4593 = vmatprep.mubr.f32.mxu0 %v6372_v58  ;;  %5052 = vmatpush3.bf16.msra.mxu0 %v5049_v43  ;;  %v2436_v58 = vld [vmem:[%s7171_s7 + $0x158] sm:$0xff]  ;;  %v2782_v43 = vld [vmem:[%s7172_s8 + $0x90] sm:$0xff] }
 0x5cd   : > { %5054 = vmatprep.subr.bf16.mxu0 %v5053_v37 }
 0x5cf   : > { %4594 = vmatmul.mubr.f32.gmra.mrb[40].mxu0 %v6376_v56  ;;  %v2439_v56 = vld [vmem:[%s7171_s7 + $0x170] sm:$0xff] }
 0x5d0   : > { %4596 = vmatprep.mubr.f32.mxu0 %v6380_v57  ;;  %5056 = vmatpush3.bf16.msra.mxu0 %v5053_v37  ;;  %v5033_v57 = vpack.c.bf16 %v2439_v56, %v2436_v58  ;;  %v2789_v56 = vld [vmem:[%s7172_s8 + $0xc8] sm:$0xff] }
 0x5d1   : > { %5058 = vmatprep.subr.bf16.mxu0 %v5057_v18 }
 0x5d2   : > { %5034 = vmatprep.subr.bf16.mxu1 %v5033_v57  ;;  %v2792_v57 = vld [vmem:[%s7172_s8 + $0xe0] sm:$0xff] }
 0x5d3   : > { %4597 = vmatmul.mubr.f32.gmra.mrb[42].mxu0 %v6384_v21  ;;  %v2435_v21 = vld [vmem:[%s7171_s7 + $0x150] sm:$0xff]  ;;  %v5085_v14 = vpack.c.bf16 %v2792_v57, %v2789_v56 }
 0x5d4   : > { %4599 = vmatprep.mubr.f32.mxu0 %v6388_v39  ;;  %5060 = vmatpush3.bf16.msra.mxu0 %v5057_v18  ;;  %v2438_v39 = vld [vmem:[%s7171_s7 + $0x168] sm:$0xff]  ;;  %v2784_v18 = vld [vmem:[%s7172_s8 + $0xa0] sm:$0xff] }
 0x5d5   : > { %5062 = vmatprep.subr.bf16.mxu0 %v5061_v13 }
 0x5d7   : > { %4600 = vmatmul.mubr.f32.gmra.mrb[44].mxu0 %v6392_v38  ;;  %v2437_v38 = vld [vmem:[%s7171_s7 + $0x160] sm:$0xff] }
 0x5d8   : > { %4602 = vmatprep.mubr.f32.mxu0 %v6396_v51  ;;  %5064 = vmatpush3.bf16.msra.mxu0 %v5061_v13  ;;  %v5035_v51 = vpack.c.bf16 %v2438_v39, %v2435_v21  ;;  %v5083_v39 = vpack.c.bf16 %v2785_v48, %v2782_v43 }
 0x5da   : > { %5036 = vmatpush1.bf16.msra.mxu1 %v5035_v51  ;;  %v5113_v51 = vpack.c.bf16 %v2787_v44, %v2784_v18 }
 0x5db   : > { %4603 = vmatmul.mubr.f32.gmra.mrb[46].mxu0 %v6400_v26  ;;  %v2440_v26 = vld [vmem:[%s7171_s7 + $0x178] sm:$0xff]  ;;  %5070 = vmatprep.subr.bf16.mxu1 %v5069_v34  ;;  %v2790_v34 = vld [vmem:[%s7172_s8 + $0xd0] sm:$0xff] }
 0x5dc   : > { %v5065_v33 = vpack.c.bf16 %v2440_v26, %v2437_v38  ;;  %v2788_v38 = vld [vmem:[%s7172_s8 + $0xc0] sm:$0xff] }
 0x5dd   : > { %v5087_v22 = vpack.c.bf16 %v2791_v12, %v2788_v38  ;;  %v6834_v38 = vld [vmem:[#allocation10 + $0x10] sm:$0xff]  ;;  %v6856_v12 = vld [vmem:[#allocation10 + $0x38] sm:$0xff] }
 0x5de   : > { %5066 = vmatprep.subr.bf16.mxu0 %v5065_v33 }
 0x5df   : > { %5068 = vmatpush3.bf16.msra.mxu0 %v5065_v33 }
 0x5e0   : > { %5102 = vmatprep.subr.bf16.mxu0 %v5101_v35 }
 0x692   : > { %v4583_v36 = vpop.f32.mrb[32].mxu0 }
 0x693   : > { %v2346_v41 = vmul.f32 0.22916667, %v4583_v36  ;;  %v2250_v42 = vpop.f32.mrb[33].mxu0  ;;  %vm2330_vm5 = vcmp.ge.f32.partialorder %v4583_v36, 0.0 }
 0x694   : > { %vm2329_vm6 = vcmp.ge.f32.partialorder %v2250_v42, 0.0  ;;  %v2345_v50 = vmul.f32 0.22916667, %v2250_v42 }
 0x695   : > { %v2362_v60 = vsel %vm2330_vm5, %v4583_v36, %v2346_v41  ;;  %v2798_v36 = vld [vmem:[%s7172_s8 + $0x110] sm:$0xff] }
 0x696   : > { %v2361_v30 = vsel %vm2329_vm6, %v2250_v42, %v2345_v50  ;;  %v4586_v40 = vpop.f32.mrb[34].mxu0  ;;  %v2794_v41 = vld [vmem:[%s7172_s8 + $0xf0] sm:$0xff]  ;;  %v5117_v42 = vpack.c.bf16 %v2793_v20, %v2790_v34  ;;  %v6858_v34 = vld [vmem:[#allocation10 + $0x40] sm:$0xff]  ;;  %v6863_v20 = vld [vmem:[#allocation10 + $0x48] sm:$0xff] }
 0x697   : > { %v2348_v61 = vmul.f32 0.22916667, %v4586_v40  ;;  %v2260_v62 = vpop.f32.mrb[35].mxu0  ;;  %2523 = vmatmul.mubr.f32.vlgmr.msra.gmra.mrb[48].mxu1 %v2361_v30  ;;  %4637 = vmatprep.mubr.f32.mxu0 %v2361_v30  ;;  %vm2332_vm7 = vcmp.ge.f32.partialorder %v4586_v40, 0.0  ;;  %v2796_v30 = vld [vmem:[%s7172_s8 + $0x100] sm:$0xff]  ;;  %v5091_v63 = vpack.c.bf16 %v2797_v54, %v2794_v41 }
 0x698   : > { %vm2331_vm8 = vcmp.ge.f32.partialorder %v2260_v62, 0.0  ;;  %v2347_v1 = vmul.f32 0.22916667, %v2260_v62  ;;  %4638 = vmatmul.mubr.f32.vlgmr.msra.gmra.mrb[64].mxu0 %v2362_v60  ;;  %5072 = vmatpush1.bf16.msra.mxu1 %v5071_v47 }
 0x699   : > { %2528 = vmatprep.mubr.f32.mxu1 %v7235_v53  ;;  %5074 = vmatprep.subr.bf16.mxu1 %v5073_v45  ;;  %v2364_v28 = vsel %vm2332_vm7, %v4586_v40, %v2348_v61  ;;  %v5089_v45 = vpack.c.bf16 %v2798_v36, %v2795_v55  ;;  %v2799_v40 = vld [vmem:[%s7172_s8 + $0x118] sm:$0xff]  ;;  %v2804_v61 = vld [vmem:[%s7172_s8 + $0x140] sm:$0xff]  ;;  %v6877_v55 = vld [vmem:[#allocation10 + $0x68] sm:$0xff] }
 0x69a   : > { %v4589_v19 = vpop.f32.mrb[36].mxu0  ;;  %v2363_v5 = vsel %vm2331_vm8, %v2260_v62, %v2347_v1  ;;  %5104 = vmatpush3.bf16.msra.mxu0 %v5101_v35  ;;  %v5121_v1 = vpack.c.bf16 %v2799_v40, %v2796_v30  ;;  %7238 = vst [vmem:[#allocation19_spill] sm:$0xff] %v6877_v55  ;;  %v6879_v36 = vld [vmem:[#allocation10 + $0x70] sm:$0xff] }
 0x69b   : > { %v2350_v10 = vmul.f32 0.22916667, %v4589_v19  ;;  %v2270_v23 = vpop.f32.mrb[37].mxu0  ;;  %2529 = vmatmul.mubr.f32.gmra.mrb[50].mxu1 %v2362_v60  ;;  %4640 = vmatprep.mubr.f32.mxu0 %v2363_v5  ;;  %vm2334_vm9 = vcmp.ge.f32.partialorder %v4589_v19, 0.0  ;;  %v2801_v60 = vld [vmem:[%s7172_s8 + $0x128] sm:$0xff]  ;;  %7239 = vst [vmem:[#allocation20_spill] sm:$0xff] %v6879_v36 }
 0x69c   : > { %vm2333_vm10 = vcmp.ge.f32.partialorder %v2270_v23, 0.0  ;;  %v2349_v27 = vmul.f32 0.22916667, %v2270_v23  ;;  %4641 = vmatmul.mubr.f32.gmra.mrb[66].mxu0 %v2364_v28  ;;  %2534 = vmatprep.mubr.f32.mxu1 %v7235_v53 }
 0x69d   : > { %5076 = vmatpush1.bf16.msra.mxu1 %v5075_v2  ;;  %5106 = vmatprep.subr.bf16.mxu0 %v5105_v4  ;;  %v6721_v58 = vsel %vm2334_vm9, %v4589_v19, %v2350_v10  ;;  %v2803_v19 = vld [vmem:[%s7172_s8 + $0x138] sm:$0xff] }
 0x69e   : > { %v4592_v32 = vpop.f32.mrb[38].mxu0  ;;  %v2365_v37 = vsel %vm2333_vm10, %v2270_v23, %v2349_v27  ;;  %5078 = vmatprep.subr.bf16.mxu1 %v5077_v6  ;;  %5108 = vmatpush3.bf16.msra.mxu0 %v5105_v4  ;;  %v5093_v4 = vpack.c.bf16 %v2804_v61, %v2801_v60  ;;  %v2805_v6 = vld [vmem:[%s7172_s8 + $0x148] sm:$0xff]  ;;  %v2807_v10 = vld [vmem:[%s7172_s8 + $0x158] sm:$0xff]  ;;  %v2810_v23 = vld [vmem:[%s7172_s8 + $0x170] sm:$0xff]  ;;  %v5095_v31 = vpack.c.bf16 %v2803_v19, %v2800_v0 }
 0x69f   : > { %v2352_v46 = vmul.f32 0.22916667, %v4592_v32  ;;  %v2280_v13 = vpop.f32.mrb[39].mxu0  ;;  %2535 = vmatmul.mubr.f32.gmra.mrb[52].mxu1 %v2363_v5  ;;  %4643 = vmatprep.mubr.f32.mxu0 %v2365_v37  ;;  %vm2336_vm12 = vcmp.ge.f32.partialorder %v4592_v32, 0.0  ;;  %v2802_v5 = vld [vmem:[%s7172_s8 + $0x130] sm:$0xff] }
 0x6a0   : > { %vm2335_vm14 = vcmp.ge.f32.partialorder %v2280_v13, 0.0  ;;  %v2351_v21 = vmul.f32 0.22916667, %v2280_v13  ;;  %4644 = vmatmul.mubr.f32.gmra.mrb[68].mxu0 %v6721_v58  ;;  %2540 = vmatprep.mubr.f32.mxu1 %v7235_v53  ;;  %v5125_v27 = vpack.c.bf16 %v2805_v6, %v2802_v5  ;;  %v2441_v61 = vld [vmem:[%s7173_s9] sm:$0x7] }
 0x6a1   : > { %5080 = vmatpush1.bf16.msra.mxu1 %v5079_v15  ;;  %5110 = vmatprep.subr.bf16.mxu0 %v5109_v17  ;;  %v6747_v25 = vsel %vm2336_vm12, %v4592_v32, %v2352_v46  ;;  %v2809_v32 = vld [vmem:[%s7172_s8 + $0x168] sm:$0xff] }
 0x6a2   : > { %v4595_v26 = vpop.f32.mrb[40].mxu0  ;;  %v6734_v33 = vsel %vm2335_vm14, %v2280_v13, %v2351_v21  ;;  %5082 = vmatprep.subr.bf16.mxu1 %v5081_v49  ;;  %5112 = vmatpush3.bf16.msra.mxu0 %v5109_v17  ;;  %v5097_v17 = vpack.c.bf16 %v2810_v23, %v2807_v10  ;;  %v2811_v49 = vld [vmem:[%s7172_s8 + $0x178] sm:$0xff]  ;;  %v5099_v13 = vpack.c.bf16 %v2809_v32, %v2806_v29  ;;  %v6827_v21 = vld [vmem:[#allocation10] sm:$0xff] }
 0x6a3   : > { %v2354_v16 = vmul.f32 0.22916667, %v4595_v26  ;;  %v2290_v35 = vpop.f32.mrb[41].mxu0  ;;  %2541 = vmatmul.mubr.f32.gmra.mrb[54].mxu1 %v2364_v28  ;;  %4646 = vmatprep.mubr.f32.mxu0 %v6734_v33  ;;  %vm2338_vm11 = vcmp.ge.f32.partialorder %v4595_v26, 0.0 }
 0x6a4   : > { %vm2337_vm15 = vcmp.ge.f32.partialorder %v2290_v35, 0.0  ;;  %v2353_v24 = vmul.f32 0.22916667, %v2290_v35  ;;  %4647 = vmatmul.mubr.f32.gmra.mrb[70].mxu0 %v6747_v25  ;;  %2546 = vmatprep.mubr.f32.mxu1 %v7235_v53 }
 0x6a5   : > { %5084 = vmatpush1.bf16.msra.mxu1 %v5083_v39  ;;  %5114 = vmatprep.subr.bf16.mxu0 %v5113_v51  ;;  %v6773_v59 = vsel %vm2338_vm11, %v4595_v26, %v2354_v16  ;;  %v6832_v39 = vld [vmem:[#allocation10 + $0x8] sm:$0xff]  ;;  %v6842_v26 = vld [vmem:[#allocation10 + $0x20] sm:$0xff]  ;;  %v6865_v16 = vld [vmem:[#allocation10 + $0x50] sm:$0xff] }
 0x6a6   : > { %v4598_v50 = vpop.f32.mrb[42].mxu0  ;;  %v6760_v47 = vsel %vm2337_vm15, %v2290_v35, %v2353_v24  ;;  %5086 = vmatprep.subr.bf16.mxu1 %v5085_v14  ;;  %5116 = vmatpush3.bf16.msra.mxu0 %v5113_v51  ;;  %v6840_v51 = vld [vmem:[#allocation10 + $0x18] sm:$0xff]  ;;  %v6850_v14 = vld [vmem:[#allocation10 + $0x30] sm:$0xff] }
 0x6a7   : > { %v2356_v52 = vmul.f32 0.22916667, %v4598_v50  ;;  %v2300_v11 = vpop.f32.mrb[43].mxu0  ;;  %2547 = vmatmul.mubr.f32.gmra.mrb[56].mxu1 %v2365_v37  ;;  %4649 = vmatprep.mubr.f32.mxu0 %v6760_v47  ;;  %vm2340_vm13 = vcmp.ge.f32.partialorder %v4598_v50, 0.0  ;;  %v2808_v37 = vld [vmem:[%s7172_s8 + $0x160] sm:$0xff]  ;;  %v6870_v35 = vld [vmem:[#allocation10 + $0x58] sm:$0xff] }
 0x6a8   : > { %vm2339_vm0 = vcmp.ge.f32.partialorder %v2300_v11, 0.0  ;;  %v2355_v62 = vmul.f32 0.22916667, %v2300_v11  ;;  %4650 = vmatmul.mubr.f32.gmra.mrb[72].mxu0 %v6773_v59  ;;  %2552 = vmatprep.mubr.f32.mxu1 %v7235_v53  ;;  %7236 = vst [vmem:[#allocation17_spill] sm:$0xff] %v6870_v35  ;;  %v6884_v24 = vld [vmem:[#allocation10 + $0x78] sm:$0xff] }
 0x6a9   : > { %5088 = vmatpush1.bf16.msra.mxu1 %v5087_v22  ;;  %5118 = vmatprep.subr.bf16.mxu0 %v5117_v42  ;;  %v6800_v9 = vsel %vm2340_vm13, %v4598_v50, %v2356_v52  ;;  %7240 = vst [vmem:[#allocation21_spill] sm:$0xff] %v6884_v24 }
 0x6aa   : > { %v4601_v2 = vpop.f32.mrb[44].mxu0  ;;  %v6786_v3 = vsel %vm2339_vm0, %v2300_v11, %v2355_v62  ;;  %5090 = vmatprep.subr.bf16.mxu1 %v5089_v45  ;;  %5120 = vmatpush3.bf16.msra.mxu0 %v5117_v42 }
 0x6ab   : > { %v2358_v7 = vmul.f32 0.22916667, %v4601_v2  ;;  %v2310_v8 = vpop.f32.mrb[45].mxu0  ;;  %2553 = vmatmul.mubr.f32.gmra.mrb[58].mxu1 %v6721_v58  ;;  %4652 = vmatprep.mubr.f32.mxu0 %v6786_v3  ;;  %vm2342_vm1 = vcmp.ge.f32.partialorder %v4601_v2, 0.0  ;;  %v5129_v58 = vpack.c.bf16 %v2811_v49, %v2808_v37 }
 0x6ac   : > { %vm2341_vm2 = vcmp.ge.f32.partialorder %v2310_v8, 0.0  ;;  %v2357_v28 = vmul.f32 0.22916667, %v2310_v8  ;;  %4653 = vmatmul.mubr.f32.gmra.mrb[74].mxu0 %v6800_v9  ;;  %2558 = vmatprep.mubr.f32.mxu1 %v7235_v53 }
 0x6ad   : > { %5092 = vmatpush1.bf16.msra.mxu1 %v5091_v63  ;;  %5122 = vmatprep.subr.bf16.mxu0 %v5121_v1  ;;  %v2374_v44 = vsel %vm2342_vm1, %v4601_v2, %v2358_v7 }
 0x6ae   : > { %v4604_v15 = vpop.f32.mrb[46].mxu0  ;;  %v2373_v43 = vsel %vm2341_vm2, %v2310_v8, %v2357_v28  ;;  %5094 = vmatprep.subr.bf16.mxu1 %v5093_v4  ;;  %5124 = vmatpush3.bf16.msra.mxu0 %v5121_v1 }
 0x6af   : > { %v2360_v48 = vmul.f32 0.22916667, %v4604_v15  ;;  %v2320_v18 = vpop.f32.mrb[47].mxu0  ;;  %2559 = vmatmul.mubr.f32.gmra.mrb[60].mxu1 %v6734_v33  ;;  %4655 = vmatprep.mubr.f32.mxu0 %v2373_v43  ;;  %vm2344_vm3 = vcmp.ge.f32.partialorder %v4604_v15, 0.0  ;;  %v6848_v33 = vld [vmem:[#allocation10 + $0x28] sm:$0xff] }
 0x6b0   : > { %vm2343_vm4 = vcmp.ge.f32.partialorder %v2320_v18, 0.0  ;;  %v2359_v46 = vmul.f32 0.22916667, %v2320_v18  ;;  %4656 = vmatmul.mubr.f32.gmra.mrb[76].mxu0 %v2374_v44  ;;  %2564 = vmatprep.mubr.f32.mxu1 %v7235_v53 }
 0x6b1   : > { %5096 = vmatpush1.bf16.msra.mxu1 %v5095_v31  ;;  %5126 = vmatprep.subr.bf16.mxu0 %v5125_v27  ;;  %v2376_v57 = vsel %vm2344_vm3, %v4604_v15, %v2360_v48 }
 0x6b2   : > { %v2375_v56 = vsel %vm2343_vm4, %v2320_v18, %v2359_v46  ;;  %5098 = vmatprep.subr.bf16.mxu1 %v5097_v17  ;;  %5128 = vmatpush3.bf16.msra.mxu0 %v5125_v27  ;;  %v2812_v27 = vld [vmem:[%s7174_s10] sm:$0x7] }
 0x6b3   : > { %2565 = vmatmul.mubr.f32.gmra.mrb[62].mxu1 %v6747_v25  ;;  %4658 = vmatprep.mubr.f32.mxu0 %v2375_v56  ;;  %v6872_v25 = vld [vmem:[#allocation10 + $0x60] sm:$0xff] }
 0x6b4   : > { %4659 = vmatmul.mubr.f32.gmra.mrb[78].mxu0 %v2376_v57  ;;  %2570 = vmatprep.mubr.f32.mxu1 %v7235_v53  ;;  %7237 = vst [vmem:[#allocation18_spill] sm:$0xff] %v6872_v25 }
 0x6b5   : > { %5100 = vmatpush1.bf16.msra.mxu1 %v5099_v13  ;;  %5130 = vmatprep.subr.bf16.mxu0 %v5129_v58 }
 0x6b6   : > { %5132 = vmatpush3.bf16.msra.mxu0 %v5129_v58  ;;  %4693 = vmatprep.mubr.f32.mxu0 %v6827_v21 }
 0x6b7   : > { %2571 = vmatmul.mubr.f32.gmra.mrb[64].mxu1 %v6760_v47 }
 0x6b8   : > { %2576 = vmatprep.mubr.f32.mxu1 %v7235_v53 }
 0x6b9   : > { %4694 = vmatmul.mubr.f32.vlgmr.msra.gmra.mrb[80].mxu0 %v6832_v39 }
 0x6ba   : > { %4696 = vmatprep.mubr.f32.mxu0 %v6834_v38 }
 0x6bb   : > { %2577 = vmatmul.mubr.f32.gmra.mrb[66].mxu1 %v6773_v59  ;;  %v7241_v59 = vld [vmem:[#allocation16_spill] sm:$0xff] }
 0x6bc   : > { %2582 = vmatprep.mubr.f32.mxu1 %v7235_v53  ;;  %v2453_v60 = vsub.s32 2, %v7241_v59  ;;  %v2445_v29 = vsub.s32 0, %v7241_v59 }
 0x6bd   : > { %4697 = vmatmul.mubr.f32.gmra.mrb[82].mxu0 %v6840_v51 }
 0x6be   : > { %4699 = vmatprep.mubr.f32.mxu0 %v6842_v26  ;;  %v6950_v0 = vrot.slane %v2441_v61, %v2453_v60  ;;  %v2446_v32 = vrot.slane %v2441_v61, %v2445_v29  ;;  %v2817_v37 = vrot.slane %v2812_v27, %v2445_v29  ;;  %v6993_v13 = vrot.slane %v2812_v27, %v2453_v60 }
 0x6bf   : > { %2583 = vmatmul.mubr.f32.gmra.mrb[68].mxu1 %v6786_v3 }
 0x6c0   : > { %2588 = vmatprep.mubr.f32.mxu1 %v7235_v53  ;;  %v6991_v46 = vadd.f32 %v2817_v37, %v2446_v32 }
 0x6c1   : > { %4700 = vmatmul.mubr.f32.gmra.mrb[84].mxu0 %v6848_v33 }
 0x6c2   : > { %4702 = vmatprep.mubr.f32.mxu0 %v6850_v14 }
 0x6c3   : > { %2589 = vmatmul.mubr.f32.gmra.mrb[70].mxu1 %v6800_v9 }
 0x6c4   : > { %2594 = vmatprep.mubr.f32.mxu1 %v7235_v53 }
 0x6c5   : > { %4703 = vmatmul.mubr.f32.gmra.mrb[86].mxu0 %v6856_v12 }
 0x6c6   : > { %4705 = vmatprep.mubr.f32.mxu0 %v6858_v34 }
 0x6c7   : > { %2595 = vmatmul.mubr.f32.gmra.mrb[72].mxu1 %v2373_v43  ;;  %v2449_v43 = vsub.s32 1, %v7241_v59 }
 0x6c8   : > { %2600 = vmatprep.mubr.f32.mxu1 %v7235_v53 }
 0x6c9   : > { %4706 = vmatmul.mubr.f32.gmra.mrb[88].mxu0 %v6863_v20  ;;  %v2450_v48 = vrot.slane %v2441_v61, %v2449_v43  ;;  %v2821_v18 = vrot.slane %v2812_v27, %v2449_v43 }
 0x6ca   : > { %4708 = vmatprep.mubr.f32.mxu0 %v6865_v16 }
 0x6cb   : > { %2601 = vmatmul.mubr.f32.gmra.mrb[74].mxu1 %v2374_v44 }
 0x6cc   : > { %2606 = vmatprep.mubr.f32.mxu1 %v7235_v53 }
 0x6cd   : > { %4709 = vmatmul.mubr.f32.gmra.mrb[90].mxu0 %v6870_v35 }
 0x6ce   : > { %4711 = vmatprep.mubr.f32.mxu0 %v6872_v25 }
 0x6cf   : > { %2607 = vmatmul.mubr.f32.gmra.mrb[76].mxu1 %v2375_v56  ;;  %v6995_v56 = vadd.f32 %v2821_v18, %v2450_v48 }
 0x6d0   : > { %2612 = vmatprep.mubr.f32.mxu1 %v7235_v53 }
 0x6d1   : > { %4712 = vmatmul.mubr.f32.gmra.mrb[92].mxu0 %v6877_v55 }
 0x6d2   : > { %4714 = vmatprep.mubr.f32.mxu0 %v6879_v36 }
 0x6d3   : > { %2613 = vmatmul.mubr.f32.gmra.mrb[78].mxu1 %v2376_v57 }
 0x6d4   : > { %2893 = vmatprep.mubr.f32.mxu1 %v7235_v53 }
 0x6d5   : > { %4715 = vmatmul.mubr.f32.gmra.mrb[94].mxu0 %v6884_v24 }
 0x6d7   : > { %2894 = vmatmul.mubr.f32.vlgmr.msra.gmra.mrb[48].mxu1 %v6827_v21 }
 0x6d8   : > { %2899 = vmatprep.mubr.f32.mxu1 %v7235_v53 }
 0x6db   : > { %2900 = vmatmul.mubr.f32.gmra.mrb[50].mxu1 %v6832_v39 }
 0x6dc   : > { %2905 = vmatprep.mubr.f32.mxu1 %v7235_v53 }
 0x6df   : > { %2906 = vmatmul.mubr.f32.gmra.mrb[52].mxu1 %v6834_v38 }
 0x6e0   : > { %2911 = vmatprep.mubr.f32.mxu1 %v7235_v53 }
 0x6e3   : > { %2912 = vmatmul.mubr.f32.gmra.mrb[54].mxu1 %v6840_v51 }
 0x6e4   : > { %2917 = vmatprep.mubr.f32.mxu1 %v7235_v53 }
 0x6e7   : > { %2918 = vmatmul.mubr.f32.gmra.mrb[56].mxu1 %v6842_v26 }
 0x6e8   : > { %2923 = vmatprep.mubr.f32.mxu1 %v7235_v53 }
 0x6eb   : > { %2924 = vmatmul.mubr.f32.gmra.mrb[58].mxu1 %v6848_v33 }
 0x6ec   : > { %2929 = vmatprep.mubr.f32.mxu1 %v7235_v53 }
 0x6ef   : > { %2930 = vmatmul.mubr.f32.gmra.mrb[60].mxu1 %v6850_v14 }
 0x6f0   : > { %2935 = vmatprep.mubr.f32.mxu1 %v7235_v53 }
 0x6f3   : > { %2936 = vmatmul.mubr.f32.gmra.mrb[62].mxu1 %v6856_v12 }
 0x6f4   : > { %2941 = vmatprep.mubr.f32.mxu1 %v7235_v53 }
 0x6f7   : > { %2942 = vmatmul.mubr.f32.gmra.mrb[64].mxu1 %v6858_v34 }
 0x6f8   : > { %2947 = vmatprep.mubr.f32.mxu1 %v7235_v53 }
 0x6fb   : > { %2948 = vmatmul.mubr.f32.gmra.mrb[66].mxu1 %v6863_v20 }
 0x6fc   : > { %2953 = vmatprep.mubr.f32.mxu1 %v7235_v53 }
 0x6ff   : > { %2954 = vmatmul.mubr.f32.gmra.mrb[68].mxu1 %v6865_v16 }
 0x700   : > { %2959 = vmatprep.mubr.f32.mxu1 %v7235_v53 }
 0x703   : > { %2960 = vmatmul.mubr.f32.gmra.mrb[70].mxu1 %v6870_v35 }
 0x704   : > { %2965 = vmatprep.mubr.f32.mxu1 %v7235_v53 }
 0x707   : > { %2966 = vmatmul.mubr.f32.gmra.mrb[72].mxu1 %v6872_v25 }
 0x708   : > { %2971 = vmatprep.mubr.f32.mxu1 %v7235_v53 }
 0x70b   : > { %2972 = vmatmul.mubr.f32.gmra.mrb[74].mxu1 %v6877_v55 }
 0x70c   : > { %2977 = vmatprep.mubr.f32.mxu1 %v7235_v53 }
 0x70f   : > { %2978 = vmatmul.mubr.f32.gmra.mrb[76].mxu1 %v6879_v36 }
 0x710   : > { %2983 = vmatprep.mubr.f32.mxu1 %v7235_v53 }
 0x713   : > { %2984 = vmatmul.mubr.f32.gmra.mrb[78].mxu1 %v6884_v24 }
 0x76b   : > { %v6918_v22 = vpop.f32.mrb[64].mxu0 }
 0x76c   : > { %v6920_v41 = vpop.f32.mrb[65].mxu0 }
 0x76f   : > { %v6922_v42 = vpop.f32.mrb[66].mxu0 }
 0x770   : > { %v6924_v50 = vpop.f32.mrb[67].mxu0 }
 0x773   : > { %v6926_v47 = vpop.f32.mrb[68].mxu0 }
 0x774   : > { %v6928_v45 = vpop.f32.mrb[69].mxu0 }
 0x777   : > { %v6930_v54 = vpop.f32.mrb[70].mxu0 }
 0x778   : > { %v6932_v30 = vpop.f32.mrb[71].mxu0 }
 0x77b   : > { %v6934_v40 = vpop.f32.mrb[72].mxu0 }
 0x77c   : > { %v6936_v53 = vpop.f32.mrb[73].mxu0 }
 0x77f   : > { %v6938_v52 = vpop.f32.mrb[74].mxu0 }
 0x780   : > { %v6940_v11 = vpop.f32.mrb[75].mxu0 }
 0x783   : > { %v6946_v62 = vpop.f32.mrb[76].mxu0 }
 0x784   : > { %7242 = vst [vmem:[#allocation22_spill] sm:$0xff] %v6946_v62  ;;  %v6948_v63 = vpop.f32.mrb[77].mxu0 }
 0x787   : > { %v4660_v1 = vpop.f32.mrb[78].mxu0 }
 0x788   : > { %v6953_v2 = vadd.f32 %v4660_v1, %v6950_v0  ;;  %v2755_v3 = vpop.f32.mrb[79].mxu0 }
 0x789   : > { %v6956_v4 = vadd.f32 %v2755_v3, %v6950_v0 }
 0x78a   : > { %7243 = vst [vmem:[#allocation23_spill] sm:$0xff] %v6953_v2 }
 0x78b   : > { %7244 = vst [vmem:[#allocation16_spill] sm:$0xff] %v6956_v4 }
 0x78c   : > { %v6958_v19 = vpop.f32.mrb[80].mxu0 }
 0x78d   : > { %v6960_v5 = vpop.f32.mrb[81].mxu0 }
 0x790   : > { %v6962_v6 = vpop.f32.mrb[82].mxu0 }
 0x791   : > { %v6964_v7 = vpop.f32.mrb[83].mxu0 }
 0x794   : > { %v6966_v8 = vpop.f32.mrb[84].mxu0 }
 0x795   : > { %v6968_v9 = vpop.f32.mrb[85].mxu0 }
 0x798   : > { %v6970_v10 = vpop.f32.mrb[86].mxu0 }
 0x799   : > { %v6972_v23 = vpop.f32.mrb[87].mxu0 }
 0x79c   : > { %v6974_v28 = vpop.f32.mrb[88].mxu0 }
 0x79d   : > { %v6976_v31 = vpop.f32.mrb[89].mxu0 }
 0x7a0   : > { %v6982_v15 = vpop.f32.mrb[90].mxu0 }
 0x7a1   : > { %v6985_v17 = vpop.f32.mrb[91].mxu0 }
 0x7a4   : > { %v6987_v49 = vpop.f32.mrb[92].mxu0 }
 0x7a5   : > { %v6989_v44 = vpop.f32.mrb[93].mxu0 }
 0x7a8   : > { %v4716_v58 = vpop.f32.mrb[94].mxu0 }
 0x7a9   : > { %v6998_v57 = vadd.f32 %v4716_v58, %v6993_v13  ;;  %v3126_v59 = vpop.f32.mrb[95].mxu0 }
 0x7aa   : > { %v2895_v1 = vpop.f32.mrb[48].mxu1  ;;  %v7001_v3 = vadd.f32 %v3126_v59, %v6993_v13 }
 0x7ab   : > { %7245 = vst [vmem:[#allocation24_spill] sm:$0xff] %v6998_v57  ;;  %v5134_v61 = vadd.f32 %v6991_v46, %v2895_v1  ;;  %v2897_v29 = vpop.f32.mrb[49].mxu1 }
 0x7ac   : > { %7246 = vst [vmem:[#allocation25_spill] sm:$0xff] %v7001_v3  ;;  %v5136_v32 = vadd.f32 %v6995_v56, %v2897_v29 }
 0x7ad   : > { %v3711_v43 = vmul.f32 -1.442695, %v5134_v61 }
 0x7ae   : > { %v2901_v37 = vpop.f32.mrb[50].mxu1  ;;  %v3727_v18 = vmul.f32 -1.442695, %v5136_v32 }
 0x7af   : > { %5359 = vpow2.f32 %v3711_v43  ;;  %v5138_v60 = vadd.f32 %v6991_v46, %v2901_v37  ;;  %v2903_v27 = vpop.f32.mrb[51].mxu1 }
 0x7b0   : > { %v5140_v48 = vadd.f32 %v6995_v56, %v2903_v27 }
 0x7b1   : > { %v3712_v58 = vmul.f32 -1.442695, %v5138_v60 }
 0x7b2   : > { %v2907_v24 = vpop.f32.mrb[52].mxu1  ;;  %v3728_v55 = vmul.f32 -1.442695, %v5140_v48 }
 0x7b3   : > { %5361 = vpow2.f32 %v3712_v58  ;;  %v5142_v59 = vadd.f32 %v6991_v46, %v2907_v24  ;;  %v2909_v36 = vpop.f32.mrb[53].mxu1 }
 0x7b4   : > { %v5144_v1 = vadd.f32 %v6995_v56, %v2909_v36  ;;  %5363 = vpow2.f32 %v3727_v18 }
 0x7b5   : > { %v3713_v61 = vmul.f32 -1.442695, %v5142_v59 }
 0x7b6   : > { %v3729_v29 = vmul.f32 -1.442695, %v5144_v1  ;;  %v2913_v2 = vpop.f32.mrb[54].mxu1 }
 0x7b7   : > { %5365 = vpow2.f32 %v3713_v61  ;;  %v5146_v43 = vadd.f32 %v6991_v46, %v2913_v2  ;;  %v2915_v37 = vpop.f32.mrb[55].mxu1 }
 0x7b8   : > { %5367 = vpow2.f32 %v3728_v55  ;;  %v5148_v60 = vadd.f32 %v6995_v56, %v2915_v37 }
 0x7b9   : > { %v5360_v27 = vpop.eup %5359  ;;  %5369 = vpow2.f32 %v3729_v29  ;;  %v3714_v32 = vmul.f32 -1.442695, %v5146_v43 }
 0x7ba   : > { %v3199_v58 = vadd.f32 1.0, %v5360_v27  ;;  %v2919_v24 = vpop.f32.mrb[56].mxu1  ;;  %v3730_v59 = vmul.f32 -1.442695, %v5148_v60 }
 0x7bb   : > { %5371 = vpow2.f32 %v3714_v32  ;;  %v5150_v48 = vadd.f32 %v6991_v46, %v2919_v24  ;;  %v2921_v36 = vpop.f32.mrb[57].mxu1 }
 0x7bc   : > { %5373 = vrcp.f32 %v3199_v58  ;;  %v5152_v61 = vadd.f32 %v6995_v56, %v2921_v36 }
 0x7bd   : > { %v5362_v18 = vpop.eup %5361  ;;  %v3715_v1 = vmul.f32 -1.442695, %v5150_v48 }
 0x7be   : > { %v3200_v2 = vadd.f32 1.0, %v5362_v18  ;;  %v2925_v57 = vpop.f32.mrb[58].mxu1  ;;  %v5364_v55 = vpop.eup %5363  ;;  %v3731_v27 = vmul.f32 -1.442695, %v5152_v61 }
 0x7bf   : > { %5375 = vpow2.f32 %v3715_v1  ;;  %v5154_v29 = vadd.f32 %v6991_v46, %v2925_v57  ;;  %v2927_v43 = vpop.f32.mrb[59].mxu1  ;;  %v3311_v25 = vadd.f32 1.0, %v5364_v55  ;;  %v3057_v57 = vadd.f32 %v6960_v5, %v6993_v13 }
 0x7c0   : > { %5377 = vrcp.f32 %v3200_v2  ;;  %v5156_v60 = vadd.f32 %v6995_v56, %v2927_v43  ;;  %v2686_v1 = vadd.f32 %v6920_v41, %v6950_v0  ;;  %v3062_v55 = vadd.f32 %v6958_v19, %v6993_v13 }
 0x7c1   : > { %v5366_v37 = vpop.eup %5365  ;;  %5379 = vpow2.f32 %v3730_v59  ;;  %v3716_v32 = vmul.f32 -1.442695, %v5154_v29 }
 0x7c2   : > { %v5368_v24 = vpop.eup %5367  ;;  %v3201_v58 = vadd.f32 1.0, %v5366_v37  ;;  %v2931_v48 = vpop.f32.mrb[60].mxu1 }
 0x7c3   : > { %v5370_v4 = vpop.eup %5369  ;;  %5381 = vpow2.f32 %v3716_v32  ;;  %v5158_v36 = vadd.f32 %v6991_v46, %v2931_v48  ;;  %v2933_v18 = vpop.f32.mrb[61].mxu1  ;;  %v3312_v61 = vadd.f32 1.0, %v5368_v24  ;;  %v3732_v32 = vmul.f32 -1.442695, %v5156_v60 }
 0x7c4   : > { %5383 = vrcp.f32 %v3201_v58  ;;  %v3313_v43 = vadd.f32 1.0, %v5370_v4  ;;  %v5160_v5 = vadd.f32 %v6995_v56, %v2933_v18 }
 0x7c5   : > { %v5372_v59 = vpop.eup %5371  ;;  %5385 = vpow2.f32 %v3731_v27  ;;  %v3717_v2 = vmul.f32 -1.442695, %v5158_v36  ;;  %v2691_v27 = vadd.f32 %v6918_v22, %v6950_v0 }
 0x7c6   : > { %v5374_v29 = vpop.eup %5373  ;;  %5387 = vrcp.f32 %v3311_v25  ;;  %v3202_v37 = vadd.f32 1.0, %v5372_v59  ;;  %v2937_v48 = vpop.f32.mrb[62].mxu1  ;;  %v3067_v59 = vadd.f32 %v6964_v7, %v6993_v13  ;;  %v3072_v7 = vadd.f32 %v6962_v6, %v6993_v13 }
 0x7c7   : > { %5389 = vpow2.f32 %v3717_v2  ;;  %v3359_v35 = vmul.f32 %v5374_v29, %v3057_v57  ;;  %v5162_v41 = vadd.f32 %v6991_v46, %v2937_v48  ;;  %v2939_v58 = vpop.f32.mrb[63].mxu1  ;;  %v3733_v57 = vmul.f32 -1.442695, %v5160_v5 }
 0x7c8   : > { %5391 = vrcp.f32 %v3202_v37  ;;  %v5164_v29 = vadd.f32 %v6995_v56, %v2939_v58 }
 0x7c9   : > { %v5376_v24 = vpop.eup %5375  ;;  %5393 = vrcp.f32 %v3312_v61  ;;  %v3375_v19 = vadd.f32 %v3359_v35, %v2686_v1  ;;  %v3718_v4 = vmul.f32 -1.442695, %v5162_v41  ;;  %v2696_v35 = vadd.f32 %v6924_v50, %v6950_v0 }
 0x7ca   : > { %v5378_v36 = vpop.eup %5377  ;;  %5395 = vrcp.f32 %v3313_v43  ;;  %v3203_v25 = vadd.f32 1.0, %v5376_v24  ;;  %v2943_v60 = vpop.f32.mrb[64].mxu1  ;;  %v3734_v5 = vmul.f32 -1.442695, %v5164_v29 }
 0x7cb   : > { %v5380_v18 = vpop.eup %5379  ;;  %5397 = vpow2.f32 %v3732_v32  ;;  %v3360_v2 = vmul.f32 %v5378_v36, %v3062_v55  ;;  %v2945_v37 = vpop.f32.mrb[65].mxu1  ;;  %v5166_v1 = vadd.f32 %v6991_v46, %v2943_v60 }
 0x7cc   : > { %5399 = vrcp.f32 %v3203_v25  ;;  %v3314_v43 = vadd.f32 1.0, %v5380_v18  ;;  %v5168_v58 = vadd.f32 %v6995_v56, %v2945_v37 }
 0x7cd   : > { %v5382_v48 = vpop.eup %5381  ;;  %v3376_v22 = vadd.f32 %v3360_v2, %v2691_v27  ;;  %5401 = vtanh.f32 %v3375_v19  ;;  %v2701_v19 = vadd.f32 %v6922_v42, %v6950_v0  ;;  %v3719_v25 = vmul.f32 -1.442695, %v5166_v1 }
 0x7ce   : > { %v5384_v61 = vpop.eup %5383  ;;  %v3204_v41 = vadd.f32 1.0, %v5382_v48  ;;  %5403 = vpow2.f32 %v3718_v4  ;;  %v2949_v55 = vpop.f32.mrb[66].mxu1  ;;  %v2711_v42 = vadd.f32 %v6926_v47, %v6950_v0 }
 0x7cf   : > { %v5386_v32 = vpop.eup %5385  ;;  %5405 = vpow2.f32 %v3733_v57  ;;  %v3361_v24 = vmul.f32 %v5384_v61, %v3067_v59  ;;  %v2951_v36 = vpop.f32.mrb[67].mxu1  ;;  %v5170_v57 = vadd.f32 %v6991_v46, %v2949_v55  ;;  %v3735_v59 = vmul.f32 -1.442695, %v5168_v58 }
 0x7d0   : > { %v5388_v50 = vpop.eup %5387  ;;  %5407 = vrcp.f32 %v3204_v41  ;;  %v3315_v6 = vadd.f32 1.0, %v5386_v32  ;;  %v3077_v61 = vadd.f32 %v6968_v9, %v6993_v13 }
 0x7d1   : > { %v5390_v27 = vpop.eup %5389  ;;  %5409 = vtanh.f32 %v3376_v22  ;;  %v3377_v4 = vadd.f32 %v3361_v24, %v2696_v35  ;;  %v2706_v35 = vadd.f32 %v6928_v45, %v6950_v0  ;;  %v3407_v32 = vsub.f32 1.0, %v5388_v50 }
 0x7d2   : > { %v5392_v60 = vpop.eup %5391  ;;  %5411 = vrcp.f32 %v3314_v43  ;;  %v3205_v18 = vadd.f32 1.0, %v5390_v27  ;;  %v2955_v2 = vpop.f32.mrb[68].mxu1  ;;  %v3720_v9 = vmul.f32 -1.442695, %v5170_v57 }
 0x7d3   : > { %v5394_v29 = vpop.eup %5393  ;;  %5413 = vpow2.f32 %v3734_v5  ;;  %v3362_v37 = vmul.f32 %v5392_v60, %v3072_v7  ;;  %v2957_v48 = vpop.f32.mrb[69].mxu1  ;;  %v5174_v43 = vadd.f32 %v6991_v46, %v2955_v2  ;;  %v3082_v7 = vadd.f32 %v6966_v8, %v6993_v13 }
 0x7d4   : > { %v7040_v41 = vpop.eup %5395  ;;  %5415 = vrcp.f32 %v3205_v18  ;;  %v5172_v5 = vadd.f32 %v6995_v56, %v2951_v36  ;;  %v5176_v45 = vadd.f32 %v6995_v56, %v2957_v48  ;;  %v3439_v60 = vmul.f32 %v5388_v50, %v6827_v21 }
 0x7d5   : > { %v5398_v22 = vpop.eup %5397  ;;  %5417 = vpow2.f32 %v3719_v25  ;;  %v3378_v1 = vadd.f32 %v3362_v37, %v2701_v19  ;;  %v3087_v19 = vadd.f32 %v6972_v23, %v6993_v13  ;;  %v3721_v36 = vmul.f32 -1.442695, %v5174_v43 }
 0x7d6   : > { %v5400_v55 = vpop.eup %5399  ;;  %5419 = vrcp.f32 %v3315_v6  ;;  %v2961_v58 = vpop.f32.mrb[70].mxu1  ;;  %v3316_v8 = vadd.f32 1.0, %v5398_v22  ;;  %v3736_v48 = vmul.f32 -1.442695, %v5172_v5  ;;  %v3737_v23 = vmul.f32 -1.442695, %v5176_v45 }
 0x7d7   : > { %v5402_v47 = vpop.eup %5401  ;;  %5421 = vpow2.f32 %v3735_v59  ;;  %v3363_v24 = vmul.f32 %v5400_v55, %v3077_v61  ;;  %v2963_v27 = vpop.f32.mrb[71].mxu1  ;;  %v3408_v59 = vsub.f32 1.0, %v5394_v29  ;;  %v5178_v21 = vadd.f32 %v6991_v46, %v2961_v58 }
 0x7d8   : > { %v5404_v25 = vpop.eup %5403  ;;  %v3423_v18 = vmul.f32 %v5402_v47, %v3407_v32  ;;  %5423 = vtanh.f32 %v3378_v1  ;;  %v3440_v1 = vmul.f32 %v5394_v29, %v6832_v39  ;;  %v7058_v43 = vadd.f32 %v6930_v54, %v6950_v0 }
 0x7d9   : > { %v5406_v6 = vpop.eup %5405  ;;  %v3206_v57 = vadd.f32 1.0, %v5404_v25  ;;  %5425 = vtanh.f32 %v3377_v4  ;;  %v3379_v2 = vadd.f32 %v3363_v24, %v2706_v35  ;;  %v2716_v32 = vadd.f32 %v6932_v30, %v6950_v0 }
 0x7da   : > { %v5408_v37 = vpop.eup %5407  ;;  %v3455_v3 = vadd.f32 %v3439_v60, %v3423_v18  ;;  %5427 = vpow2.f32 %v3720_v9  ;;  %v2967_v61 = vpop.f32.mrb[72].mxu1  ;;  %v3092_v39 = vadd.f32 %v6970_v10, %v6993_v13  ;;  %v3409_v47 = vsub.f32 1.0, %v7040_v41 }
 0x7db   : > { %v5410_v55 = vpop.eup %5409  ;;  %5429 = vrcp.f32 %v3206_v57  ;;  %v3364_v62 = vmul.f32 %v5408_v37, %v3082_v7  ;;  %v2969_v50 = vpop.f32.mrb[73].mxu1  ;;  %v5182_v58 = vadd.f32 %v6991_v46, %v2967_v61  ;;  %v3722_v54 = vmul.f32 -1.442695, %v5178_v21 }
 0x7dc   : > { %v5412_v22 = vpop.eup %5411  ;;  %5431 = vrcp.f32 %v3316_v8  ;;  %v3424_v4 = vmul.f32 %v5410_v55, %v3408_v59  ;;  %3471 = vst [vmem:[#allocation10] sm:$0xff] %v3455_v3  ;;  %v5180_v25 = vadd.f32 %v6995_v56, %v2963_v27  ;;  %v5184_v27 = vadd.f32 %v6995_v56, %v2969_v50 }
 0x7dd   : > { %v5414_v35 = vpop.eup %5413  ;;  %5433 = vpow2.f32 %v3721_v36  ;;  %v3380_v9 = vadd.f32 %v3364_v62, %v2711_v42  ;;  %v3317_v62 = vadd.f32 1.0, %v5406_v6  ;;  %v3410_v8 = vsub.f32 1.0, %v5412_v22 }
 0x7de   : > { %v5416_v7 = vpop.eup %5415  ;;  %v3456_v5 = vadd.f32 %v3440_v1, %v3424_v4  ;;  %5435 = vpow2.f32 %v3736_v48  ;;  %v2973_v29 = vpop.f32.mrb[74].mxu1  ;;  %v3318_v10 = vadd.f32 1.0, %v5414_v35  ;;  %v3442_v36 = vmul.f32 %v5412_v22, %v6840_v51 }
 0x7df   : > { %v5418_v3 = vpop.eup %5417  ;;  %5437 = vpow2.f32 %v3737_v23  ;;  %v3365_v45 = vmul.f32 %v5416_v7, %v3087_v19  ;;  %v7066_v24 = vpop.f32.mrb[75].mxu1  ;;  %v3441_v19 = vmul.f32 %v7040_v41, %v6834_v38  ;;  %v3723_v37 = vmul.f32 -1.442695, %v5182_v58 }
 0x7e0   : > { %v7068_v30 = vpop.eup %5419  ;;  %3472 = vst [vmem:[#allocation10 + $0x8] sm:$0xff] %v3456_v5  ;;  %v3207_v42 = vadd.f32 1.0, %v5418_v3  ;;  %5439 = vtanh.f32 %v3380_v9  ;;  %v3738_v21 = vmul.f32 -1.442695, %v5180_v25  ;;  %v5186_v50 = vadd.f32 %v6991_v46, %v2973_v29 }
 0x7e1   : > { %v5422_v60 = vpop.eup %5421  ;;  %5441 = vtanh.f32 %v3379_v2  ;;  %v7071_v18 = vadd.f32 %v3365_v45, %v2716_v32  ;;  %v3739_v5 = vmul.f32 -1.442695, %v5184_v27  ;;  %v2726_v29 = vadd.f32 %v6936_v53, %v6950_v0 }
 0x7e2   : > { %v5424_v57 = vpop.eup %5423  ;;  %5443 = vrcp.f32 %v3207_v42  ;;  %v2979_v6 = vpop.f32.mrb[76].mxu1  ;;  %v3319_v51 = vadd.f32 1.0, %v5422_v60  ;;  %v3097_v25 = vadd.f32 %v6976_v31, %v6993_v13  ;;  %v3411_v60 = vsub.f32 1.0, %v7068_v30 }
 0x7e3   : > { %v5426_v59 = vpop.eup %5425  ;;  %v3426_v48 = vmul.f32 %v5424_v57, %v3410_v8  ;;  %5445 = vpow2.f32 %v3722_v54  ;;  %v5190_v61 = vadd.f32 %v6991_v46, %v2979_v6  ;;  %v2981_v55 = vpop.f32.mrb[77].mxu1  ;;  %v3724_v8 = vmul.f32 -1.442695, %v5186_v50 }
 0x7e4   : > { %v5428_v2 = vpop.eup %5427  ;;  %5447 = vrcp.f32 %v3317_v62  ;;  %v3425_v23 = vmul.f32 %v5426_v59, %v3409_v47  ;;  %v7079_v1 = vadd.f32 %v6995_v56, %v2981_v55  ;;  %v5188_v31 = vadd.f32 %v6995_v56, %v7066_v24 }
 0x7e5   : > { %v5430_v38 = vpop.eup %5429  ;;  %5449 = vrcp.f32 %v3318_v10  ;;  %v3458_v41 = vadd.f32 %v3442_v36, %v3426_v48  ;;  %v3208_v22 = vadd.f32 1.0, %v5428_v2 }
 0x7e6   : > { %v5432_v4 = vpop.eup %5431  ;;  %v3457_v35 = vadd.f32 %v3441_v19, %v3425_v23  ;;  %5451 = vpow2.f32 %v3723_v37  ;;  %v3366_v32 = vmul.f32 %v5430_v38, %v3092_v39  ;;  %v2985_v9 = vpop.f32.mrb[78].mxu1  ;;  %v3443_v37 = vmul.f32 %v7068_v30, %v6842_v26 }
 0x7e7   : > { %v5434_v7 = vpop.eup %5433  ;;  %3474 = vst [vmem:[#allocation10 + $0x18] sm:$0xff] %v3458_v41  ;;  %5453 = vrcp.f32 %v3208_v22  ;;  %v5194_v58 = vadd.f32 %v6991_v46, %v2985_v9  ;;  %v2987_v3 = vpop.f32.mrb[79].mxu1  ;;  %v3412_v42 = vsub.f32 1.0, %v5432_v4  ;;  %v3444_v57 = vmul.f32 %v5432_v4, %v6848_v33 }
 0x7e8   : > { %v5436_v47 = vpop.eup %5435  ;;  %3473 = vst [vmem:[#allocation10 + $0x10] sm:$0xff] %v3457_v35  ;;  %v3209_v54 = vadd.f32 1.0, %v5434_v7  ;;  %5455 = vpow2.f32 %v3738_v21  ;;  %v3382_v45 = vadd.f32 %v3366_v32, %v7058_v43  ;;  %v7085_v62 = vadd.f32 %v6995_v56, %v2987_v3 }
 0x7e9   : > { %v5438_v39 = vpop.eup %5437  ;;  %5457 = vrcp.f32 %v3319_v51  ;;  %v3102_v43 = vadd.f32 %v6974_v28, %v6993_v13  ;;  %v3320_v19 = vadd.f32 1.0, %v5436_v47  ;;  %v3725_v28 = vmul.f32 -1.442695, %v5190_v61 }
 0x7ea   : > { %v5440_v46 = vpop.eup %5439  ;;  %5459 = vrcp.f32 %v3209_v54  ;;  %v3321_v33 = vadd.f32 1.0, %v5438_v39  ;;  %v3740_v38 = vmul.f32 -1.442695, %v5188_v31  ;;  %v3107_v61 = vadd.f32 %v6985_v17, %v6993_v13 }
 0x7eb   : > { %v5442_v10 = vpop.eup %5441  ;;  %v3428_v36 = vmul.f32 %v5440_v46, %v3412_v42  ;;  %5461 = vpow2.f32 %v3739_v5  ;;  %v2731_v41 = vadd.f32 %v6934_v40, %v6950_v0  ;;  %v2736_v32 = vadd.f32 %v6940_v11, %v6950_v0 }
 0x7ec   : > { %v5444_v53 = vpop.eup %5443  ;;  %v3427_v6 = vmul.f32 %v5442_v10, %v3411_v60  ;;  %5463 = vtanh.f32 %v3382_v45  ;;  %v3726_v9 = vmul.f32 -1.442695, %v5194_v58  ;;  %v3112_v40 = vadd.f32 %v6982_v15, %v6993_v13 }
 0x7ed   : > { %v5446_v59 = vpop.eup %5445  ;;  %v3460_v48 = vadd.f32 %v3444_v57, %v3428_v36  ;;  %5465 = vtanh.f32 %v7071_v18  ;;  %v3367_v27 = vmul.f32 %v5444_v53, %v3097_v25  ;;  %v3741_v18 = vmul.f32 -1.442695, %v7079_v1 }
 0x7ee   : > { %v5448_v55 = vpop.eup %5447  ;;  %v3459_v2 = vadd.f32 %v3443_v37, %v3427_v6  ;;  %v3210_v23 = vadd.f32 1.0, %v5446_v59  ;;  %5467 = vpow2.f32 %v3724_v8  ;;  %v2746_v31 = vadd.f32 %v6948_v63, %v6950_v0 }
 0x7ef   : > { %v5450_v21 = vpop.eup %5449  ;;  %5469 = vrcp.f32 %v3320_v19  ;;  %3476 = vst [vmem:[#allocation10 + $0x28] sm:$0xff] %v3460_v48  ;;  %v3383_v26 = vadd.f32 %v3367_v27, %v2726_v29  ;;  %v3413_v47 = vsub.f32 1.0, %v5448_v55  ;;  %v3445_v58 = vmul.f32 %v5448_v55, %v6850_v14 }
 0x7f0   : > { %v5452_v30 = vpop.eup %5451  ;;  %3475 = vst [vmem:[#allocation10 + $0x20] sm:$0xff] %v3459_v2  ;;  %5471 = vrcp.f32 %v3210_v23  ;;  %v3414_v7 = vsub.f32 1.0, %v5450_v21  ;;  %v3446_v45 = vmul.f32 %v5450_v21, %v6856_v12  ;;  %v3117_v12 = vadd.f32 %v6989_v44, %v6993_v13 }
 0x7f1   : > { %v5454_v56 = vpop.eup %5453  ;;  %v3211_v24 = vadd.f32 1.0, %v5452_v30  ;;  %5473 = vpow2.f32 %v3725_v28  ;;  %v2741_v19 = vadd.f32 %v6938_v52, %v6950_v0  ;;  %v3122_v23 = vadd.f32 %v6987_v49, %v6993_v13 }
 0x7f2   : > { %v5456_v51 = vpop.eup %5455  ;;  %5475 = vrcp.f32 %v3321_v33  ;;  %v3368_v22 = vmul.f32 %v5454_v56, %v3102_v43  ;;  %v3742_v43 = vmul.f32 -1.442695, %v7085_v62 }
 0x7f3   : > { %v7105_v4 = vpop.eup %5457  ;;  %5477 = vrcp.f32 %v3211_v24  ;;  %v3322_v5 = vadd.f32 1.0, %v5456_v51 }
 0x7f4   : > { %v5460_v35 = vpop.eup %5459  ;;  %5479 = vpow2.f32 %v3740_v38  ;;  %v3384_v50 = vadd.f32 %v3368_v22, %v2731_v41  ;;  %v3415_v28 = vsub.f32 1.0, %v7105_v4  ;;  %v3447_v63 = vmul.f32 %v7105_v4, %v6858_v34 }
 0x7f5   : > { %v5462_v1 = vpop.eup %5461  ;;  %5481 = vpow2.f32 %v3741_v18  ;;  %v3369_v17 = vmul.f32 %v5460_v35, %v3107_v61  ;;  %v7247_v35 = vld [vmem:[#allocation22_spill] sm:$0xff] }
 0x7f6   : > { %v5464_v3 = vpop.eup %5463  ;;  %5483 = vtanh.f32 %v3384_v50  ;;  %v3323_v42 = vadd.f32 1.0, %v5462_v1  ;;  %v2751_v34 = vadd.f32 %v7247_v35, %v6950_v0 }
 0x7f7   : > { %v5466_v54 = vpop.eup %5465  ;;  %v3430_v39 = vmul.f32 %v5464_v3, %v3414_v7  ;;  %5485 = vtanh.f32 %v3383_v26  ;;  %v3385_v11 = vadd.f32 %v3369_v17, %v2736_v32  ;;  %v7249_v3 = vld [vmem:[#allocation17_spill] sm:$0xff] }
 0x7f8   : > { %v5468_v29 = vpop.eup %5467  ;;  %v3429_v25 = vmul.f32 %v5466_v54, %v3413_v47  ;;  %5487 = vpow2.f32 %v3726_v9 }
 0x7f9   : > { %v5470_v46 = vpop.eup %5469  ;;  %5489 = vrcp.f32 %v3322_v5  ;;  %v3462_v60 = vadd.f32 %v3446_v45, %v3430_v39  ;;  %v3212_v8 = vadd.f32 1.0, %v5468_v29  ;;  %v7250_v45 = vld [vmem:[#allocation16_spill] sm:$0xff] }
 0x7fa   : > { %v5472_v10 = vpop.eup %5471  ;;  %v3461_v15 = vadd.f32 %v3445_v58, %v3429_v25  ;;  %5491 = vtanh.f32 %v3385_v11  ;;  %v3416_v48 = vsub.f32 1.0, %v5470_v46  ;;  %v3448_v33 = vmul.f32 %v5470_v46, %v6863_v20  ;;  %v7251_v58 = vld [vmem:[#allocation18_spill] sm:$0xff] }
 0x7fb   : > { %v5474_v57 = vpop.eup %5473  ;;  %3478 = vst [vmem:[#allocation10 + $0x38] sm:$0xff] %v3462_v60  ;;  %5493 = vrcp.f32 %v3212_v8  ;;  %v3370_v14 = vmul.f32 %v5472_v10, %v3112_v40 }
 0x7fc   : > { %v5476_v36 = vpop.eup %5475  ;;  %5495 = vrcp.f32 %v3323_v42  ;;  %3477 = vst [vmem:[#allocation10 + $0x30] sm:$0xff] %v3461_v15  ;;  %v3213_v53 = vadd.f32 1.0, %v5474_v57  ;;  %v7253_v15 = vld [vmem:[#allocation23_spill] sm:$0xff] }
 0x7fd   : > { %v5478_v37 = vpop.eup %5477  ;;  %5497 = vpow2.f32 %v3742_v43  ;;  %v3386_v62 = vadd.f32 %v3370_v14, %v2741_v19  ;;  %v3417_v56 = vsub.f32 1.0, %v5476_v36  ;;  %v3449_v20 = vmul.f32 %v5476_v36, %v6865_v16  ;;  %v7248_v16 = vld [vmem:[#allocation25_spill] sm:$0xff]  ;;  %v7252_v43 = vld [vmem:[#allocation24_spill] sm:$0xff]  ;;  %v7254_v36 = vld [vmem:[#allocation19_spill] sm:$0xff] }
 0x7fe   : > { %v5480_v6 = vpop.eup %5479  ;;  %5499 = vrcp.f32 %v3213_v53  ;;  %v3371_v44 = vmul.f32 %v5478_v37, %v3117_v12 }
 0x7ff   : > { %v5482_v59 = vpop.eup %5481  ;;  %5501 = vtanh.f32 %v3386_v62  ;;  %v3324_v26 = vadd.f32 1.0, %v5480_v6 }
 0x800   : > { %v5484_v52 = vpop.eup %5483  ;;  %v3387_v27 = vadd.f32 %v3371_v44, %v2746_v31  ;;  %v3325_v22 = vadd.f32 1.0, %v5482_v59  ;;  %v7255_v44 = vld [vmem:[#allocation20_spill] sm:$0xff] }
 0x801   : > { %v5486_v55 = vpop.eup %5485  ;;  %v3432_v2 = vmul.f32 %v5484_v52, %v3416_v48 }
 0x802   : > { %v5488_v21 = vpop.eup %5487  ;;  %v3431_v30 = vmul.f32 %v5486_v55, %v3415_v28  ;;  %5503 = vtanh.f32 %v3387_v27 }
 0x803   : > { %v5490_v38 = vpop.eup %5489  ;;  %v3464_v24 = vadd.f32 %v3448_v33, %v3432_v2  ;;  %v3214_v18 = vadd.f32 1.0, %v5488_v21  ;;  %v7256_v33 = vld [vmem:[#allocation21_spill] sm:$0xff] }
 0x804   : > { %v5492_v61 = vpop.eup %5491  ;;  %v3463_v51 = vadd.f32 %v3447_v63, %v3431_v30  ;;  %v3418_v1 = vsub.f32 1.0, %v5490_v38  ;;  %v3450_v47 = vmul.f32 %v5490_v38, %v7249_v3 }
 0x805   : > { %v5494_v41 = vpop.eup %5493  ;;  %3480 = vst [vmem:[#allocation10 + $0x48] sm:$0xff] %v3464_v24  ;;  %5505 = vrcp.f32 %v3214_v18  ;;  %v3433_v49 = vmul.f32 %v5492_v61, %v3417_v56 }
 0x806   : > { %v5496_v13 = vpop.eup %5495  ;;  %5507 = vrcp.f32 %v3324_v26  ;;  %3479 = vst [vmem:[#allocation10 + $0x40] sm:$0xff] %v3463_v51  ;;  %v3372_v4 = vmul.f32 %v5494_v41, %v3122_v23 }
 0x807   : > { %v5498_v32 = vpop.eup %5497  ;;  %v3465_v50 = vadd.f32 %v3449_v20, %v3433_v49  ;;  %5509 = vrcp.f32 %v3325_v22  ;;  %v3419_v54 = vsub.f32 1.0, %v5496_v13  ;;  %v3451_v42 = vmul.f32 %v5496_v13, %v7251_v58 }
 0x808   : > { %v5500_v9 = vpop.eup %5499  ;;  %v3388_v7 = vadd.f32 %v3372_v4, %v2751_v34  ;;  %v3326_v11 = vadd.f32 1.0, %v5498_v32 }
 0x809   : > { %v5502_v5 = vpop.eup %5501  ;;  %3481 = vst [vmem:[#allocation10 + $0x50] sm:$0xff] %v3465_v50  ;;  %v3373_v17 = vmul.f32 %v5500_v9, %v7248_v16 }
 0x80a   : > { %v3434_v40 = vmul.f32 %v5502_v5, %v3418_v1  ;;  %5511 = vtanh.f32 %v3388_v7 }
 0x80b   : > { %v3389_v0 = vadd.f32 %v3373_v17, %v7250_v45 }
 0x80c   : > { %v5504_v39 = vpop.eup %5503  ;;  %v3466_v29 = vadd.f32 %v3450_v47, %v3434_v40 }
 0x80d   : > { %v3435_v25 = vmul.f32 %v5504_v39, %v3419_v54  ;;  %5513 = vtanh.f32 %v3389_v0 }
 0x80e   : > { %3482 = vst [vmem:[#allocation10 + $0x58] sm:$0xff] %v3466_v29  ;;  %5515 = vrcp.f32 %v3326_v11 }
 0x80f   : > { %v5506_v46 = vpop.eup %5505  ;;  %v3467_v60 = vadd.f32 %v3451_v42, %v3435_v25 }
 0x810   : > { %v5508_v8 = vpop.eup %5507  ;;  %v3374_v10 = vmul.f32 %v5506_v46, %v7252_v43 }
 0x811   : > { %3483 = vst [vmem:[#allocation10 + $0x60] sm:$0xff] %v3467_v60  ;;  %v5510_v57 = vpop.eup %5509  ;;  %v3420_v19 = vsub.f32 1.0, %v5508_v8  ;;  %v3452_v53 = vmul.f32 %v5508_v8, %v7254_v36 }
 0x812   : > { %v3390_v12 = vadd.f32 %v3374_v10, %v7253_v15  ;;  %v3421_v62 = vsub.f32 1.0, %v5510_v57  ;;  %v3453_v59 = vmul.f32 %v5510_v57, %v7255_v44 }
 0x814   : > { %v5512_v14 = vpop.eup %5511  ;;  %5517 = vtanh.f32 %v3390_v12 }
 0x815   : > { %v3436_v37 = vmul.f32 %v5512_v14, %v3420_v19 }
 0x817   : > { %v5514_v6 = vpop.eup %5513  ;;  %v3468_v31 = vadd.f32 %v3452_v53, %v3436_v37 }
 0x818   : > { %v3437_v48 = vmul.f32 %v5514_v6, %v3421_v62  ;;  %v5516_v52 = vpop.eup %5515 }
 0x819   : > { %3484 = vst [vmem:[#allocation10 + $0x68] sm:$0xff] %v3468_v31  ;;  %v3422_v27 = vsub.f32 1.0, %v5516_v52  ;;  %v3454_v2 = vmul.f32 %v5516_v52, %v7256_v33 }
 0x81a   : > { %v3469_v28 = vadd.f32 %v3453_v59, %v3437_v48 }
 0x81c   : > { %3485 = vst [vmem:[#allocation10 + $0x70] sm:$0xff] %v3469_v28 }
 0x81e   : > { %v5518_v55 = vpop.eup %5517 }
 0x81f   : > { %v3438_v23 = vmul.f32 %v5518_v55, %v3422_v27 }
 0x821   : > { %v3470_v21 = vadd.f32 %v3454_v2, %v3438_v23 }
 0x823   : > { %3486 = vst [vmem:[#allocation10 + $0x78] sm:$0xff] %v3470_v21 }
 0x824   : > { %5644 = shalt.err (!%p5641_p0)
}
 0x825   : > { %s5645_s26 = scalar_lea.hbm %s7175_s11, 2048 }
 0x826   : > { %p5646_p3 = scmp.ne.s32.totalorder %s7175_s11, %s5645_s26  ;;  %p5651_p6 = scmp.lt.u32.totalorder %s5645_s26, %s7175_s11 }
 0x828   : > { %p5647_p4 = pnand %p5646_p3, %p5302_p9 }
 0x82a   : > { %p5648_p1 = pneg %p5647_p4 }
 0x82c   : > { %p5653_p5 = pnand %p5651_p6, %p5648_p1 }
 0x82e   : > { %5656 = shalt.err (!%p5653_p5)
}
 0x82f   : > { %s5692_s15 = smov 128   ;;  %s5693_s25 = smov 8  }
 0x830   : > { %5278 = dma.vmem_to_hbm [thread:$0]  (%p5302_p9), %s3494_s14, 2048, %s7175_s11, [#allocation4], %s5692_s15, %s5692_s15, %s5693_s25  }
 0x831   : > { %5674 = dma.done.wait (%p5302_p9), [#allocation4], 2048  }
 0x832   : > { %5676 = vsyncadd (%p5302_p9), [#allocation4], 4294965248 }
 0x833 PF: > { %s7257_s17 = sld [smem:[#allocation15_spill]] }
 0x839   : > { %s25_s17 = sadd.s32 1, %s7257_s17  }
 0x83a   : > { %p22_p7 = scmp.ge.s32.totalorder %s25_s17, 5  }
 0x83c   :  { %24 = sbr.rel (!%p22_p7) target bundleno = 4 (0x4), region = 120 }
 0x843   :  { %3509 = vsyncpa [#allocation3], 1 }
 0x844   :  { %3511 = vsyncpa [#allocation3 + $0x1], 1 }
 0x845   :  { %3512 = vsyncpa [#allocation6], 1 }
 0x846   :  { %3513 = vsyncpa [#allocation9], 1 }
 0x847   :  { %3514 = vsyncpa [#allocation4], 1 }
 0x848   :  { %3516 = vsyncpa [#allocation4 + $0x1], 1 }

</bundles_post_ra>
